<compile_context>
chip_gen: v7x
topology: tpu7x:2x2x1
jax: 0.10.0
libtpu: 0.0.40
codegen_flags: <defaults>
</compile_context>

<pallas_src>
import jax
import jax.numpy as jnp
from jax.experimental import pallas as pl
from jax.experimental.pallas import tpu as pltpu

OUT_DIM = 11
OUT_PAD = 128  # lane-dense padded output width (multiple of 128)


def _round_up(v, m):
    return ((v + m - 1) // m) * m


def mlp_kernel(x_ref,
               w1_ref, b1_ref,
               w2_ref, b2_ref,
               w3_ref, b3_ref,
               w4_ref, b4_ref,
               o_ref):
    # Layer 1: bf16 MXU matmul, f32 accumulate; bias + ReLU in f32.
    h = jnp.dot(x_ref[...], w1_ref[...], preferred_element_type=jnp.float32)
    h = jnp.maximum(h + b1_ref[...], 0.0)
    # TODO(synk): train-mode dropout would need pltpu.prng_seed/prng_random_bits;
    # eval-mode dropout is the identity.

    h = jnp.dot(h.astype(jnp.bfloat16), w2_ref[...],
                preferred_element_type=jnp.float32)
    h = jnp.maximum(h + b2_ref[...], 0.0)

    h = jnp.dot(h.astype(jnp.bfloat16), w3_ref[...],
                preferred_element_type=jnp.float32)
    h = jnp.maximum(h + b3_ref[...], 0.0)

    out = jnp.dot(h.astype(jnp.bfloat16), w4_ref[...],
                  preferred_element_type=jnp.float32)
    o_ref[...] = (out + b4_ref[...]).astype(o_ref.dtype)


def mlp_kernel_ktiled(x_ref,
                      w1_ref, b1_ref,
                      w2_ref, b2_ref,
                      w3_ref, b3_ref,
                      w4_ref, b4_ref,
                      o_ref, acc_ref):
    # Layer 1 streamed over K (grid axis 1, "arbitrary"); W1 tiles (tk, 1024).
    k = pl.program_id(1)

    @pl.when(k == 0)
    def _():
        acc_ref[...] = jnp.zeros_like(acc_ref)

    acc_ref[...] += jnp.dot(x_ref[...], w1_ref[...],
                            preferred_element_type=jnp.float32)

    @pl.when(k == pl.num_programs(1) - 1)
    def _():
        h = jnp.maximum(acc_ref[...] + b1_ref[...], 0.0)
        h = jnp.dot(h.astype(jnp.bfloat16), w2_ref[...],
                    preferred_element_type=jnp.float32)
        h = jnp.maximum(h + b2_ref[...], 0.0)
        h = jnp.dot(h.astype(jnp.bfloat16), w3_ref[...],
                    preferred_element_type=jnp.float32)
        h = jnp.maximum(h + b3_ref[...], 0.0)
        out = jnp.dot(h.astype(jnp.bfloat16), w4_ref[...],
                      preferred_element_type=jnp.float32)
        o_ref[...] = (out + b4_ref[...]).astype(o_ref.dtype)


def mlp_forward(x, params, *, block_b=512, k_tile=512, force_k_tiled=False):
    """x: (B, ...) flattened to (B, in_features) like nn.Flatten."""
    B = x.shape[0]
    x2d = x.reshape(B, -1)
    in_features = x2d.shape[1]

    (w1, b1), (w2, b2), (w3, b3), (w4, b4) = params

    # bf16 matmul operands, f32 accumulation inside the kernel; biases f32.
    x2d = x2d.astype(jnp.bfloat16)
    w1, w2, w3, w4 = (w.astype(jnp.bfloat16) for w in (w1, w2, w3, w4))
    b1, b2, b3, b4 = (b.astype(jnp.float32).reshape(1, -1)
                      for b in (b1, b2, b3, b4))

    # Pad the final layer to a lane-dense width (11 -> 128); padded cols are 0.
    w4p = jnp.zeros((w4.shape[0], OUT_PAD), jnp.bfloat16).at[:, :OUT_DIM].set(w4)
    b4p = jnp.zeros((1, OUT_PAD), jnp.float32).at[:, :OUT_DIM].set(b4)

    # ---- generation-aware VMEM cap ----------------------------------------
    try:
        vmem_cap = int(pltpu.get_tpu_info().vmem_capacity_bytes)
    except Exception:
        vmem_cap = 64 << 20  # conservative fallback (v7x per-core VMEM)
    hard_cap = min(int(0.75 * vmem_cap), 96 << 20)  # ~48 MiB v7x, ~96 MiB v5e/v6e

    # Stream W1 over K when it exceeds ~1/3 of the cap (large in_features on v7x).
    w1_bytes = in_features * 1024 * 2
    use_ktile = force_k_tiled or (w1_bytes > hard_cap // 3)

    if use_ktile:
        tk = min(_round_up(k_tile, 128), _round_up(in_features, 128))
        kdim = _round_up(in_features, tk)
    else:
        tk = None
        kdim = in_features

    # ---- batch tile: 16-aligned (bf16 sublane packing), >=2 steps if B > 16 ---
    b16 = _round_up(max(B, 1), 16)
    if B > 16:
        tb = min(block_b, _round_up((b16 + 1) // 2, 16))
    else:
        tb = b16
    tb = max(16, _round_up(tb, 16))

    def est_vmem(tb_):
        # Input BlockSpecs are double-buffered by default -> count weights 2x.
        if use_ktile:
            w1_res = 2 * tk * 1024 * 2
            x_tile = 2 * tb_ * tk * 2
            acc = tb_ * 1024 * 4
        else:
            w1_res = 2 * kdim * 1024 * 2
            x_tile = 2 * tb_ * kdim * 2
            acc = 0
        other_w = 2 * (1024 * 256 + 256 * 64 + 64 * OUT_PAD) * 2
        biases = 2 * (1024 + 256 + 64 + OUT_PAD) * 4
        out_tile = 2 * tb_ * OUT_PAD * 2           # bf16 output tiles
        acts = tb_ * (1024 + 256 + 64 + OUT_PAD) * 4
        return w1_res + other_w + biases + x_tile + out_tile + acc + acts

    # Shrink the batch tile (16-aligned) until the footprint fits the cap.
    while tb > 16 and int(1.25 * est_vmem(tb)) > hard_cap:
        tb = max(16, _round_up(tb // 2, 16))

    b_pad = _round_up(B, tb)
    n_blocks = b_pad // tb

    # Zero-pad batch rows (and K columns if streaming W1).
    pad_rows = b_pad - B
    pad_cols = kdim - in_features
    if pad_rows or pad_cols:
        x2d = jnp.pad(x2d, ((0, pad_rows), (0, pad_cols)))
    if pad_cols:
        w1 = jnp.pad(w1, ((0, pad_cols), (0, 0)))

    def full_spec(a):
        nd = a.ndim
        return pl.BlockSpec(a.shape, lambda *_, _nd=nd: (0,) * _nd)

    # Advisory cost estimate for XLA scheduling around the custom call.
    flops = 2 * b_pad * (kdim * 1024 + 1024 * 256 + 256 * 64 + 64 * OUT_PAD)
    weight_bytes = (kdim * 1024 + 1024 * 256 + 256 * 64 + 64 * OUT_PAD) * 2
    bias_bytes = (1024 + 256 + 64 + OUT_PAD) * 4
    bytes_accessed = (b_pad * kdim * 2 + weight_bytes + bias_bytes
                      + b_pad * OUT_PAD * 2)
    cost = pl.CostEstimate(flops=flops, transcendentals=0,
                           bytes_accessed=bytes_accessed)

    vmem_budget = min(hard_cap,
                      max(16 << 20, int(1.3 * est_vmem(tb)) + (4 << 20)))

    out_shape = jax.ShapeDtypeStruct((b_pad, OUT_PAD), jnp.bfloat16)

    if use_ktile:
        out_padded = pl.pallas_call(
            mlp_kernel_ktiled,
            out_shape=out_shape,
            grid=(n_blocks, kdim // tk),
            in_specs=[
                pl.BlockSpec((tb, tk), lambda i, k: (i, k)),
                pl.BlockSpec((tk, 1024), lambda i, k: (k, 0)),
                full_spec(b1),
                full_spec(w2), full_spec(b2),
                full_spec(w3), full_spec(b3),
                full_spec(w4p), full_spec(b4p),
            ],
            out_specs=pl.BlockSpec((tb, OUT_PAD), lambda i, k: (i, 0)),
            scratch_shapes=[pltpu.VMEM((tb, 1024), jnp.float32)],
            compiler_params=pltpu.CompilerParams(
                dimension_semantics=("parallel", "arbitrary"),
                vmem_limit_bytes=vmem_budget),
            cost_estimate=cost,
        )(x2d, w1, b1, w2, b2, w3, b3, w4p, b4p)
    else:
        out_padded = pl.pallas_call(
            mlp_kernel,
            out_shape=out_shape,
            grid=(n_blocks,),
            in_specs=[
                pl.BlockSpec((tb, kdim), lambda i: (i, 0)),
                full_spec(w1), full_spec(b1),
                full_spec(w2), full_spec(b2),
                full_spec(w3), full_spec(b3),
                full_spec(w4p), full_spec(b4p),
            ],
            out_specs=pl.BlockSpec((tb, OUT_PAD), lambda i: (i, 0)),
            compiler_params=pltpu.CompilerParams(
                dimension_semantics=("parallel",),
                vmem_limit_bytes=vmem_budget),
            cost_estimate=cost,
        )(x2d, w1, b1, w2, b2, w3, b3, w4p, b4p)

    return out_padded[:B, :OUT_DIM].astype(jnp.float32)


def init_params(key, in_features):
    """Deterministic init mimicking nn.Linear (uniform +-1/sqrt(fan_in))."""
    dims = [in_features, 1024, 256, 64, OUT_DIM]
    params = []
    for i in range(4):
        fan_in, fan_out = dims[i], dims[i + 1]
        key, kw, kb = jax.random.split(key, 3)
        bound = 1.0 / jnp.sqrt(jnp.float32(fan_in))
        # stored as (in, out) — transpose of PyTorch's (out, in)
        w = jax.random.uniform(kw, (fan_in, fan_out), jnp.float32, -bound, bound)
        b = jax.random.uniform(kb, (1, fan_out), jnp.float32, -bound, bound)
        params.append((w, b))
    return params


if __name__ == "__main__":
    key = jax.random.PRNGKey(0)
    kx, kp = jax.random.split(key)

    # Input consistent with an image batch that flattens to in_features.
    B, C, H, W = 2, 4, 16, 16          # in_features = 4*16*16 = 1024
    x = jax.random.normal(kx, (B, C, H, W), jnp.float32)

    params = init_params(kp, C * H * W)

    # Default (resident-W1) path.
    out = mlp_forward(x, params)
    out = jax.block_until_ready(out)

    # Also exercise the K-streamed layer-1 path (used automatically when W1 is
    # too big for the per-generation VMEM cap, e.g. large in_features on v7x).
    out_kt = mlp_forward(x, params, force_k_tiled=True, k_tile=256)
    out_kt = jax.block_until_ready(out_kt)

    # Reference check in plain JAX with the same bf16-in / f32-accumulate
    # numerics (eval-mode dropout = identity).
    ref = x.reshape(B, -1)
    for i, (w, b) in enumerate(params):
        ref = jnp.dot(ref.astype(jnp.bfloat16), w.astype(jnp.bfloat16),
                      preferred_element_type=jnp.float32) + b.astype(jnp.float32)
        if i < 3:
            ref = jnp.maximum(ref, 0.0)

    assert out.shape == (B, OUT_DIM)
    assert out_kt.shape == (B, OUT_DIM)
    assert jnp.allclose(out, ref, atol=3e-2, rtol=3e-2), (
        f"max abs err {jnp.max(jnp.abs(out - ref))}")
    assert jnp.allclose(out_kt, ref, atol=3e-2, rtol=3e-2), (
        f"max abs err (k-tiled) {jnp.max(jnp.abs(out_kt - ref))}")

    print("KERNEL_OK")
</pallas_src>

<mosaic_0001>
module attributes {stable_mosaic.version = 11 : i64} {
  func.func @mlp_kernel(%arg0: i32, %arg1: memref<16x1024xbf16, #tpu.memory_space<vmem>>, %arg2: memref<1024x1024xbf16, #tpu.memory_space<vmem>>, %arg3: memref<1x1024xf32, #tpu.memory_space<vmem>>, %arg4: memref<1024x256xbf16, #tpu.memory_space<vmem>>, %arg5: memref<1x256xf32, #tpu.memory_space<vmem>>, %arg6: memref<256x64xbf16, #tpu.memory_space<vmem>>, %arg7: memref<1x64xf32, #tpu.memory_space<vmem>>, %arg8: memref<64x128xbf16, #tpu.memory_space<vmem>>, %arg9: memref<1x128xf32, #tpu.memory_space<vmem>>, %arg10: memref<16x128xbf16, #tpu.memory_space<vmem>>) attributes {dimension_semantics = [#tpu.dimension_semantics<parallel>], iteration_bounds = array<i64: 1>, scalar_prefetch = 0 : i64, scratch_operands = 0 : i64, tpu.core_type = #tpu.core_type<tc>, window_params = [{transform_indices = @transform_0, window_bounds = array<i64: 16, 1024>}, {pipeline_mode = #tpu.pipeline_mode<synchronous>, transform_indices = @transform_1, window_bounds = array<i64: 1024, 1024>}, {pipeline_mode = #tpu.pipeline_mode<synchronous>, transform_indices = @transform_2, window_bounds = array<i64: 1, 1024>}, {pipeline_mode = #tpu.pipeline_mode<synchronous>, transform_indices = @transform_3, window_bounds = array<i64: 1024, 256>}, {pipeline_mode = #tpu.pipeline_mode<synchronous>, transform_indices = @transform_4, window_bounds = array<i64: 1, 256>}, {pipeline_mode = #tpu.pipeline_mode<synchronous>, transform_indices = @transform_5, window_bounds = array<i64: 256, 64>}, {pipeline_mode = #tpu.pipeline_mode<synchronous>, transform_indices = @transform_6, window_bounds = array<i64: 1, 64>}, {pipeline_mode = #tpu.pipeline_mode<synchronous>, transform_indices = @transform_7, window_bounds = array<i64: 64, 128>}, {pipeline_mode = #tpu.pipeline_mode<synchronous>, transform_indices = @transform_8, window_bounds = array<i64: 1, 128>}, {transform_indices = @transform_9, window_bounds = array<i64: 16, 128>}]} {
    %c0 = arith.constant 0 : index
    %c0_0 = arith.constant 0 : index
    %0 = vector.load %arg1[%c0, %c0_0] : memref<16x1024xbf16, #tpu.memory_space<vmem>>, vector<16x1024xbf16>
    %c0_1 = arith.constant 0 : index
    %c0_2 = arith.constant 0 : index
    %1 = vector.load %arg2[%c0_1, %c0_2] : memref<1024x1024xbf16, #tpu.memory_space<vmem>>, vector<1024x1024xbf16>
    %cst = arith.constant dense<0.000000e+00> : vector<16x1024xf32>
    %2 = tpu.matmul %0, %1, %cst {dimension_numbers = #tpu.dot_dimension_numbers<[1], [0], [0], [1], [0, 0, 1, 1], [], []>} : vector<16x1024xbf16>, vector<1024x1024xbf16>, vector<16x1024xf32> -> vector<16x1024xf32>
    %c0_3 = arith.constant 0 : index
    %c0_4 = arith.constant 0 : index
    %3 = vector.load %arg3[%c0_3, %c0_4] : memref<1x1024xf32, #tpu.memory_space<vmem>>, vector<1x1024xf32>
    %4 = vector.broadcast %3 : vector<1x1024xf32> to vector<16x1024xf32>
    %5 = arith.addf %2, %4 : vector<16x1024xf32>
    %cst_5 = arith.constant 0.000000e+00 : f32
    %6 = vector.broadcast %cst_5 : f32 to vector<16x1024xf32>
    %7 = arith.maximumf %5, %6 : vector<16x1024xf32>
    %8 = arith.truncf %7 : vector<16x1024xf32> to vector<16x1024xbf16>
    %c0_6 = arith.constant 0 : index
    %c0_7 = arith.constant 0 : index
    %9 = vector.load %arg4[%c0_6, %c0_7] : memref<1024x256xbf16, #tpu.memory_space<vmem>>, vector<1024x256xbf16>
    %cst_8 = arith.constant dense<0.000000e+00> : vector<16x256xf32>
    %10 = tpu.matmul %8, %9, %cst_8 {dimension_numbers = #tpu.dot_dimension_numbers<[1], [0], [0], [1], [0, 0, 1, 1], [], []>} : vector<16x1024xbf16>, vector<1024x256xbf16>, vector<16x256xf32> -> vector<16x256xf32>
    %c0_9 = arith.constant 0 : index
    %c0_10 = arith.constant 0 : index
    %11 = vector.load %arg5[%c0_9, %c0_10] : memref<1x256xf32, #tpu.memory_space<vmem>>, vector<1x256xf32>
    %12 = vector.broadcast %11 : vector<1x256xf32> to vector<16x256xf32>
    %13 = arith.addf %10, %12 : vector<16x256xf32>
    %cst_11 = arith.constant 0.000000e+00 : f32
    %14 = vector.broadcast %cst_11 : f32 to vector<16x256xf32>
    %15 = arith.maximumf %13, %14 : vector<16x256xf32>
    %16 = arith.truncf %15 : vector<16x256xf32> to vector<16x256xbf16>
    %c0_12 = arith.constant 0 : index
    %c0_13 = arith.constant 0 : index
    %17 = vector.load %arg6[%c0_12, %c0_13] : memref<256x64xbf16, #tpu.memory_space<vmem>>, vector<256x64xbf16>
    %cst_14 = arith.constant dense<0.000000e+00> : vector<16x64xf32>
    %18 = tpu.matmul %16, %17, %cst_14 {dimension_numbers = #tpu.dot_dimension_numbers<[1], [0], [0], [1], [0, 0, 1, 1], [], []>} : vector<16x256xbf16>, vector<256x64xbf16>, vector<16x64xf32> -> vector<16x64xf32>
    %c0_15 = arith.constant 0 : index
    %c0_16 = arith.constant 0 : index
    %19 = vector.load %arg7[%c0_15, %c0_16] : memref<1x64xf32, #tpu.memory_space<vmem>>, vector<1x64xf32>
    %20 = vector.broadcast %19 : vector<1x64xf32> to vector<16x64xf32>
    %21 = arith.addf %18, %20 : vector<16x64xf32>
    %cst_17 = arith.constant 0.000000e+00 : f32
    %22 = vector.broadcast %cst_17 : f32 to vector<16x64xf32>
    %23 = arith.maximumf %21, %22 : vector<16x64xf32>
    %24 = arith.truncf %23 : vector<16x64xf32> to vector<16x64xbf16>
    %c0_18 = arith.constant 0 : index
    %c0_19 = arith.constant 0 : index
    %25 = vector.load %arg8[%c0_18, %c0_19] : memref<64x128xbf16, #tpu.memory_space<vmem>>, vector<64x128xbf16>
    %cst_20 = arith.constant dense<0.000000e+00> : vector<16x128xf32>
    %26 = tpu.matmul %24, %25, %cst_20 {dimension_numbers = #tpu.dot_dimension_numbers<[1], [0], [0], [1], [0, 0, 1, 1], [], []>} : vector<16x64xbf16>, vector<64x128xbf16>, vector<16x128xf32> -> vector<16x128xf32>
    %c0_21 = arith.constant 0 : index
    %c0_22 = arith.constant 0 : index
    %27 = vector.load %arg9[%c0_21, %c0_22] : memref<1x128xf32, #tpu.memory_space<vmem>>, vector<1x128xf32>
    %28 = vector.broadcast %27 : vector<1x128xf32> to vector<16x128xf32>
    %29 = arith.addf %26, %28 : vector<16x128xf32>
    %30 = arith.truncf %29 : vector<16x128xf32> to vector<16x128xbf16>
    %c0_23 = arith.constant 0 : index
    %c0_24 = arith.constant 0 : index
    %31 = vector.load %arg10[%c0_23, %c0_24] : memref<16x128xbf16, #tpu.memory_space<vmem>>, vector<16x128xbf16>
    tpu.vector_store %arg10[%c0_23, %c0_24], %30 {strides = array<i32>} : memref<16x128xbf16, #tpu.memory_space<vmem>>, vector<16x128xbf16>,
    return
  }
  func.func @transform_0(%arg0: i32) -> (i32, i32) {
    %c0_i32 = arith.constant 0 : i32
    %c0_i32_0 = arith.constant 0 : i32
    return %arg0, %c0_i32 : i32, i32
  }
  func.func @transform_1(%arg0: i32) -> (i32, i32) {
    %c0_i32 = arith.constant 0 : i32
    %c0_i32_0 = arith.constant 0 : i32
    %c0_i32_1 = arith.constant 0 : i32
    return %c0_i32, %c0_i32_0 : i32, i32
  }
  func.func @transform_2(%arg0: i32) -> (i32, i32) {
    %c0_i32 = arith.constant 0 : i32
    %c0_i32_0 = arith.constant 0 : i32
    %c0_i32_1 = arith.constant 0 : i32
    return %c0_i32, %c0_i32_0 : i32, i32
  }
  func.func @transform_3(%arg0: i32) -> (i32, i32) {
    %c0_i32 = arith.constant 0 : i32
    %c0_i32_0 = arith.constant 0 : i32
    %c0_i32_1 = arith.constant 0 : i32
    return %c0_i32, %c0_i32_0 : i32, i32
  }
  func.func @transform_4(%arg0: i32) -> (i32, i32) {
    %c0_i32 = arith.constant 0 : i32
    %c0_i32_0 = arith.constant 0 : i32
    %c0_i32_1 = arith.constant 0 : i32
    return %c0_i32, %c0_i32_0 : i32, i32
  }
  func.func @transform_5(%arg0: i32) -> (i32, i32) {
    %c0_i32 = arith.constant 0 : i32
    %c0_i32_0 = arith.constant 0 : i32
    %c0_i32_1 = arith.constant 0 : i32
    return %c0_i32, %c0_i32_0 : i32, i32
  }
  func.func @transform_6(%arg0: i32) -> (i32, i32) {
    %c0_i32 = arith.constant 0 : i32
    %c0_i32_0 = arith.constant 0 : i32
    %c0_i32_1 = arith.constant 0 : i32
    return %c0_i32, %c0_i32_0 : i32, i32
  }
  func.func @transform_7(%arg0: i32) -> (i32, i32) {
    %c0_i32 = arith.constant 0 : i32
    %c0_i32_0 = arith.constant 0 : i32
    %c0_i32_1 = arith.constant 0 : i32
    return %c0_i32, %c0_i32_0 : i32, i32
  }
  func.func @transform_8(%arg0: i32) -> (i32, i32) {
    %c0_i32 = arith.constant 0 : i32
    %c0_i32_0 = arith.constant 0 : i32
    %c0_i32_1 = arith.constant 0 : i32
    return %c0_i32, %c0_i32_0 : i32, i32
  }
  func.func @transform_9(%arg0: i32) -> (i32, i32) {
    %c0_i32 = arith.constant 0 : i32
    %c0_i32_0 = arith.constant 0 : i32
    return %arg0, %c0_i32 : i32, i32
  }
}

</mosaic_0001>

<bundles_post_ra>
// kernel: tpu_custom_call.1
= control target key start
LH: loop header
LB: loop body
LE: loop exit
PB: predicated region body
PF: predicated region fallthrough
CT: control target
= control target key end

     0   :  { %14 = vsyncpa [#allocation3], 0  ;;  %s6864_s0 = inlined_call_operand.hbm [shape: bf16[16,1024], index: 0, kind: input, shape index: {}]   ;;  %s6865_s1 = inlined_call_operand.hbm [shape: bf16[1024,1024], index: 1, kind: input, shape index: {}]   ;;  %s6866_s2 = inlined_call_operand.hbm [shape: f32[1,1024], index: 2, kind: input, shape index: {}]   ;;  %s6867_s3 = inlined_call_operand.hbm [shape: bf16[1024,256], index: 3, kind: input, shape index: {}]   ;;  %s6868_s4 = inlined_call_operand.hbm [shape: f32[1,256], index: 4, kind: input, shape index: {}]   ;;  %s6869_s5 = inlined_call_operand.vmem [shape: bf16[256,64], index: 5, kind: input, shape index: {}]   ;;  %s6870_s6 = inlined_call_operand.hbm [shape: f32[1,64], index: 6, kind: input, shape index: {}]   ;;  %s6871_s7 = inlined_call_operand.hbm [shape: bf16[64,128], index: 7, kind: input, shape index: {}]   ;;  %s6872_s8 = inlined_call_operand.hbm [shape: f32[1,128], index: 8, kind: input, shape index: {}]   ;;  %s6873_s9 = inlined_call_operand.hbm [shape: bf16[16,128], index: 9, kind: output, shape index: {}]  }
   0x1   :  { %15 = vsyncpa [#allocation6], 0 }
   0x2   :  { %16 = vsyncpa [#allocation9], 0 }
   0x3   :  { %17 = vsyncpa [#allocation12], 0 }
   0x4   :  { %18 = vsyncpa [#allocation15], 0 }
   0x5   :  { %19 = vsyncpa [#allocation4], 0  ;;  %s6500_s30 = smov [#allocation5]   ;;  %s6501_s11 = smov [#allocation8]  }
   0x6   :  { %s37_s10 = sshll.u32 %s6500_s30, 4  ;;  %s59_s12 = sshll.u32 %s6501_s11, 4  ;;  %s38_s10 = int_to_ptr.vmem [resolvable:$true] %s37_s10  ;;  %s6567_s12 = int_to_ptr.vmem [resolvable:$true] %s59_s12 }
   0x7   :  { %s6290_s15 = scalar_lea.hbm %s6865_s1, 65536 }
   0x8   :  { %p6291_p0 = scmp.ne.s32.totalorder %s6865_s1, %s6290_s15  ;;  %p6294_p1 = scmp.lt.u32.totalorder %s6290_s15, %s6865_s1 }
   0xa   :  { %p6296_p2 = pnand %p6294_p1, %p6291_p0 }
   0xc   :  { %6299 = shalt.err (!%p6296_p2)
}
   0xd   :  { %s6300_s20 = scalar_lea.vmem %s38_s10, 65536  ;;  %p6305_p4 = scmp.lt.s32.totalorder %s38_s10, %s38_s10 }
   0xe   :  { %p6301_p3 = scmp.ne.s32.totalorder %s38_s10, %s6300_s20  ;;  %p6306_p5 = scmp.lt.s32.totalorder %s6300_s20, %s6300_s20 }
  0x10   :  { %p6307_p6 = por %p6306_p5, %p6305_p4 }
  0x12   :  { %p6308_p7 = pnand %p6307_p6, %p6301_p3 }
  0x14   :  { %6311 = shalt.err (!%p6308_p7)
}
  0x15   :  { %s6502_s21 = smov 512   ;;  %s6503_s22 = smov 32  }
  0x16   :  { %43 = dma.hbm_to_vmem [thread:$0]  %s6865_s1, 65536, %s38_s10, [#allocation6], %s6502_s21, %s6502_s21, %s6503_s22  }
  0x17   :  { %s6312_s27 = scalar_lea.hbm %s6867_s3, 16384 }
  0x18   :  { %p6313_p8 = scmp.ne.s32.totalorder %s6867_s3, %s6312_s27  ;;  %p6316_p9 = scmp.lt.u32.totalorder %s6312_s27, %s6867_s3 }
  0x1a   :  { %p6318_p10 = pnand %p6316_p9, %p6313_p8 }
  0x1c   :  { %6321 = shalt.err (!%p6318_p10)
}
  0x1d   :  { %s6322_s13 = scalar_lea.vmem %s6567_s12, 16384  ;;  %p6327_p12 = scmp.lt.s32.totalorder %s6567_s12, %s6567_s12 }
  0x1e   :  { %p6323_p11 = scmp.ne.s32.totalorder %s6567_s12, %s6322_s13  ;;  %p6328_p13 = scmp.lt.s32.totalorder %s6322_s13, %s6322_s13 }
  0x20   :  { %p6329_p0 = por %p6328_p13, %p6327_p12 }
  0x22   :  { %p6330_p1 = pnand %p6329_p0, %p6323_p11 }
  0x24   :  { %6333 = shalt.err (!%p6330_p1)
}
  0x25   :  { %s6504_s1 = smov 128   ;;  %s6505_s10 = smov 8  }
  0x26   :  { %65 = dma.hbm_to_vmem [thread:$0]  %s6867_s3, 16384, %s6567_s12, [#allocation9], %s6504_s1, %s6504_s1, %s6505_s10  }
  0x27   :  { %s6506_s16 = smov [#allocation11]   ;;  %s6507_s18 = smov [#allocation2]  }
  0x28   :  { %s84_s17 = sshll.u32 %s6506_s16, 4  ;;  %s25_s19 = sshll.u32 %s6507_s18, 4  ;;  %s85_s17 = int_to_ptr.vmem [resolvable:$true] %s84_s17  ;;  %s6601_s19 = int_to_ptr.vmem [resolvable:$true] %s25_s19 }
  0x29   :  { %s6334_s24 = scalar_lea.hbm %s6870_s6, 16 }
  0x2a   :  { %p6335_p2 = scmp.ne.s32.totalorder %s6870_s6, %s6334_s24  ;;  %p6338_p3 = scmp.lt.u32.totalorder %s6334_s24, %s6870_s6 }
  0x2c   :  { %p6340_p4 = pnand %p6338_p3, %p6335_p2 }
  0x2e   :  { %6343 = shalt.err (!%p6340_p4)
}
  0x2f   :  { %s6344_s3 = scalar_lea.vmem %s85_s17, 16  ;;  %s6348_s12 = scalar_lea.vmem %s85_s17, 32 }
  0x30   :  { %p6345_p5 = scmp.ne.s32.totalorder %s85_s17, %s6344_s3  ;;  %p6349_p6 = scmp.lt.s32.totalorder %s85_s17, %s85_s17 }
  0x31   :  { %p6350_p7 = scmp.lt.s32.totalorder %s6348_s12, %s6344_s3 }
  0x33   :  { %p6351_p8 = por %p6350_p7, %p6349_p6 }
  0x35   :  { %p6352_p9 = pnand %p6351_p8, %p6345_p5 }
  0x37   :  { %6355 = shalt.err (!%p6352_p9)
}
  0x38   :  { %87 = dma.hbm_to_vmem [thread:$0]  %s6870_s6, 16, %s85_s17, [#allocation12]  }
  0x39   :  { %s6356_s1 = scalar_lea.hbm %s6864_s0, 1024 }
  0x3a   :  { %p6357_p10 = scmp.ne.s32.totalorder %s6864_s0, %s6356_s1  ;;  %p6360_p11 = scmp.lt.u32.totalorder %s6356_s1, %s6864_s0 }
  0x3c   :  { %p6362_p12 = pnand %p6360_p11, %p6357_p10 }
  0x3e   :  { %6365 = shalt.err (!%p6362_p12)
}
  0x3f   :  { %s6366_s18 = scalar_lea.vmem %s6601_s19, 1024  ;;  %p6371_p0 = scmp.lt.s32.totalorder %s6601_s19, %s6601_s19 }
  0x40   :  { %p6367_p13 = scmp.ne.s32.totalorder %s6601_s19, %s6366_s18  ;;  %p6372_p1 = scmp.lt.s32.totalorder %s6366_s18, %s6366_s18 }
  0x42   :  { %p6373_p2 = por %p6372_p1, %p6371_p0 }
  0x44   :  { %p6374_p3 = pnand %p6373_p2, %p6367_p13 }
  0x46   :  { %6377 = shalt.err (!%p6374_p3)
}
  0x47   :  { %31 = dma.hbm_to_vmem [thread:$0]  %s6864_s0, 1024, %s6601_s19, [#allocation3], %s6502_s21, %s6502_s21, %s6503_s22  }
  0x48   :  { %s6508_s20 = smov [#allocation7]   ;;  %s6509_s24 = smov [#allocation10]  }
  0x49   :  { %s50_s23 = sshll.u32 %s6508_s20, 4  ;;  %s72_s25 = sshll.u32 %s6509_s24, 4  ;;  %s51_s23 = int_to_ptr.vmem [resolvable:$true] %s50_s23  ;;  %s73_s25 = int_to_ptr.vmem [resolvable:$true] %s72_s25 }
  0x4a   :  { %s6378_s28 = scalar_lea.hbm %s6866_s2, 128 }
  0x4b   :  { %p6379_p4 = scmp.ne.s32.totalorder %s6866_s2, %s6378_s28  ;;  %p6382_p5 = scmp.lt.u32.totalorder %s6378_s28, %s6866_s2 }
  0x4d   :  { %p6384_p6 = pnand %p6382_p5, %p6379_p4 }
  0x4f   :  { %6387 = shalt.err (!%p6384_p6)
}
  0x50   :  { %s6388_s0 = scalar_lea.vmem %s51_s23, 128  ;;  %p6393_p8 = scmp.lt.s32.totalorder %s51_s23, %s51_s23 }
  0x51   :  { %p6389_p7 = scmp.ne.s32.totalorder %s51_s23, %s6388_s0  ;;  %p6394_p9 = scmp.lt.s32.totalorder %s6388_s0, %s6388_s0 }
  0x53   :  { %p6395_p10 = por %p6394_p9, %p6393_p8 }
  0x55   :  { %p6396_p11 = pnand %p6395_p10, %p6389_p7 }
  0x57   :  { %6399 = shalt.err (!%p6396_p11)
}
  0x58   :  { %53 = dma.hbm_to_vmem [thread:$0]  %s6866_s2, 128, %s51_s23, [#allocation6]  }
  0x59   :  { %s6400_s13 = scalar_lea.hbm %s6868_s4, 32 }
  0x5a   :  { %p6401_p12 = scmp.ne.s32.totalorder %s6868_s4, %s6400_s13  ;;  %p6404_p13 = scmp.lt.u32.totalorder %s6400_s13, %s6868_s4 }
  0x5c   :  { %p6406_p0 = pnand %p6404_p13, %p6401_p12 }
  0x5e   :  { %6409 = shalt.err (!%p6406_p0)
}
  0x5f   :  { %s6410_s16 = scalar_lea.vmem %s73_s25, 32  ;;  %p6415_p2 = scmp.lt.s32.totalorder %s73_s25, %s73_s25 }
  0x60   :  { %p6411_p1 = scmp.ne.s32.totalorder %s73_s25, %s6410_s16  ;;  %p6416_p3 = scmp.lt.s32.totalorder %s6410_s16, %s6410_s16 }
  0x62   :  { %p6417_p4 = por %p6416_p3, %p6415_p2 }
  0x64   :  { %p6418_p5 = pnand %p6417_p4, %p6411_p1 }
  0x66   :  { %6421 = shalt.err (!%p6418_p5)
}
  0x67   :  { %75 = dma.hbm_to_vmem [thread:$0]  %s6868_s4, 32, %s73_s25, [#allocation9]  }
  0x68   :  { %s6510_s6 = smov [#allocation13]   ;;  %s6422_s24 = scalar_lea.hbm %s6871_s7, 512 }
  0x69   :  { %s93_s17 = sshll.u32 %s6510_s6, 4  ;;  %p6423_p6 = scmp.ne.s32.totalorder %s6871_s7, %s6422_s24  ;;  %s94_s17 = int_to_ptr.vmem [resolvable:$true] %s93_s17 }
  0x6a   :  { %p6426_p7 = scmp.lt.u32.totalorder %s6422_s24, %s6871_s7 }
  0x6c   :  { %p6428_p8 = pnand %p6426_p7, %p6423_p6 }
  0x6e   :  { %6431 = shalt.err (!%p6428_p8)
}
  0x6f   :  { %s6432_s12 = scalar_lea.vmem %s94_s17, 512  ;;  %p6437_p10 = scmp.lt.s32.totalorder %s94_s17, %s94_s17 }
  0x70   :  { %p6433_p9 = scmp.ne.s32.totalorder %s94_s17, %s6432_s12  ;;  %p6438_p11 = scmp.lt.s32.totalorder %s6432_s12, %s6432_s12 }
  0x72   :  { %p6439_p12 = por %p6438_p11, %p6437_p10 }
  0x74   :  { %p6440_p13 = pnand %p6439_p12, %p6433_p9 }
  0x76   :  { %6443 = shalt.err (!%p6440_p13)
}
  0x77   :  { %s6511_s4 = smov 64   ;;  %s6512_s25 = smov 4  }
  0x78   :  { %99 = dma.hbm_to_vmem [thread:$0]  %s6871_s7, 512, %s94_s17, [#allocation12], %s6511_s4, %s6511_s4, %s6512_s25  }
  0x79   :  { %s6513_s0 = smov [#allocation14]   ;;  %s6444_s11 = scalar_lea.hbm %s6872_s8, 16 }
  0x7a   :  { %s106_s21 = sshll.u32 %s6513_s0, 4  ;;  %p6445_p0 = scmp.ne.s32.totalorder %s6872_s8, %s6444_s11  ;;  %s107_s21 = int_to_ptr.vmem [resolvable:$true] %s106_s21 }
  0x7b   :  { %p6448_p1 = scmp.lt.u32.totalorder %s6444_s11, %s6872_s8 }
  0x7d   :  { %p6450_p2 = pnand %p6448_p1, %p6445_p0 }
  0x7f   :  { %6453 = shalt.err (!%p6450_p2)
}
  0x80   :  { %s6454_s15 = scalar_lea.vmem %s107_s21, 16  ;;  %s6458_s7 = scalar_lea.vmem %s107_s21, 32 }
  0x81   :  { %p6455_p3 = scmp.ne.s32.totalorder %s107_s21, %s6454_s15  ;;  %p6459_p4 = scmp.lt.s32.totalorder %s107_s21, %s107_s21 }
  0x82   :  { %p6460_p5 = scmp.lt.s32.totalorder %s6458_s7, %s6454_s15 }
  0x84   :  { %p6461_p6 = por %p6460_p5, %p6459_p4 }
  0x86   :  { %p6462_p7 = pnand %p6461_p6, %p6455_p3 }
  0x88   :  { %6465 = shalt.err (!%p6462_p7)
}
  0x89   :  { %109 = dma.hbm_to_vmem [thread:$0]  %s6872_s8, 16, %s107_s21, [#allocation15]  }
  0x8a   :  { %6488 = dma.done.wait [#allocation3], 1024  }
  0x8b   :  { %6489 = vsyncadd [#allocation3], 4294966272 }
  0x8c   :  { %6490 = dma.done.wait [#allocation6], 65664  }
  0x8d   :  { %6491 = vsyncadd [#allocation6], 4294901632 }
  0x8e   :  { %6492 = dma.done.wait [#allocation9], 16416  }
  0x8f   :  { %6493 = vsyncadd [#allocation9], 4294950880 }
  0x90   :  { %6494 = dma.done.wait [#allocation12], 528  }
  0x91   :  { %6495 = vsyncadd [#allocation12], 4294966768 }
  0x92   :  { %6496 = dma.done.wait [#allocation15], 16  }
  0x93   :  { %6497 = vsyncadd [#allocation15], 4294967280  ;;  %v143_v0 = vld [vmem:[#allocation5] sm:$0xff]  ;;  %v6694_v59 = vld [vmem:[#allocation2 + $0x10] sm:$0xff]  ;;  %vm6515_vm0 = vmmov 0   ;;  %vm5185_vm1 = vcmask 523264  }
  0x94   :  { %v147_v1 = vld [vmem:[#allocation5 + $0x20] sm:$0xff]  ;;  %v6696_v62 = vld [vmem:[#allocation2 + $0x30] sm:$0xff] }
  0x95   :  { %v399_v2 = vld [vmem:[#allocation5 + $0x800] sm:$0xff]  ;;  %v5270_v3 = vcombine.high %v143_v0, %v147_v1  ;;  %v5269_v5 = vcombine.low %v143_v0, %v147_v1  ;;  %v6701_v0 = vcombine.high %v6694_v59, %v6696_v62 }
  0x96   :  { %v403_v4 = vld [vmem:[#allocation5 + $0x820] sm:$0xff] }
  0x97   :  { %v151_v6 = vld [vmem:[#allocation5 + $0x40] sm:$0xff]  ;;  %v5526_v8 = vcombine.high %v399_v2, %v403_v4  ;;  %v5525_v9 = vcombine.low %v399_v2, %v403_v4  ;;  %3297 = vmatprep.subr.bf16.mxu1 %v5270_v3  ;;  %3415 = vmatprep.mubr.bf16.mxu0 %v6701_v0 }
  0x98   :  { %v155_v7 = vld [vmem:[#allocation5 + $0x60] sm:$0xff]  ;;  %3298 = vmatpush1.bf16.msra.mxu1 %v5269_v5 }
  0x99   :  { %v5278_v10 = vcombine.high %v151_v6, %v155_v7  ;;  %v407_v11 = vld [vmem:[#allocation5 + $0x840] sm:$0xff]  ;;  %3383 = vmatprep.subr.bf16.mxu0 %v5526_v8  ;;  %v5277_v18 = vcombine.low %v151_v6, %v155_v7 }
  0x9a   :  { %v411_v12 = vld [vmem:[#allocation5 + $0x860] sm:$0xff]  ;;  %3384 = vmatpush1.bf16.msra.mxu0 %v5525_v9 }
  0x9b   :  { %v159_v13 = vld [vmem:[#allocation5 + $0x80] sm:$0xff]  ;;  %v5534_v14 = vcombine.high %v407_v11, %v411_v12  ;;  %3299 = vmatprep.subr.bf16.mxu1 %v5278_v10  ;;  %v5533_v19 = vcombine.low %v407_v11, %v411_v12 }
  0x9c   :  { %v163_v15 = vld [vmem:[#allocation5 + $0xa0] sm:$0xff]  ;;  %3300 = vmatpush1.bf16.msra.mxu1 %v5277_v18 }
  0x9d   :  { %v415_v16 = vld [vmem:[#allocation5 + $0x880] sm:$0xff]  ;;  %v5286_v20 = vcombine.high %v159_v13, %v163_v15  ;;  %3385 = vmatprep.subr.bf16.mxu0 %v5534_v14  ;;  %v5285_v26 = vcombine.low %v159_v13, %v163_v15 }
  0x9e   :  { %v419_v17 = vld [vmem:[#allocation5 + $0x8a0] sm:$0xff]  ;;  %3386 = vmatpush1.bf16.msra.mxu0 %v5533_v19 }
  0x9f   :  { %v5542_v21 = vcombine.high %v415_v16, %v419_v17  ;;  %v167_v22 = vld [vmem:[#allocation5 + $0xc0] sm:$0xff]  ;;  %3301 = vmatprep.subr.bf16.mxu1 %v5286_v20  ;;  %v5541_v27 = vcombine.low %v415_v16, %v419_v17 }
  0xa0   :  { %v171_v23 = vld [vmem:[#allocation5 + $0xe0] sm:$0xff]  ;;  %3302 = vmatpush1.bf16.msra.mxu1 %v5285_v26 }
  0xa1   :  { %v423_v24 = vld [vmem:[#allocation5 + $0x8c0] sm:$0xff]  ;;  %v5294_v28 = vcombine.high %v167_v22, %v171_v23  ;;  %3387 = vmatprep.subr.bf16.mxu0 %v5542_v21  ;;  %v5293_v34 = vcombine.low %v167_v22, %v171_v23 }
  0xa2   :  { %v427_v25 = vld [vmem:[#allocation5 + $0x8e0] sm:$0xff]  ;;  %3388 = vmatpush1.bf16.msra.mxu0 %v5541_v27 }
  0xa3   :  { %v5550_v29 = vcombine.high %v423_v24, %v427_v25  ;;  %v175_v30 = vld [vmem:[#allocation5 + $0x100] sm:$0xff]  ;;  %3303 = vmatprep.subr.bf16.mxu1 %v5294_v28  ;;  %v5549_v35 = vcombine.low %v423_v24, %v427_v25 }
  0xa4   :  { %v179_v31 = vld [vmem:[#allocation5 + $0x120] sm:$0xff]  ;;  %3304 = vmatpush1.bf16.msra.mxu1 %v5293_v34 }
  0xa5   :  { %v431_v32 = vld [vmem:[#allocation5 + $0x900] sm:$0xff]  ;;  %v5302_v36 = vcombine.high %v175_v30, %v179_v31  ;;  %3389 = vmatprep.subr.bf16.mxu0 %v5550_v29  ;;  %v5301_v42 = vcombine.low %v175_v30, %v179_v31 }
  0xa6   :  { %v435_v33 = vld [vmem:[#allocation5 + $0x920] sm:$0xff]  ;;  %3390 = vmatpush1.bf16.msra.mxu0 %v5549_v35 }
  0xa7   :  { %v5558_v37 = vcombine.high %v431_v32, %v435_v33  ;;  %v183_v38 = vld [vmem:[#allocation5 + $0x140] sm:$0xff]  ;;  %3305 = vmatprep.subr.bf16.mxu1 %v5302_v36  ;;  %v5557_v43 = vcombine.low %v431_v32, %v435_v33 }
  0xa8   :  { %v187_v39 = vld [vmem:[#allocation5 + $0x160] sm:$0xff]  ;;  %3306 = vmatpush1.bf16.msra.mxu1 %v5301_v42 }
  0xa9   :  { %v439_v40 = vld [vmem:[#allocation5 + $0x940] sm:$0xff]  ;;  %v5310_v44 = vcombine.high %v183_v38, %v187_v39  ;;  %3391 = vmatprep.subr.bf16.mxu0 %v5558_v37  ;;  %v5309_v50 = vcombine.low %v183_v38, %v187_v39 }
  0xaa   :  { %v443_v41 = vld [vmem:[#allocation5 + $0x960] sm:$0xff]  ;;  %3392 = vmatpush1.bf16.msra.mxu0 %v5557_v43 }
  0xab   :  { %v5566_v45 = vcombine.high %v439_v40, %v443_v41  ;;  %v191_v46 = vld [vmem:[#allocation5 + $0x180] sm:$0xff]  ;;  %3307 = vmatprep.subr.bf16.mxu1 %v5310_v44  ;;  %v5565_v51 = vcombine.low %v439_v40, %v443_v41 }
  0xac   :  { %v195_v47 = vld [vmem:[#allocation5 + $0x1a0] sm:$0xff]  ;;  %3308 = vmatpush1.bf16.msra.mxu1 %v5309_v50 }
  0xad   :  { %v447_v48 = vld [vmem:[#allocation5 + $0x980] sm:$0xff]  ;;  %v5318_v52 = vcombine.high %v191_v46, %v195_v47  ;;  %3393 = vmatprep.subr.bf16.mxu0 %v5566_v45  ;;  %v5317_v63 = vcombine.low %v191_v46, %v195_v47 }
  0xae   :  { %v451_v49 = vld [vmem:[#allocation5 + $0x9a0] sm:$0xff]  ;;  %3394 = vmatpush1.bf16.msra.mxu0 %v5565_v51 }
  0xaf   :  { %v6686_v53 = vld [vmem:[#allocation2] sm:$0xff]  ;;  %v5574_v55 = vcombine.high %v447_v48, %v451_v49  ;;  %3309 = vmatprep.subr.bf16.mxu1 %v5318_v52  ;;  %v5573_v1 = vcombine.low %v447_v48, %v451_v49 }
  0xb0   :  { %v6688_v54 = vld [vmem:[#allocation2 + $0x20] sm:$0xff]  ;;  %3310 = vmatpush1.bf16.msra.mxu1 %v5317_v63 }
  0xb1   :  { %v199_v56 = vld [vmem:[#allocation5 + $0x1c0] sm:$0xff]  ;;  %v6692_v58 = vcombine.high %v6686_v53, %v6688_v54  ;;  %3395 = vmatprep.subr.bf16.mxu0 %v5574_v55 }
  0xb2   :  { %v203_v57 = vld [vmem:[#allocation5 + $0x1e0] sm:$0xff]  ;;  %3396 = vmatpush1.bf16.msra.mxu0 %v5573_v1 }
  0xb3   :  { %v455_v60 = vld [vmem:[#allocation5 + $0x9c0] sm:$0xff]  ;;  %3329 = vmatprep.mubr.bf16.mxu1 %v6692_v58  ;;  %v5326_v2 = vcombine.high %v199_v56, %v203_v57  ;;  %v5325_v8 = vcombine.low %v199_v56, %v203_v57 }
  0xb4   :  { %v459_v61 = vld [vmem:[#allocation5 + $0x9e0] sm:$0xff] }
  0xb5   :  { %v5582_v3 = vcombine.high %v455_v60, %v459_v61  ;;  %v207_v4 = vld [vmem:[#allocation5 + $0x200] sm:$0xff]  ;;  %3311 = vmatprep.subr.bf16.mxu1 %v5326_v2  ;;  %v5581_v9 = vcombine.low %v455_v60, %v459_v61 }
  0xb6   :  { %v211_v5 = vld [vmem:[#allocation5 + $0x220] sm:$0xff]  ;;  %3312 = vmatpush1.bf16.msra.mxu1 %v5325_v8 }
  0xb7   :  { %v463_v6 = vld [vmem:[#allocation5 + $0xa00] sm:$0xff]  ;;  %v5334_v10 = vcombine.high %v207_v4, %v211_v5  ;;  %3397 = vmatprep.subr.bf16.mxu0 %v5582_v3  ;;  %v5333_v16 = vcombine.low %v207_v4, %v211_v5 }
  0xb8   :  { %v467_v7 = vld [vmem:[#allocation5 + $0xa20] sm:$0xff]  ;;  %3398 = vmatpush1.bf16.msra.mxu0 %v5581_v9 }
  0xb9   :  { %v5590_v11 = vcombine.high %v463_v6, %v467_v7  ;;  %v215_v12 = vld [vmem:[#allocation5 + $0x240] sm:$0xff]  ;;  %3313 = vmatprep.subr.bf16.mxu1 %v5334_v10  ;;  %v5589_v17 = vcombine.low %v463_v6, %v467_v7 }
  0xba   :  { %v219_v13 = vld [vmem:[#allocation5 + $0x260] sm:$0xff]  ;;  %3314 = vmatpush1.bf16.msra.mxu1 %v5333_v16 }
  0xbb   :  { %v471_v14 = vld [vmem:[#allocation5 + $0xa40] sm:$0xff]  ;;  %v5342_v18 = vcombine.high %v215_v12, %v219_v13  ;;  %3399 = vmatprep.subr.bf16.mxu0 %v5590_v11  ;;  %v5341_v24 = vcombine.low %v215_v12, %v219_v13 }
  0xbc   :  { %v475_v15 = vld [vmem:[#allocation5 + $0xa60] sm:$0xff]  ;;  %3400 = vmatpush1.bf16.msra.mxu0 %v5589_v17 }
  0xbd   :  { %v5598_v19 = vcombine.high %v471_v14, %v475_v15  ;;  %v223_v20 = vld [vmem:[#allocation5 + $0x280] sm:$0xff]  ;;  %3315 = vmatprep.subr.bf16.mxu1 %v5342_v18  ;;  %v5597_v25 = vcombine.low %v471_v14, %v475_v15 }
  0xbe   :  { %v227_v21 = vld [vmem:[#allocation5 + $0x2a0] sm:$0xff]  ;;  %3316 = vmatpush1.bf16.msra.mxu1 %v5341_v24  ;;  %v6710_v24 = vld [vmem:[#allocation2 + $0x28] sm:$0xff] }
  0xbf   :  { %v479_v22 = vld [vmem:[#allocation5 + $0xa80] sm:$0xff]  ;;  %v5350_v26 = vcombine.high %v223_v20, %v227_v21  ;;  %3401 = vmatprep.subr.bf16.mxu0 %v5598_v19  ;;  %v5349_v32 = vcombine.low %v223_v20, %v227_v21  ;;  %v6706_v21 = vcombine.low %v6686_v53, %v6688_v54 }
  0xc0   :  { %v483_v23 = vld [vmem:[#allocation5 + $0xaa0] sm:$0xff]  ;;  %3402 = vmatpush1.bf16.msra.mxu0 %v5597_v25 }
  0xc1   :  { %v5606_v27 = vcombine.high %v479_v22, %v483_v23  ;;  %v231_v28 = vld [vmem:[#allocation5 + $0x2c0] sm:$0xff]  ;;  %3317 = vmatprep.subr.bf16.mxu1 %v5350_v26  ;;  %v5605_v33 = vcombine.low %v479_v22, %v483_v23  ;;  %v6708_v23 = vld [vmem:[#allocation2 + $0x8] sm:$0xff]  ;;  %v6714_v26 = vcombine.low %v6694_v59, %v6696_v62 }
  0xc2   :  { %v235_v29 = vld [vmem:[#allocation5 + $0x2e0] sm:$0xff]  ;;  %3318 = vmatpush1.bf16.msra.mxu1 %v5349_v32  ;;  %v6722_v32 = vcombine.high %v6708_v23, %v6710_v24 }
  0xc3   :  { %v487_v30 = vld [vmem:[#allocation5 + $0xac0] sm:$0xff]  ;;  %v5358_v34 = vcombine.high %v231_v28, %v235_v29  ;;  %3403 = vmatprep.subr.bf16.mxu0 %v5606_v27  ;;  %v5357_v40 = vcombine.low %v231_v28, %v235_v29  ;;  %v6716_v27 = vld [vmem:[#allocation2 + $0x18] sm:$0xff] }
  0xc4   :  { %v491_v31 = vld [vmem:[#allocation5 + $0xae0] sm:$0xff]  ;;  %3404 = vmatpush1.bf16.msra.mxu0 %v5605_v33  ;;  %v6718_v28 = vld [vmem:[#allocation2 + $0x38] sm:$0xff] }
  0xc5   :  { %v5614_v35 = vcombine.high %v487_v30, %v491_v31  ;;  %v239_v36 = vld [vmem:[#allocation5 + $0x300] sm:$0xff]  ;;  %3319 = vmatprep.subr.bf16.mxu1 %v5358_v34  ;;  %v5613_v41 = vcombine.low %v487_v30, %v491_v31  ;;  %v6727_v33 = vcombine.high %v6716_v27, %v6718_v28 }
  0xc6   :  { %v243_v37 = vld [vmem:[#allocation5 + $0x320] sm:$0xff]  ;;  %3320 = vmatpush1.bf16.msra.mxu1 %v5357_v40 }
  0xc7   :  { %v495_v38 = vld [vmem:[#allocation5 + $0xb00] sm:$0xff]  ;;  %v5366_v42 = vcombine.high %v239_v36, %v243_v37  ;;  %3405 = vmatprep.subr.bf16.mxu0 %v5614_v35  ;;  %v5365_v48 = vcombine.low %v239_v36, %v243_v37 }
  0xc8   :  { %v499_v39 = vld [vmem:[#allocation5 + $0xb20] sm:$0xff]  ;;  %3406 = vmatpush1.bf16.msra.mxu0 %v5613_v41 }
  0xc9   :  { %v5622_v43 = vcombine.high %v495_v38, %v499_v39  ;;  %v247_v44 = vld [vmem:[#allocation5 + $0x340] sm:$0xff]  ;;  %3321 = vmatprep.subr.bf16.mxu1 %v5366_v42  ;;  %v5621_v49 = vcombine.low %v495_v38, %v499_v39 }
  0xca   :  { %v251_v45 = vld [vmem:[#allocation5 + $0x360] sm:$0xff]  ;;  %3322 = vmatpush1.bf16.msra.mxu1 %v5365_v48 }
  0xcb   :  { %v503_v46 = vld [vmem:[#allocation5 + $0xb40] sm:$0xff]  ;;  %v5374_v50 = vcombine.high %v247_v44, %v251_v45  ;;  %3407 = vmatprep.subr.bf16.mxu0 %v5622_v43  ;;  %v5373_v60 = vcombine.low %v247_v44, %v251_v45 }
  0xcc   :  { %v507_v47 = vld [vmem:[#allocation5 + $0xb60] sm:$0xff]  ;;  %3408 = vmatpush1.bf16.msra.mxu0 %v5621_v49 }
  0xcd   :  { %v5630_v51 = vcombine.high %v503_v46, %v507_v47  ;;  %v255_v52 = vld [vmem:[#allocation5 + $0x380] sm:$0xff]  ;;  %3323 = vmatprep.subr.bf16.mxu1 %v5374_v50  ;;  %v5629_v61 = vcombine.low %v503_v46, %v507_v47 }
  0xce   :  { %v259_v55 = vld [vmem:[#allocation5 + $0x3a0] sm:$0xff]  ;;  %3324 = vmatpush1.bf16.msra.mxu1 %v5373_v60 }
  0xcf   :  { %v511_v56 = vld [vmem:[#allocation5 + $0xb80] sm:$0xff]  ;;  %v5382_v63 = vcombine.high %v255_v52, %v259_v55  ;;  %3409 = vmatprep.subr.bf16.mxu0 %v5630_v51  ;;  %v5381_v6 = vcombine.low %v255_v52, %v259_v55 }
  0xd0   :  { %v515_v57 = vld [vmem:[#allocation5 + $0xba0] sm:$0xff]  ;;  %3410 = vmatpush1.bf16.msra.mxu0 %v5629_v61 }
  0xd1   :  { %v5638_v1 = vcombine.high %v511_v56, %v515_v57  ;;  %v263_v2 = vld [vmem:[#allocation5 + $0x3c0] sm:$0xff]  ;;  %3325 = vmatprep.subr.bf16.mxu1 %v5382_v63  ;;  %v5637_v7 = vcombine.low %v511_v56, %v515_v57 }
  0xd2   :  { %v267_v3 = vld [vmem:[#allocation5 + $0x3e0] sm:$0xff]  ;;  %3326 = vmatpush1.bf16.msra.mxu1 %v5381_v6 }
  0xd3   :  { %v519_v4 = vld [vmem:[#allocation5 + $0xbc0] sm:$0xff]  ;;  %v5390_v8 = vcombine.high %v263_v2, %v267_v3  ;;  %3411 = vmatprep.subr.bf16.mxu0 %v5638_v1  ;;  %v5389_v14 = vcombine.low %v263_v2, %v267_v3 }
  0xd4   :  { %v523_v5 = vld [vmem:[#allocation5 + $0xbe0] sm:$0xff]  ;;  %3412 = vmatpush1.bf16.msra.mxu0 %v5637_v7 }
  0xd5   :  { %v5646_v9 = vcombine.high %v519_v4, %v523_v5  ;;  %v271_v10 = vld [vmem:[#allocation5 + $0x400] sm:$0xff]  ;;  %3327 = vmatprep.subr.bf16.mxu1 %v5390_v8  ;;  %v5645_v15 = vcombine.low %v519_v4, %v523_v5 }
  0xd6   :  { %v275_v11 = vld [vmem:[#allocation5 + $0x420] sm:$0xff]  ;;  %3328 = vmatpush1.bf16.msra.mxu1 %v5389_v14 }
  0xd7   :  { %v527_v12 = vld [vmem:[#allocation5 + $0xc00] sm:$0xff]  ;;  %v5398_v16 = vcombine.high %v271_v10, %v275_v11  ;;  %3413 = vmatprep.subr.bf16.mxu0 %v5646_v9  ;;  %v5397_v25 = vcombine.low %v271_v10, %v275_v11 }
  0xd8   :  { %v531_v13 = vld [vmem:[#allocation5 + $0xc20] sm:$0xff]  ;;  %3414 = vmatpush1.bf16.msra.mxu0 %v5645_v15 }
  0xd9   :  { %v5654_v17 = vcombine.high %v527_v12, %v531_v13  ;;  %v279_v18 = vld [vmem:[#allocation5 + $0x440] sm:$0xff]  ;;  %3340 = vmatprep.subr.bf16.mxu1 %v5398_v16  ;;  %v5653_v29 = vcombine.low %v527_v12, %v531_v13  ;;  %3330 = vmatmul.mubr.bf16.vlgmr.msra.gmra.mrb[0].mxu1 %v6706_v21 }
  0xda   :  { %v283_v19 = vld [vmem:[#allocation5 + $0x460] sm:$0xff]  ;;  %3341 = vmatpush1.bf16.msra.mxu1 %v5397_v25  ;;  %3372 = vmatprep.mubr.bf16.mxu1 %v6722_v32 }
  0xdb   :  { %v535_v20 = vld [vmem:[#allocation5 + $0xc40] sm:$0xff]  ;;  %v5406_v53 = vcombine.high %v279_v18, %v283_v19  ;;  %3426 = vmatprep.subr.bf16.mxu0 %v5654_v17  ;;  %3416 = vmatmul.mubr.bf16.vlgmr.msra.gmra.mrb[0].mxu0 %v6714_v26  ;;  %v5405_v34 = vcombine.low %v279_v18, %v283_v19 }
  0xdc   :  { %v539_v22 = vld [vmem:[#allocation5 + $0xc60] sm:$0xff]  ;;  %3427 = vmatpush1.bf16.msra.mxu0 %v5653_v29  ;;  %3458 = vmatprep.mubr.bf16.mxu0 %v6727_v33 }
  0xdd   :  { %v5662_v54 = vcombine.high %v535_v20, %v539_v22  ;;  %v287_v30 = vld [vmem:[#allocation5 + $0x480] sm:$0xff]  ;;  %3342 = vmatprep.subr.bf16.mxu1 %v5406_v53  ;;  %v5661_v35 = vcombine.low %v535_v20, %v539_v22 }
  0xde   :  { %v291_v31 = vld [vmem:[#allocation5 + $0x4a0] sm:$0xff]  ;;  %3343 = vmatpush1.bf16.msra.mxu1 %v5405_v34 }
  0xdf   :  { %v543_v59 = vld [vmem:[#allocation5 + $0xc80] sm:$0xff]  ;;  %v5414_v36 = vcombine.high %v287_v30, %v291_v31  ;;  %3428 = vmatprep.subr.bf16.mxu0 %v5662_v54  ;;  %v5413_v42 = vcombine.low %v287_v30, %v291_v31 }
  0xe0   :  { %v547_v62 = vld [vmem:[#allocation5 + $0xca0] sm:$0xff]  ;;  %3429 = vmatpush1.bf16.msra.mxu0 %v5661_v35 }
  0xe1   :  { %v295_v37 = vld [vmem:[#allocation5 + $0x4c0] sm:$0xff]  ;;  %v5670_v40 = vcombine.high %v543_v59, %v547_v62  ;;  %3344 = vmatprep.subr.bf16.mxu1 %v5414_v36  ;;  %v5669_v43 = vcombine.low %v543_v59, %v547_v62 }
  0xe2   :  { %v299_v38 = vld [vmem:[#allocation5 + $0x4e0] sm:$0xff]  ;;  %3345 = vmatpush1.bf16.msra.mxu1 %v5413_v42 }
  0xe3   :  { %v551_v39 = vld [vmem:[#allocation5 + $0xcc0] sm:$0xff]  ;;  %v5422_v44 = vcombine.high %v295_v37, %v299_v38  ;;  %3430 = vmatprep.subr.bf16.mxu0 %v5670_v40  ;;  %v5421_v50 = vcombine.low %v295_v37, %v299_v38 }
  0xe4   :  { %v555_v41 = vld [vmem:[#allocation5 + $0xce0] sm:$0xff]  ;;  %3431 = vmatpush1.bf16.msra.mxu0 %v5669_v43 }
  0xe5   :  { %v303_v45 = vld [vmem:[#allocation5 + $0x500] sm:$0xff]  ;;  %v5678_v48 = vcombine.high %v551_v39, %v555_v41  ;;  %3346 = vmatprep.subr.bf16.mxu1 %v5422_v44  ;;  %v5677_v51 = vcombine.low %v551_v39, %v555_v41 }
  0xe6   :  { %v307_v46 = vld [vmem:[#allocation5 + $0x520] sm:$0xff]  ;;  %3347 = vmatpush1.bf16.msra.mxu1 %v5421_v50 }
  0xe7   :  { %v559_v47 = vld [vmem:[#allocation5 + $0xd00] sm:$0xff]  ;;  %v5430_v52 = vcombine.high %v303_v45, %v307_v46  ;;  %3432 = vmatprep.subr.bf16.mxu0 %v5678_v48  ;;  %v5429_v63 = vcombine.low %v303_v45, %v307_v46 }
  0xe8   :  { %v563_v49 = vld [vmem:[#allocation5 + $0xd20] sm:$0xff]  ;;  %3433 = vmatpush1.bf16.msra.mxu0 %v5677_v51 }
  0xe9   :  { %v311_v55 = vld [vmem:[#allocation5 + $0x540] sm:$0xff]  ;;  %v5686_v60 = vcombine.high %v559_v47, %v563_v49  ;;  %3348 = vmatprep.subr.bf16.mxu1 %v5430_v52  ;;  %v5685_v1 = vcombine.low %v559_v47, %v563_v49 }
  0xea   :  { %v315_v56 = vld [vmem:[#allocation5 + $0x560] sm:$0xff]  ;;  %3349 = vmatpush1.bf16.msra.mxu1 %v5429_v63 }
  0xeb   :  { %v567_v57 = vld [vmem:[#allocation5 + $0xd40] sm:$0xff]  ;;  %v5438_v2 = vcombine.high %v311_v55, %v315_v56  ;;  %3434 = vmatprep.subr.bf16.mxu0 %v5686_v60  ;;  %v5437_v8 = vcombine.low %v311_v55, %v315_v56 }
  0xec   :  { %v571_v61 = vld [vmem:[#allocation5 + $0xd60] sm:$0xff]  ;;  %3435 = vmatpush1.bf16.msra.mxu0 %v5685_v1 }
  0xed   :  { %v319_v3 = vld [vmem:[#allocation5 + $0x580] sm:$0xff]  ;;  %v5694_v6 = vcombine.high %v567_v57, %v571_v61  ;;  %3350 = vmatprep.subr.bf16.mxu1 %v5438_v2  ;;  %v5693_v9 = vcombine.low %v567_v57, %v571_v61 }
  0xee   :  { %v323_v4 = vld [vmem:[#allocation5 + $0x5a0] sm:$0xff]  ;;  %3351 = vmatpush1.bf16.msra.mxu1 %v5437_v8 }
  0xef   :  { %v575_v5 = vld [vmem:[#allocation5 + $0xd80] sm:$0xff]  ;;  %v5446_v10 = vcombine.high %v319_v3, %v323_v4  ;;  %3436 = vmatprep.subr.bf16.mxu0 %v5694_v6  ;;  %v5445_v16 = vcombine.low %v319_v3, %v323_v4 }
  0xf0   :  { %v579_v7 = vld [vmem:[#allocation5 + $0xda0] sm:$0xff]  ;;  %3437 = vmatpush1.bf16.msra.mxu0 %v5693_v9 }
  0xf1   :  { %v327_v11 = vld [vmem:[#allocation5 + $0x5c0] sm:$0xff]  ;;  %v5702_v14 = vcombine.high %v575_v5, %v579_v7  ;;  %3352 = vmatprep.subr.bf16.mxu1 %v5446_v10  ;;  %v5701_v17 = vcombine.low %v575_v5, %v579_v7 }
  0xf2   :  { %v331_v12 = vld [vmem:[#allocation5 + $0x5e0] sm:$0xff]  ;;  %3353 = vmatpush1.bf16.msra.mxu1 %v5445_v16 }
  0xf3   :  { %v583_v13 = vld [vmem:[#allocation5 + $0xdc0] sm:$0xff]  ;;  %v5454_v18 = vcombine.high %v327_v11, %v331_v12  ;;  %3438 = vmatprep.subr.bf16.mxu0 %v5702_v14  ;;  %v5453_v53 = vcombine.low %v327_v11, %v331_v12 }
  0xf4   :  { %v587_v15 = vld [vmem:[#allocation5 + $0xde0] sm:$0xff]  ;;  %3439 = vmatpush1.bf16.msra.mxu0 %v5701_v17 }
  0xf5   :  { %v335_v19 = vld [vmem:[#allocation5 + $0x600] sm:$0xff]  ;;  %v5710_v25 = vcombine.high %v583_v13, %v587_v15  ;;  %3354 = vmatprep.subr.bf16.mxu1 %v5454_v18  ;;  %v5709_v54 = vcombine.low %v583_v13, %v587_v15 }
  0xf6   :  { %v339_v20 = vld [vmem:[#allocation5 + $0x620] sm:$0xff]  ;;  %3355 = vmatpush1.bf16.msra.mxu1 %v5453_v53 }
  0xf7   :  { %v591_v22 = vld [vmem:[#allocation5 + $0xe00] sm:$0xff]  ;;  %v5462_v30 = vcombine.high %v335_v19, %v339_v20  ;;  %3440 = vmatprep.subr.bf16.mxu0 %v5710_v25  ;;  %v5461_v36 = vcombine.low %v335_v19, %v339_v20 }
  0xf8   :  { %v595_v29 = vld [vmem:[#allocation5 + $0xe20] sm:$0xff]  ;;  %3441 = vmatpush1.bf16.msra.mxu0 %v5709_v54 }
  0xf9   :  { %v343_v31 = vld [vmem:[#allocation5 + $0x640] sm:$0xff]  ;;  %v5718_v34 = vcombine.high %v591_v22, %v595_v29  ;;  %3356 = vmatprep.subr.bf16.mxu1 %v5462_v30  ;;  %v5717_v37 = vcombine.low %v591_v22, %v595_v29 }
  0xfa   :  { %v347_v59 = vld [vmem:[#allocation5 + $0x660] sm:$0xff]  ;;  %3357 = vmatpush1.bf16.msra.mxu1 %v5461_v36 }
  0xfb   :  { %v599_v62 = vld [vmem:[#allocation5 + $0xe40] sm:$0xff]  ;;  %v5470_v38 = vcombine.high %v343_v31, %v347_v59  ;;  %3442 = vmatprep.subr.bf16.mxu0 %v5718_v34  ;;  %v5469_v44 = vcombine.low %v343_v31, %v347_v59  ;;  %v148_v34 = vld [vmem:[#allocation5 + $0x28] sm:$0xff] }
  0xfc   :  { %v603_v35 = vld [vmem:[#allocation5 + $0xe60] sm:$0xff]  ;;  %3443 = vmatpush1.bf16.msra.mxu0 %v5717_v37  ;;  %v149_v37 = vld [vmem:[#allocation5 + $0x30] sm:$0xff] }
  0xfd   :  { %v351_v39 = vld [vmem:[#allocation5 + $0x680] sm:$0xff]  ;;  %v5726_v42 = vcombine.high %v599_v62, %v603_v35  ;;  %3358 = vmatprep.subr.bf16.mxu1 %v5470_v38  ;;  %v5725_v45 = vcombine.low %v599_v62, %v603_v35  ;;  %v144_v62 = vld [vmem:[#allocation5 + $0x8] sm:$0xff]  ;;  %v145_v35 = vld [vmem:[#allocation5 + $0x10] sm:$0xff] }
  0xfe   :  { %v355_v40 = vld [vmem:[#allocation5 + $0x6a0] sm:$0xff]  ;;  %3359 = vmatpush1.bf16.msra.mxu1 %v5469_v44  ;;  %v5274_v44 = vcombine.high %v145_v35, %v149_v37 }
  0xff   :  { %v607_v41 = vld [vmem:[#allocation5 + $0xe80] sm:$0xff]  ;;  %v5478_v46 = vcombine.high %v351_v39, %v355_v40  ;;  %3444 = vmatprep.subr.bf16.mxu0 %v5726_v42  ;;  %v5477_v52 = vcombine.low %v351_v39, %v355_v40  ;;  %v5272_v40 = vcombine.high %v144_v62, %v148_v34  ;;  %v156_v42 = vld [vmem:[#allocation5 + $0x68] sm:$0xff] }
 0x100   :  { %v611_v43 = vld [vmem:[#allocation5 + $0xea0] sm:$0xff]  ;;  %3445 = vmatpush1.bf16.msra.mxu0 %v5725_v45  ;;  %v157_v45 = vld [vmem:[#allocation5 + $0x70] sm:$0xff] }
 0x101   :  { %v359_v47 = vld [vmem:[#allocation5 + $0x6c0] sm:$0xff]  ;;  %v5734_v50 = vcombine.high %v607_v41, %v611_v43  ;;  %3360 = vmatprep.subr.bf16.mxu1 %v5478_v46  ;;  %v5733_v55 = vcombine.low %v607_v41, %v611_v43  ;;  %v152_v41 = vld [vmem:[#allocation5 + $0x48] sm:$0xff]  ;;  %v153_v43 = vld [vmem:[#allocation5 + $0x50] sm:$0xff]  ;;  %v6734_v46 = vcombine.low %v6708_v23, %v6710_v24 }
 0x102   :  { %v363_v48 = vld [vmem:[#allocation5 + $0x6e0] sm:$0xff]  ;;  %3361 = vmatpush1.bf16.msra.mxu1 %v5477_v52  ;;  %v164_v52 = vld [vmem:[#allocation5 + $0xa8] sm:$0xff]  ;;  %v5279_v23 = vcombine.low %v152_v41, %v156_v42  ;;  %v5281_v24 = vcombine.low %v153_v43, %v157_v45 }
 0x103   :  { %v615_v49 = vld [vmem:[#allocation5 + $0xec0] sm:$0xff]  ;;  %v5486_v56 = vcombine.high %v359_v47, %v363_v48  ;;  %3446 = vmatprep.subr.bf16.mxu0 %v5734_v50  ;;  %v5485_v2 = vcombine.low %v359_v47, %v363_v48  ;;  %v5271_v47 = vcombine.low %v144_v62, %v148_v34  ;;  %v6738_v48 = vcombine.low %v6716_v27, %v6718_v28  ;;  %v168_v28 = vld [vmem:[#allocation5 + $0xc8] sm:$0xff] }
 0x104   :  { %v619_v51 = vld [vmem:[#allocation5 + $0xee0] sm:$0xff]  ;;  %3447 = vmatpush1.bf16.msra.mxu0 %v5733_v55  ;;  %v5280_v50 = vcombine.high %v152_v41, %v156_v42  ;;  %v161_v55 = vld [vmem:[#allocation5 + $0x90] sm:$0xff]  ;;  %v200_v62 = vld [vmem:[#allocation5 + $0x1c8] sm:$0xff] }
 0x105   :  { %v367_v57 = vld [vmem:[#allocation5 + $0x700] sm:$0xff]  ;;  %v5742_v63 = vcombine.high %v615_v49, %v619_v51  ;;  %3362 = vmatprep.subr.bf16.mxu1 %v5486_v56  ;;  %v5741_v3 = vcombine.low %v615_v49, %v619_v51  ;;  %v5273_v49 = vcombine.low %v145_v35, %v149_v37  ;;  %v160_v51 = vld [vmem:[#allocation5 + $0x88] sm:$0xff]  ;;  %v5282_v56 = vcombine.high %v153_v43, %v157_v45  ;;  %v201_v35 = vld [vmem:[#allocation5 + $0x1d0] sm:$0xff] }
 0x106   :  { %v371_v60 = vld [vmem:[#allocation5 + $0x720] sm:$0xff]  ;;  %3363 = vmatpush1.bf16.msra.mxu1 %v5485_v2  ;;  %v5288_v27 = vcombine.high %v160_v51, %v164_v52  ;;  %v5287_v2 = vcombine.low %v160_v51, %v164_v52  ;;  %v204_v34 = vld [vmem:[#allocation5 + $0x1e8] sm:$0xff]  ;;  %v205_v37 = vld [vmem:[#allocation5 + $0x1f0] sm:$0xff] }
 0x107   :  { %v623_v61 = vld [vmem:[#allocation5 + $0xf00] sm:$0xff]  ;;  %v5494_v4 = vcombine.high %v367_v57, %v371_v60  ;;  %3448 = vmatprep.subr.bf16.mxu0 %v5742_v63  ;;  %v5493_v10 = vcombine.low %v367_v57, %v371_v60  ;;  %v165_v57 = vld [vmem:[#allocation5 + $0xb0] sm:$0xff]  ;;  %v172_v60 = vld [vmem:[#allocation5 + $0xe8] sm:$0xff]  ;;  %v5330_v41 = vcombine.high %v201_v35, %v205_v37 }
 0x108   :  { %v627_v1 = vld [vmem:[#allocation5 + $0xf20] sm:$0xff]  ;;  %3449 = vmatpush1.bf16.msra.mxu0 %v5741_v3  ;;  %v5290_v63 = vcombine.high %v161_v55, %v165_v57  ;;  %v5289_v3 = vcombine.low %v161_v55, %v165_v57  ;;  %v208_v42 = vld [vmem:[#allocation5 + $0x208] sm:$0xff]  ;;  %v213_v45 = vld [vmem:[#allocation5 + $0x230] sm:$0xff] }
 0x109   :  { %v375_v5 = vld [vmem:[#allocation5 + $0x740] sm:$0xff]  ;;  %v5750_v8 = vcombine.high %v623_v61, %v627_v1  ;;  %3364 = vmatprep.subr.bf16.mxu1 %v5494_v4  ;;  %v5749_v11 = vcombine.low %v623_v61, %v627_v1  ;;  %v169_v61 = vld [vmem:[#allocation5 + $0xd0] sm:$0xff]  ;;  %v5296_v4 = vcombine.high %v168_v28, %v172_v60  ;;  %v212_v43 = vld [vmem:[#allocation5 + $0x228] sm:$0xff] }
 0x10a   :  { %v379_v6 = vld [vmem:[#allocation5 + $0x760] sm:$0xff]  ;;  %3365 = vmatpush1.bf16.msra.mxu1 %v5493_v10  ;;  %v173_v1 = vld [vmem:[#allocation5 + $0xf0] sm:$0xff]  ;;  %v5295_v10 = vcombine.low %v168_v28, %v172_v60  ;;  %v216_v52 = vld [vmem:[#allocation5 + $0x248] sm:$0xff] }
 0x10b   :  { %v631_v7 = vld [vmem:[#allocation5 + $0xf40] sm:$0xff]  ;;  %v5502_v12 = vcombine.high %v375_v5, %v379_v6  ;;  %3450 = vmatprep.subr.bf16.mxu0 %v5750_v8  ;;  %v5501_v18 = vcombine.low %v375_v5, %v379_v6  ;;  %v176_v5 = vld [vmem:[#allocation5 + $0x108] sm:$0xff]  ;;  %v5298_v8 = vcombine.high %v169_v61, %v173_v1  ;;  %v221_v57 = vld [vmem:[#allocation5 + $0x270] sm:$0xff] }
 0x10c   :  { %v635_v9 = vld [vmem:[#allocation5 + $0xf60] sm:$0xff]  ;;  %3451 = vmatpush1.bf16.msra.mxu0 %v5749_v11  ;;  %v180_v6 = vld [vmem:[#allocation5 + $0x128] sm:$0xff]  ;;  %v5297_v11 = vcombine.low %v169_v61, %v173_v1  ;;  %v229_v1 = vld [vmem:[#allocation5 + $0x2b0] sm:$0xff] }
 0x10d   :  { %v383_v13 = vld [vmem:[#allocation5 + $0x780] sm:$0xff]  ;;  %v5758_v16 = vcombine.high %v631_v7, %v635_v9  ;;  %3366 = vmatprep.subr.bf16.mxu1 %v5502_v12  ;;  %v5757_v19 = vcombine.low %v631_v7, %v635_v9  ;;  %v177_v7 = vld [vmem:[#allocation5 + $0x110] sm:$0xff]  ;;  %v5304_v12 = vcombine.high %v176_v5, %v180_v6  ;;  %v220_v55 = vld [vmem:[#allocation5 + $0x268] sm:$0xff] }
 0x10e   :  { %v387_v14 = vld [vmem:[#allocation5 + $0x7a0] sm:$0xff]  ;;  %3367 = vmatpush1.bf16.msra.mxu1 %v5501_v18  ;;  %v181_v9 = vld [vmem:[#allocation5 + $0x130] sm:$0xff]  ;;  %v5303_v18 = vcombine.low %v176_v5, %v180_v6  ;;  %v224_v60 = vld [vmem:[#allocation5 + $0x288] sm:$0xff] }
 0x10f   :  { %v639_v15 = vld [vmem:[#allocation5 + $0xf80] sm:$0xff]  ;;  %v5510_v20 = vcombine.high %v383_v13, %v387_v14  ;;  %3452 = vmatprep.subr.bf16.mxu0 %v5758_v16  ;;  %v5509_v30 = vcombine.low %v383_v13, %v387_v14  ;;  %v184_v13 = vld [vmem:[#allocation5 + $0x148] sm:$0xff]  ;;  %v5306_v16 = vcombine.high %v177_v7, %v181_v9 }
 0x110   :  { %v643_v17 = vld [vmem:[#allocation5 + $0xfa0] sm:$0xff]  ;;  %3453 = vmatpush1.bf16.msra.mxu0 %v5757_v19  ;;  %v188_v14 = vld [vmem:[#allocation5 + $0x168] sm:$0xff]  ;;  %v5305_v19 = vcombine.low %v177_v7, %v181_v9  ;;  %v237_v9 = vld [vmem:[#allocation5 + $0x2f0] sm:$0xff] }
 0x111   :  { %v391_v22 = vld [vmem:[#allocation5 + $0x7c0] sm:$0xff]  ;;  %v5766_v53 = vcombine.high %v639_v15, %v643_v17  ;;  %3368 = vmatprep.subr.bf16.mxu1 %v5510_v20  ;;  %v5765_v31 = vcombine.low %v639_v15, %v643_v17  ;;  %v185_v15 = vld [vmem:[#allocation5 + $0x150] sm:$0xff]  ;;  %v5312_v20 = vcombine.high %v184_v13, %v188_v14  ;;  %v228_v61 = vld [vmem:[#allocation5 + $0x2a8] sm:$0xff] }
 0x112   :  { %v395_v25 = vld [vmem:[#allocation5 + $0x7e0] sm:$0xff]  ;;  %3369 = vmatpush1.bf16.msra.mxu1 %v5509_v30  ;;  %v189_v17 = vld [vmem:[#allocation5 + $0x170] sm:$0xff]  ;;  %v5311_v30 = vcombine.low %v184_v13, %v188_v14  ;;  %v232_v6 = vld [vmem:[#allocation5 + $0x2c8] sm:$0xff] }
 0x113   :  { %v647_v29 = vld [vmem:[#allocation5 + $0xfc0] sm:$0xff]  ;;  %v5518_v59 = vcombine.high %v391_v22, %v395_v25  ;;  %3454 = vmatprep.subr.bf16.mxu0 %v5766_v53  ;;  %v5517_v38 = vcombine.low %v391_v22, %v395_v25  ;;  %v192_v22 = vld [vmem:[#allocation5 + $0x188] sm:$0xff]  ;;  %v5314_v53 = vcombine.high %v185_v15, %v189_v17 }
 0x114   :  { %v651_v54 = vld [vmem:[#allocation5 + $0xfe0] sm:$0xff]  ;;  %3455 = vmatpush1.bf16.msra.mxu0 %v5765_v31  ;;  %v196_v25 = vld [vmem:[#allocation5 + $0x1a8] sm:$0xff]  ;;  %v5313_v31 = vcombine.low %v185_v15, %v189_v17  ;;  %v245_v17 = vld [vmem:[#allocation5 + $0x330] sm:$0xff] }
 0x115   :  { %v5774_v36 = vcombine.high %v647_v29, %v651_v54  ;;  %3370 = vmatprep.subr.bf16.mxu1 %v5518_v59  ;;  %v5773_v39 = vcombine.low %v647_v29, %v651_v54  ;;  %v193_v29 = vld [vmem:[#allocation5 + $0x190] sm:$0xff]  ;;  %v5320_v59 = vcombine.high %v192_v22, %v196_v25  ;;  %v236_v7 = vld [vmem:[#allocation5 + $0x2e8] sm:$0xff] }
 0x116   :  { %3371 = vmatpush1.bf16.msra.mxu1 %v5517_v38  ;;  %v197_v54 = vld [vmem:[#allocation5 + $0x1b0] sm:$0xff]  ;;  %v5319_v38 = vcombine.low %v192_v22, %v196_v25  ;;  %v240_v14 = vld [vmem:[#allocation5 + $0x308] sm:$0xff] }
 0x117   :  { %3456 = vmatprep.subr.bf16.mxu0 %v5774_v36  ;;  %3469 = vmatprep.subr.bf16.mxu1 %v5272_v40  ;;  %v5322_v36 = vcombine.high %v193_v29, %v197_v54  ;;  %v5328_v40 = vcombine.high %v200_v62, %v204_v34  ;;  %v244_v15 = vld [vmem:[#allocation5 + $0x328] sm:$0xff] }
 0x118   :  { %3457 = vmatpush1.bf16.msra.mxu0 %v5773_v39  ;;  %v5321_v39 = vcombine.low %v193_v29, %v197_v54  ;;  %v248_v25 = vld [vmem:[#allocation5 + $0x348] sm:$0xff]  ;;  %v253_v54 = vld [vmem:[#allocation5 + $0x370] sm:$0xff] }
 0x119   :  { %3641 = vmatprep.subr.bf16.mxu0 %v5274_v44  ;;  %3373 = vmatmul.mubr.bf16.vlgmr.msra.gmra.mrb[0].mxu1 %v6734_v46  ;;  %v209_v44 = vld [vmem:[#allocation5 + $0x210] sm:$0xff]  ;;  %v252_v29 = vld [vmem:[#allocation5 + $0x368] sm:$0xff] }
 0x11a   :  { %3470 = vmatpush1.bf16.msra.mxu1 %v5271_v47  ;;  %3501 = vmatprep.mubr.bf16.mxu1 %v6692_v58  ;;  %v5327_v47 = vcombine.low %v200_v62, %v204_v34  ;;  %v5338_v51 = vcombine.high %v209_v44, %v213_v45  ;;  %v256_v34 = vld [vmem:[#allocation5 + $0x388] sm:$0xff] }
 0x11b   :  { %3459 = vmatmul.mubr.bf16.vlgmr.msra.gmra.mrb[0].mxu0 %v6738_v48  ;;  %3471 = vmatprep.subr.bf16.mxu1 %v5280_v50  ;;  %v5336_v50 = vcombine.high %v208_v42, %v212_v43 }
 0x11c   :  { %3642 = vmatpush1.bf16.msra.mxu0 %v5273_v49  ;;  %3673 = vmatprep.mubr.bf16.mxu0 %v6692_v58  ;;  %v5329_v49 = vcombine.low %v201_v35, %v205_v37  ;;  %v260_v35 = vld [vmem:[#allocation5 + $0x3a8] sm:$0xff]  ;;  %v261_v37 = vld [vmem:[#allocation5 + $0x3b0] sm:$0xff] }
 0x11d   :  { %3643 = vmatprep.subr.bf16.mxu0 %v5282_v56  ;;  %v217_v56 = vld [vmem:[#allocation5 + $0x250] sm:$0xff] }
 0x11e   :  { %3472 = vmatpush1.bf16.msra.mxu1 %v5279_v23  ;;  %v5335_v23 = vcombine.low %v208_v42, %v212_v43  ;;  %v5346_v28 = vcombine.high %v217_v56, %v221_v57  ;;  %v264_v42 = vld [vmem:[#allocation5 + $0x3c8] sm:$0xff] }
 0x11f   :  { %3473 = vmatprep.subr.bf16.mxu1 %v5288_v27  ;;  %v5344_v27 = vcombine.high %v216_v52, %v220_v55  ;;  %v268_v43 = vld [vmem:[#allocation5 + $0x3e8] sm:$0xff] }
 0x120   :  { %3644 = vmatpush1.bf16.msra.mxu0 %v5281_v24  ;;  %v5337_v24 = vcombine.low %v209_v44, %v213_v45  ;;  %v265_v44 = vld [vmem:[#allocation5 + $0x3d0] sm:$0xff] }
 0x121   :  { %3645 = vmatprep.subr.bf16.mxu0 %v5290_v63  ;;  %v225_v63 = vld [vmem:[#allocation5 + $0x290] sm:$0xff] }
 0x122   :  { %3474 = vmatpush1.bf16.msra.mxu1 %v5287_v2  ;;  %v5343_v2 = vcombine.low %v216_v52, %v220_v55  ;;  %v5354_v5 = vcombine.high %v225_v63, %v229_v1  ;;  %v269_v45 = vld [vmem:[#allocation5 + $0x3f0] sm:$0xff]  ;;  %v272_v52 = vld [vmem:[#allocation5 + $0x408] sm:$0xff] }
 0x123   :  { %3475 = vmatprep.subr.bf16.mxu1 %v5296_v4  ;;  %v5352_v4 = vcombine.high %v224_v60, %v228_v61  ;;  %v276_v55 = vld [vmem:[#allocation5 + $0x428] sm:$0xff] }
 0x124   :  { %3646 = vmatpush1.bf16.msra.mxu0 %v5289_v3  ;;  %v5345_v3 = vcombine.low %v217_v56, %v221_v57  ;;  %v273_v56 = vld [vmem:[#allocation5 + $0x410] sm:$0xff] }
 0x125   :  { %3647 = vmatprep.subr.bf16.mxu0 %v5298_v8  ;;  %v233_v8 = vld [vmem:[#allocation5 + $0x2d0] sm:$0xff] }
 0x126   :  { %3476 = vmatpush1.bf16.msra.mxu1 %v5295_v10  ;;  %v5351_v10 = vcombine.low %v224_v60, %v228_v61  ;;  %v5362_v13 = vcombine.high %v233_v8, %v237_v9  ;;  %v277_v57 = vld [vmem:[#allocation5 + $0x430] sm:$0xff]  ;;  %v280_v60 = vld [vmem:[#allocation5 + $0x448] sm:$0xff] }
 0x127   :  { %3477 = vmatprep.subr.bf16.mxu1 %v5304_v12  ;;  %v5360_v12 = vcombine.high %v232_v6, %v236_v7  ;;  %v284_v61 = vld [vmem:[#allocation5 + $0x468] sm:$0xff] }
 0x128   :  { %3648 = vmatpush1.bf16.msra.mxu0 %v5297_v11  ;;  %v5353_v11 = vcombine.low %v225_v63, %v229_v1  ;;  %v281_v63 = vld [vmem:[#allocation5 + $0x450] sm:$0xff] }
 0x129   :  { %3649 = vmatprep.subr.bf16.mxu0 %v5306_v16  ;;  %v241_v16 = vld [vmem:[#allocation5 + $0x310] sm:$0xff] }
 0x12a   :  { %3478 = vmatpush1.bf16.msra.mxu1 %v5303_v18  ;;  %v5359_v18 = vcombine.low %v232_v6, %v236_v7  ;;  %v5370_v22 = vcombine.high %v241_v16, %v245_v17  ;;  %v285_v1 = vld [vmem:[#allocation5 + $0x470] sm:$0xff]  ;;  %v288_v6 = vld [vmem:[#allocation5 + $0x488] sm:$0xff] }
 0x12b   :  { %3479 = vmatprep.subr.bf16.mxu1 %v5312_v20  ;;  %v5368_v20 = vcombine.high %v240_v14, %v244_v15  ;;  %v292_v7 = vld [vmem:[#allocation5 + $0x4a8] sm:$0xff] }
 0x12c   :  { %3650 = vmatpush1.bf16.msra.mxu0 %v5305_v19  ;;  %v5361_v19 = vcombine.low %v233_v8, %v237_v9  ;;  %v289_v8 = vld [vmem:[#allocation5 + $0x490] sm:$0xff] }
 0x12d   :  { %3651 = vmatprep.subr.bf16.mxu0 %v5314_v53  ;;  %v249_v53 = vld [vmem:[#allocation5 + $0x350] sm:$0xff] }
 0x12e   :  { %3480 = vmatpush1.bf16.msra.mxu1 %v5311_v30  ;;  %v5367_v30 = vcombine.low %v240_v14, %v244_v15  ;;  %v5378_v62 = vcombine.high %v249_v53, %v253_v54  ;;  %v293_v9 = vld [vmem:[#allocation5 + $0x4b0] sm:$0xff]  ;;  %v296_v14 = vld [vmem:[#allocation5 + $0x4c8] sm:$0xff] }
 0x12f   :  { %3481 = vmatprep.subr.bf16.mxu1 %v5320_v59  ;;  %v5376_v59 = vcombine.high %v248_v25, %v252_v29  ;;  %v300_v15 = vld [vmem:[#allocation5 + $0x4e8] sm:$0xff] }
 0x130   :  { %3652 = vmatpush1.bf16.msra.mxu0 %v5313_v31  ;;  %v5369_v31 = vcombine.low %v241_v16, %v245_v17  ;;  %v297_v16 = vld [vmem:[#allocation5 + $0x4d0] sm:$0xff] }
 0x131   :  { %3653 = vmatprep.subr.bf16.mxu0 %v5322_v36  ;;  %v257_v36 = vld [vmem:[#allocation5 + $0x390] sm:$0xff] }
 0x132   :  { %3482 = vmatpush1.bf16.msra.mxu1 %v5319_v38  ;;  %v5375_v38 = vcombine.low %v248_v25, %v252_v29  ;;  %v301_v17 = vld [vmem:[#allocation5 + $0x4f0] sm:$0xff]  ;;  %v304_v25 = vld [vmem:[#allocation5 + $0x508] sm:$0xff] }
 0x133   :  { %3483 = vmatprep.subr.bf16.mxu1 %v5328_v40  ;;  %v5384_v40 = vcombine.high %v256_v34, %v260_v35  ;;  %v308_v29 = vld [vmem:[#allocation5 + $0x528] sm:$0xff] }
 0x134   :  { %3654 = vmatpush1.bf16.msra.mxu0 %v5321_v39  ;;  %v5377_v39 = vcombine.low %v249_v53, %v253_v54  ;;  %v305_v53 = vld [vmem:[#allocation5 + $0x510] sm:$0xff] }
 0x135   :  { %3655 = vmatprep.subr.bf16.mxu0 %v5330_v41  ;;  %v5386_v41 = vcombine.high %v257_v36, %v261_v37  ;;  %v309_v54 = vld [vmem:[#allocation5 + $0x530] sm:$0xff] }
 0x136   :  { %3484 = vmatpush1.bf16.msra.mxu1 %v5327_v47  ;;  %v5383_v47 = vcombine.low %v256_v34, %v260_v35  ;;  %v312_v34 = vld [vmem:[#allocation5 + $0x548] sm:$0xff] }
 0x137   :  { %3485 = vmatprep.subr.bf16.mxu1 %v5336_v50  ;;  %v5392_v50 = vcombine.high %v264_v42, %v268_v43  ;;  %v316_v35 = vld [vmem:[#allocation5 + $0x568] sm:$0xff] }
 0x138   :  { %3656 = vmatpush1.bf16.msra.mxu0 %v5329_v49  ;;  %v5385_v49 = vcombine.low %v257_v36, %v261_v37  ;;  %v313_v36 = vld [vmem:[#allocation5 + $0x550] sm:$0xff] }
 0x139   :  { %3657 = vmatprep.subr.bf16.mxu0 %v5338_v51  ;;  %v5394_v51 = vcombine.high %v265_v44, %v269_v45  ;;  %v317_v37 = vld [vmem:[#allocation5 + $0x570] sm:$0xff] }
 0x13a   :  { %3486 = vmatpush1.bf16.msra.mxu1 %v5335_v23  ;;  %v5391_v23 = vcombine.low %v264_v42, %v268_v43  ;;  %v320_v42 = vld [vmem:[#allocation5 + $0x588] sm:$0xff] }
 0x13b   :  { %3487 = vmatprep.subr.bf16.mxu1 %v5344_v27  ;;  %v5400_v27 = vcombine.high %v272_v52, %v276_v55  ;;  %v324_v43 = vld [vmem:[#allocation5 + $0x5a8] sm:$0xff] }
 0x13c   :  { %3658 = vmatpush1.bf16.msra.mxu0 %v5337_v24  ;;  %v5393_v24 = vcombine.low %v265_v44, %v269_v45  ;;  %v321_v44 = vld [vmem:[#allocation5 + $0x590] sm:$0xff] }
 0x13d   :  { %3659 = vmatprep.subr.bf16.mxu0 %v5346_v28  ;;  %v5402_v28 = vcombine.high %v273_v56, %v277_v57  ;;  %v325_v45 = vld [vmem:[#allocation5 + $0x5b0] sm:$0xff] }
 0x13e   :  { %3488 = vmatpush1.bf16.msra.mxu1 %v5343_v2  ;;  %v5399_v2 = vcombine.low %v272_v52, %v276_v55  ;;  %v328_v52 = vld [vmem:[#allocation5 + $0x5c8] sm:$0xff] }
 0x13f   :  { %3489 = vmatprep.subr.bf16.mxu1 %v5352_v4  ;;  %v5408_v4 = vcombine.high %v280_v60, %v284_v61  ;;  %v332_v55 = vld [vmem:[#allocation5 + $0x5e8] sm:$0xff] }
 0x140   :  { %3660 = vmatpush1.bf16.msra.mxu0 %v5345_v3  ;;  %v5401_v3 = vcombine.low %v273_v56, %v277_v57  ;;  %v329_v56 = vld [vmem:[#allocation5 + $0x5d0] sm:$0xff] }
 0x141   :  { %3661 = vmatprep.subr.bf16.mxu0 %v5354_v5  ;;  %v5410_v5 = vcombine.high %v281_v63, %v285_v1  ;;  %v333_v57 = vld [vmem:[#allocation5 + $0x5f0] sm:$0xff] }
 0x142   :  { %3490 = vmatpush1.bf16.msra.mxu1 %v5351_v10  ;;  %v5407_v10 = vcombine.low %v280_v60, %v284_v61  ;;  %v336_v60 = vld [vmem:[#allocation5 + $0x608] sm:$0xff] }
 0x143   :  { %3491 = vmatprep.subr.bf16.mxu1 %v5360_v12  ;;  %v5416_v12 = vcombine.high %v288_v6, %v292_v7  ;;  %v340_v61 = vld [vmem:[#allocation5 + $0x628] sm:$0xff] }
 0x144   :  { %3662 = vmatpush1.bf16.msra.mxu0 %v5353_v11  ;;  %v5409_v11 = vcombine.low %v281_v63, %v285_v1  ;;  %v337_v63 = vld [vmem:[#allocation5 + $0x610] sm:$0xff] }
 0x145   :  { %3663 = vmatprep.subr.bf16.mxu0 %v5362_v13  ;;  %v5418_v13 = vcombine.high %v289_v8, %v293_v9  ;;  %v341_v1 = vld [vmem:[#allocation5 + $0x630] sm:$0xff] }
 0x146   :  { %3492 = vmatpush1.bf16.msra.mxu1 %v5359_v18  ;;  %v5415_v18 = vcombine.low %v288_v6, %v292_v7  ;;  %v344_v6 = vld [vmem:[#allocation5 + $0x648] sm:$0xff] }
 0x147   :  { %3493 = vmatprep.subr.bf16.mxu1 %v5368_v20  ;;  %v5424_v20 = vcombine.high %v296_v14, %v300_v15  ;;  %v348_v7 = vld [vmem:[#allocation5 + $0x668] sm:$0xff] }
 0x148   :  { %3664 = vmatpush1.bf16.msra.mxu0 %v5361_v19  ;;  %v5417_v19 = vcombine.low %v289_v8, %v293_v9  ;;  %v345_v8 = vld [vmem:[#allocation5 + $0x650] sm:$0xff] }
 0x149   :  { %3665 = vmatprep.subr.bf16.mxu0 %v5370_v22  ;;  %v5426_v22 = vcombine.high %v297_v16, %v301_v17  ;;  %v349_v9 = vld [vmem:[#allocation5 + $0x670] sm:$0xff] }
 0x14a   :  { %3494 = vmatpush1.bf16.msra.mxu1 %v5367_v30  ;;  %v5423_v30 = vcombine.low %v296_v14, %v300_v15  ;;  %v352_v14 = vld [vmem:[#allocation5 + $0x688] sm:$0xff] }
 0x14b   :  { %3495 = vmatprep.subr.bf16.mxu1 %v5376_v59  ;;  %v5432_v59 = vcombine.high %v304_v25, %v308_v29  ;;  %v356_v15 = vld [vmem:[#allocation5 + $0x6a8] sm:$0xff] }
 0x14c   :  { %3666 = vmatpush1.bf16.msra.mxu0 %v5369_v31  ;;  %v5425_v31 = vcombine.low %v297_v16, %v301_v17  ;;  %v353_v16 = vld [vmem:[#allocation5 + $0x690] sm:$0xff] }
 0x14d   :  { %3667 = vmatprep.subr.bf16.mxu0 %v5378_v62  ;;  %v5434_v62 = vcombine.high %v305_v53, %v309_v54  ;;  %v357_v17 = vld [vmem:[#allocation5 + $0x6b0] sm:$0xff] }
 0x14e   :  { %3496 = vmatpush1.bf16.msra.mxu1 %v5375_v38  ;;  %v5431_v38 = vcombine.low %v304_v25, %v308_v29  ;;  %v360_v25 = vld [vmem:[#allocation5 + $0x6c8] sm:$0xff] }
 0x14f   :  { %3497 = vmatprep.subr.bf16.mxu1 %v5384_v40  ;;  %v5440_v40 = vcombine.high %v312_v34, %v316_v35  ;;  %v364_v29 = vld [vmem:[#allocation5 + $0x6e8] sm:$0xff] }
 0x150   :  { %3668 = vmatpush1.bf16.msra.mxu0 %v5377_v39  ;;  %v5433_v39 = vcombine.low %v305_v53, %v309_v54  ;;  %v361_v53 = vld [vmem:[#allocation5 + $0x6d0] sm:$0xff] }
 0x151   :  { %3669 = vmatprep.subr.bf16.mxu0 %v5386_v41  ;;  %v5442_v41 = vcombine.high %v313_v36, %v317_v37  ;;  %v365_v54 = vld [vmem:[#allocation5 + $0x6f0] sm:$0xff] }
 0x152   :  { %3498 = vmatpush1.bf16.msra.mxu1 %v5383_v47  ;;  %v5439_v47 = vcombine.low %v312_v34, %v316_v35  ;;  %v368_v34 = vld [vmem:[#allocation5 + $0x708] sm:$0xff] }
 0x153   :  { %3499 = vmatprep.subr.bf16.mxu1 %v5392_v50  ;;  %v5448_v50 = vcombine.high %v320_v42, %v324_v43  ;;  %v372_v35 = vld [vmem:[#allocation5 + $0x728] sm:$0xff] }
 0x154   :  { %3670 = vmatpush1.bf16.msra.mxu0 %v5385_v49  ;;  %v5441_v49 = vcombine.low %v313_v36, %v317_v37  ;;  %v369_v36 = vld [vmem:[#allocation5 + $0x710] sm:$0xff] }
 0x155   :  { %3671 = vmatprep.subr.bf16.mxu0 %v5394_v51  ;;  %v5450_v51 = vcombine.high %v321_v44, %v325_v45  ;;  %v373_v37 = vld [vmem:[#allocation5 + $0x730] sm:$0xff] }
 0x156   :  { %3500 = vmatpush1.bf16.msra.mxu1 %v5391_v23  ;;  %v5447_v23 = vcombine.low %v320_v42, %v324_v43  ;;  %v376_v42 = vld [vmem:[#allocation5 + $0x748] sm:$0xff] }
 0x157   :  { %3512 = vmatprep.subr.bf16.mxu1 %v5400_v27  ;;  %v5456_v27 = vcombine.high %v328_v52, %v332_v55  ;;  %v380_v43 = vld [vmem:[#allocation5 + $0x768] sm:$0xff] }
 0x158   :  { %3672 = vmatpush1.bf16.msra.mxu0 %v5393_v24  ;;  %v5449_v24 = vcombine.low %v321_v44, %v325_v45  ;;  %v377_v44 = vld [vmem:[#allocation5 + $0x750] sm:$0xff] }
 0x159   :  { %3684 = vmatprep.subr.bf16.mxu0 %v5402_v28  ;;  %3502 = vmatmul.mubr.bf16.vlgmr.msra.gmra.mrb[4].mxu1 %v6706_v21  ;;  %v5458_v28 = vcombine.high %v329_v56, %v333_v57  ;;  %v381_v45 = vld [vmem:[#allocation5 + $0x770] sm:$0xff] }
 0x15a   :  { %3513 = vmatpush1.bf16.msra.mxu1 %v5399_v2  ;;  %3544 = vmatprep.mubr.bf16.mxu1 %v6722_v32  ;;  %v5455_v2 = vcombine.low %v328_v52, %v332_v55  ;;  %v384_v52 = vld [vmem:[#allocation5 + $0x788] sm:$0xff] }
 0x15b   :  { %3674 = vmatmul.mubr.bf16.vlgmr.msra.gmra.mrb[4].mxu0 %v6706_v21  ;;  %3514 = vmatprep.subr.bf16.mxu1 %v5408_v4  ;;  %v5464_v4 = vcombine.high %v336_v60, %v340_v61  ;;  %v388_v55 = vld [vmem:[#allocation5 + $0x7a8] sm:$0xff] }
 0x15c   :  { %3685 = vmatpush1.bf16.msra.mxu0 %v5401_v3  ;;  %3716 = vmatprep.mubr.bf16.mxu0 %v6722_v32  ;;  %v5457_v3 = vcombine.low %v329_v56, %v333_v57  ;;  %v385_v56 = vld [vmem:[#allocation5 + $0x790] sm:$0xff] }
 0x15d   :  { %3686 = vmatprep.subr.bf16.mxu0 %v5410_v5  ;;  %v5466_v5 = vcombine.high %v337_v63, %v341_v1  ;;  %v389_v57 = vld [vmem:[#allocation5 + $0x7b0] sm:$0xff] }
 0x15e   :  { %3515 = vmatpush1.bf16.msra.mxu1 %v5407_v10  ;;  %v5463_v10 = vcombine.low %v336_v60, %v340_v61  ;;  %v392_v60 = vld [vmem:[#allocation5 + $0x7c8] sm:$0xff] }
 0x15f   :  { %3516 = vmatprep.subr.bf16.mxu1 %v5416_v12  ;;  %v5472_v12 = vcombine.high %v344_v6, %v348_v7  ;;  %v396_v61 = vld [vmem:[#allocation5 + $0x7e8] sm:$0xff] }
 0x160   :  { %3687 = vmatpush1.bf16.msra.mxu0 %v5409_v11  ;;  %v5465_v11 = vcombine.low %v337_v63, %v341_v1  ;;  %v393_v63 = vld [vmem:[#allocation5 + $0x7d0] sm:$0xff] }
 0x161   :  { %3688 = vmatprep.subr.bf16.mxu0 %v5418_v13  ;;  %v5474_v13 = vcombine.high %v345_v8, %v349_v9  ;;  %v397_v1 = vld [vmem:[#allocation5 + $0x7f0] sm:$0xff] }
 0x162   :  { %3517 = vmatpush1.bf16.msra.mxu1 %v5415_v18  ;;  %v5471_v18 = vcombine.low %v344_v6, %v348_v7  ;;  %v400_v6 = vld [vmem:[#allocation5 + $0x808] sm:$0xff] }
 0x163   :  { %3518 = vmatprep.subr.bf16.mxu1 %v5424_v20  ;;  %v5480_v20 = vcombine.high %v352_v14, %v356_v15  ;;  %v404_v7 = vld [vmem:[#allocation5 + $0x828] sm:$0xff] }
 0x164   :  { %3689 = vmatpush1.bf16.msra.mxu0 %v5417_v19  ;;  %v5473_v19 = vcombine.low %v345_v8, %v349_v9  ;;  %v401_v8 = vld [vmem:[#allocation5 + $0x810] sm:$0xff] }
 0x165   :  { %3690 = vmatprep.subr.bf16.mxu0 %v5426_v22  ;;  %v5482_v22 = vcombine.high %v353_v16, %v357_v17  ;;  %v405_v9 = vld [vmem:[#allocation5 + $0x830] sm:$0xff] }
 0x166   :  { %3519 = vmatpush1.bf16.msra.mxu1 %v5423_v30  ;;  %v5479_v30 = vcombine.low %v352_v14, %v356_v15  ;;  %v408_v14 = vld [vmem:[#allocation5 + $0x848] sm:$0xff] }
 0x167   :  { %3520 = vmatprep.subr.bf16.mxu1 %v5432_v59  ;;  %v5488_v59 = vcombine.high %v360_v25, %v364_v29  ;;  %v412_v15 = vld [vmem:[#allocation5 + $0x868] sm:$0xff] }
 0x168   :  { %3691 = vmatpush1.bf16.msra.mxu0 %v5425_v31  ;;  %v5481_v31 = vcombine.low %v353_v16, %v357_v17  ;;  %v409_v16 = vld [vmem:[#allocation5 + $0x850] sm:$0xff] }
 0x169   :  { %3692 = vmatprep.subr.bf16.mxu0 %v5434_v62  ;;  %v5490_v62 = vcombine.high %v361_v53, %v365_v54  ;;  %v413_v17 = vld [vmem:[#allocation5 + $0x870] sm:$0xff] }
 0x16a   :  { %3521 = vmatpush1.bf16.msra.mxu1 %v5431_v38  ;;  %v5487_v38 = vcombine.low %v360_v25, %v364_v29  ;;  %v416_v25 = vld [vmem:[#allocation5 + $0x888] sm:$0xff] }
 0x16b   :  { %3522 = vmatprep.subr.bf16.mxu1 %v5440_v40  ;;  %v5496_v40 = vcombine.high %v368_v34, %v372_v35  ;;  %v420_v29 = vld [vmem:[#allocation5 + $0x8a8] sm:$0xff] }
 0x16c   :  { %3693 = vmatpush1.bf16.msra.mxu0 %v5433_v39  ;;  %v5489_v39 = vcombine.low %v361_v53, %v365_v54  ;;  %v417_v53 = vld [vmem:[#allocation5 + $0x890] sm:$0xff] }
 0x16d   :  { %3694 = vmatprep.subr.bf16.mxu0 %v5442_v41  ;;  %v5498_v41 = vcombine.high %v369_v36, %v373_v37  ;;  %v421_v54 = vld [vmem:[#allocation5 + $0x8b0] sm:$0xff] }
 0x16e   :  { %3523 = vmatpush1.bf16.msra.mxu1 %v5439_v47  ;;  %v5495_v47 = vcombine.low %v368_v34, %v372_v35  ;;  %v424_v34 = vld [vmem:[#allocation5 + $0x8c8] sm:$0xff] }
 0x16f   :  { %3524 = vmatprep.subr.bf16.mxu1 %v5448_v50  ;;  %v5504_v50 = vcombine.high %v376_v42, %v380_v43  ;;  %v428_v35 = vld [vmem:[#allocation5 + $0x8e8] sm:$0xff] }
 0x170   :  { %3695 = vmatpush1.bf16.msra.mxu0 %v5441_v49  ;;  %v5497_v49 = vcombine.low %v369_v36, %v373_v37  ;;  %v425_v36 = vld [vmem:[#allocation5 + $0x8d0] sm:$0xff] }
 0x171   :  { %3696 = vmatprep.subr.bf16.mxu0 %v5450_v51  ;;  %v5506_v51 = vcombine.high %v377_v44, %v381_v45  ;;  %v429_v37 = vld [vmem:[#allocation5 + $0x8f0] sm:$0xff] }
 0x172   :  { %3525 = vmatpush1.bf16.msra.mxu1 %v5447_v23  ;;  %v5503_v23 = vcombine.low %v376_v42, %v380_v43  ;;  %v432_v42 = vld [vmem:[#allocation5 + $0x908] sm:$0xff] }
 0x173   :  { %3526 = vmatprep.subr.bf16.mxu1 %v5456_v27  ;;  %v5512_v27 = vcombine.high %v384_v52, %v388_v55  ;;  %v436_v43 = vld [vmem:[#allocation5 + $0x928] sm:$0xff] }
 0x174   :  { %3697 = vmatpush1.bf16.msra.mxu0 %v5449_v24  ;;  %v5505_v24 = vcombine.low %v377_v44, %v381_v45  ;;  %v433_v44 = vld [vmem:[#allocation5 + $0x910] sm:$0xff] }
 0x175   :  { %3698 = vmatprep.subr.bf16.mxu0 %v5458_v28  ;;  %v5514_v28 = vcombine.high %v385_v56, %v389_v57  ;;  %v437_v45 = vld [vmem:[#allocation5 + $0x930] sm:$0xff] }
 0x176   :  { %3527 = vmatpush1.bf16.msra.mxu1 %v5455_v2  ;;  %v5511_v2 = vcombine.low %v384_v52, %v388_v55  ;;  %v440_v52 = vld [vmem:[#allocation5 + $0x948] sm:$0xff] }
 0x177   :  { %3528 = vmatprep.subr.bf16.mxu1 %v5464_v4  ;;  %v5520_v4 = vcombine.high %v392_v60, %v396_v61  ;;  %v444_v55 = vld [vmem:[#allocation5 + $0x968] sm:$0xff] }
 0x178   :  { %3699 = vmatpush1.bf16.msra.mxu0 %v5457_v3  ;;  %v5513_v3 = vcombine.low %v385_v56, %v389_v57  ;;  %v441_v56 = vld [vmem:[#allocation5 + $0x950] sm:$0xff] }
 0x179   :  { %3700 = vmatprep.subr.bf16.mxu0 %v5466_v5  ;;  %v5522_v5 = vcombine.high %v393_v63, %v397_v1  ;;  %v445_v57 = vld [vmem:[#allocation5 + $0x970] sm:$0xff] }
 0x17a   :  { %3529 = vmatpush1.bf16.msra.mxu1 %v5463_v10  ;;  %v5519_v10 = vcombine.low %v392_v60, %v396_v61  ;;  %v448_v60 = vld [vmem:[#allocation5 + $0x988] sm:$0xff] }
 0x17b   :  { %3530 = vmatprep.subr.bf16.mxu1 %v5472_v12  ;;  %v5528_v12 = vcombine.high %v400_v6, %v404_v7  ;;  %v452_v61 = vld [vmem:[#allocation5 + $0x9a8] sm:$0xff] }
 0x17c   :  { %3701 = vmatpush1.bf16.msra.mxu0 %v5465_v11  ;;  %v5521_v11 = vcombine.low %v393_v63, %v397_v1  ;;  %v449_v63 = vld [vmem:[#allocation5 + $0x990] sm:$0xff] }
 0x17d   :  { %3702 = vmatprep.subr.bf16.mxu0 %v5474_v13  ;;  %v5530_v13 = vcombine.high %v401_v8, %v405_v9  ;;  %v453_v1 = vld [vmem:[#allocation5 + $0x9b0] sm:$0xff] }
 0x17e   :  { %3531 = vmatpush1.bf16.msra.mxu1 %v5471_v18  ;;  %v5527_v18 = vcombine.low %v400_v6, %v404_v7  ;;  %v456_v6 = vld [vmem:[#allocation5 + $0x9c8] sm:$0xff] }
 0x17f   :  { %3532 = vmatprep.subr.bf16.mxu1 %v5480_v20  ;;  %v5536_v20 = vcombine.high %v408_v14, %v412_v15  ;;  %v460_v7 = vld [vmem:[#allocation5 + $0x9e8] sm:$0xff] }
 0x180   :  { %3703 = vmatpush1.bf16.msra.mxu0 %v5473_v19  ;;  %v5529_v19 = vcombine.low %v401_v8, %v405_v9  ;;  %v457_v8 = vld [vmem:[#allocation5 + $0x9d0] sm:$0xff] }
 0x181   :  { %3704 = vmatprep.subr.bf16.mxu0 %v5482_v22  ;;  %v5538_v22 = vcombine.high %v409_v16, %v413_v17  ;;  %v461_v9 = vld [vmem:[#allocation5 + $0x9f0] sm:$0xff] }
 0x182   :  { %3533 = vmatpush1.bf16.msra.mxu1 %v5479_v30  ;;  %v5535_v30 = vcombine.low %v408_v14, %v412_v15  ;;  %v464_v14 = vld [vmem:[#allocation5 + $0xa08] sm:$0xff] }
 0x183   :  { %3534 = vmatprep.subr.bf16.mxu1 %v5488_v59  ;;  %v5544_v59 = vcombine.high %v416_v25, %v420_v29  ;;  %v468_v15 = vld [vmem:[#allocation5 + $0xa28] sm:$0xff] }
 0x184   :  { %3705 = vmatpush1.bf16.msra.mxu0 %v5481_v31  ;;  %v5537_v31 = vcombine.low %v409_v16, %v413_v17  ;;  %v465_v16 = vld [vmem:[#allocation5 + $0xa10] sm:$0xff] }
 0x185   :  { %3706 = vmatprep.subr.bf16.mxu0 %v5490_v62  ;;  %v5546_v62 = vcombine.high %v417_v53, %v421_v54  ;;  %v469_v17 = vld [vmem:[#allocation5 + $0xa30] sm:$0xff] }
 0x186   :  { %3535 = vmatpush1.bf16.msra.mxu1 %v5487_v38  ;;  %v5543_v38 = vcombine.low %v416_v25, %v420_v29  ;;  %v472_v25 = vld [vmem:[#allocation5 + $0xa48] sm:$0xff] }
 0x187   :  { %3536 = vmatprep.subr.bf16.mxu1 %v5496_v40  ;;  %v5552_v40 = vcombine.high %v424_v34, %v428_v35  ;;  %v476_v29 = vld [vmem:[#allocation5 + $0xa68] sm:$0xff] }
 0x188   :  { %3707 = vmatpush1.bf16.msra.mxu0 %v5489_v39  ;;  %v5545_v39 = vcombine.low %v417_v53, %v421_v54  ;;  %v473_v53 = vld [vmem:[#allocation5 + $0xa50] sm:$0xff] }
 0x189   :  { %3708 = vmatprep.subr.bf16.mxu0 %v5498_v41  ;;  %v5554_v41 = vcombine.high %v425_v36, %v429_v37  ;;  %v477_v54 = vld [vmem:[#allocation5 + $0xa70] sm:$0xff] }
 0x18a   :  { %3537 = vmatpush1.bf16.msra.mxu1 %v5495_v47  ;;  %v5551_v47 = vcombine.low %v424_v34, %v428_v35  ;;  %v480_v34 = vld [vmem:[#allocation5 + $0xa88] sm:$0xff] }
 0x18b   :  { %3538 = vmatprep.subr.bf16.mxu1 %v5504_v50  ;;  %v5560_v50 = vcombine.high %v432_v42, %v436_v43  ;;  %v484_v35 = vld [vmem:[#allocation5 + $0xaa8] sm:$0xff] }
 0x18c   :  { %3709 = vmatpush1.bf16.msra.mxu0 %v5497_v49  ;;  %v5553_v49 = vcombine.low %v425_v36, %v429_v37  ;;  %v481_v36 = vld [vmem:[#allocation5 + $0xa90] sm:$0xff] }
 0x18d   :  { %3710 = vmatprep.subr.bf16.mxu0 %v5506_v51  ;;  %v5562_v51 = vcombine.high %v433_v44, %v437_v45  ;;  %v485_v37 = vld [vmem:[#allocation5 + $0xab0] sm:$0xff] }
 0x18e   :  { %3539 = vmatpush1.bf16.msra.mxu1 %v5503_v23  ;;  %v5559_v23 = vcombine.low %v432_v42, %v436_v43  ;;  %v488_v42 = vld [vmem:[#allocation5 + $0xac8] sm:$0xff] }
 0x18f   :  { %3540 = vmatprep.subr.bf16.mxu1 %v5512_v27  ;;  %v5568_v27 = vcombine.high %v440_v52, %v444_v55  ;;  %v492_v43 = vld [vmem:[#allocation5 + $0xae8] sm:$0xff] }
 0x190   :  { %3711 = vmatpush1.bf16.msra.mxu0 %v5505_v24  ;;  %v5561_v24 = vcombine.low %v433_v44, %v437_v45  ;;  %v489_v44 = vld [vmem:[#allocation5 + $0xad0] sm:$0xff] }
 0x191   :  { %3712 = vmatprep.subr.bf16.mxu0 %v5514_v28  ;;  %v5570_v28 = vcombine.high %v441_v56, %v445_v57  ;;  %v493_v45 = vld [vmem:[#allocation5 + $0xaf0] sm:$0xff] }
 0x192   :  { %3541 = vmatpush1.bf16.msra.mxu1 %v5511_v2  ;;  %v5567_v2 = vcombine.low %v440_v52, %v444_v55  ;;  %v496_v52 = vld [vmem:[#allocation5 + $0xb08] sm:$0xff] }
 0x193   :  { %3542 = vmatprep.subr.bf16.mxu1 %v5520_v4  ;;  %v5576_v4 = vcombine.high %v448_v60, %v452_v61  ;;  %v500_v55 = vld [vmem:[#allocation5 + $0xb28] sm:$0xff] }
 0x194   :  { %3713 = vmatpush1.bf16.msra.mxu0 %v5513_v3  ;;  %v5569_v3 = vcombine.low %v441_v56, %v445_v57  ;;  %v497_v56 = vld [vmem:[#allocation5 + $0xb10] sm:$0xff] }
 0x195   :  { %3714 = vmatprep.subr.bf16.mxu0 %v5522_v5  ;;  %v5578_v5 = vcombine.high %v449_v63, %v453_v1  ;;  %v501_v57 = vld [vmem:[#allocation5 + $0xb30] sm:$0xff] }
 0x196   :  { %3543 = vmatpush1.bf16.msra.mxu1 %v5519_v10  ;;  %v5575_v10 = vcombine.low %v448_v60, %v452_v61  ;;  %v504_v60 = vld [vmem:[#allocation5 + $0xb48] sm:$0xff] }
 0x197   :  { %3555 = vmatprep.subr.bf16.mxu1 %v5528_v12  ;;  %v5584_v12 = vcombine.high %v456_v6, %v460_v7  ;;  %v508_v61 = vld [vmem:[#allocation5 + $0xb68] sm:$0xff] }
 0x198   :  { %3715 = vmatpush1.bf16.msra.mxu0 %v5521_v11  ;;  %v5577_v11 = vcombine.low %v449_v63, %v453_v1  ;;  %v505_v63 = vld [vmem:[#allocation5 + $0xb50] sm:$0xff] }
 0x199   :  { %3727 = vmatprep.subr.bf16.mxu0 %v5530_v13  ;;  %3545 = vmatmul.mubr.bf16.vlgmr.msra.gmra.mrb[4].mxu1 %v6734_v46  ;;  %v5586_v13 = vcombine.high %v457_v8, %v461_v9  ;;  %v509_v1 = vld [vmem:[#allocation5 + $0xb70] sm:$0xff] }
 0x19a   :  { %3556 = vmatpush1.bf16.msra.mxu1 %v5527_v18  ;;  %3587 = vmatprep.mubr.bf16.mxu1 %v6701_v0  ;;  %v5583_v18 = vcombine.low %v456_v6, %v460_v7  ;;  %v512_v6 = vld [vmem:[#allocation5 + $0xb88] sm:$0xff] }
 0x19b   :  { %3717 = vmatmul.mubr.bf16.vlgmr.msra.gmra.mrb[4].mxu0 %v6734_v46  ;;  %3557 = vmatprep.subr.bf16.mxu1 %v5536_v20  ;;  %v5592_v20 = vcombine.high %v464_v14, %v468_v15  ;;  %v516_v7 = vld [vmem:[#allocation5 + $0xba8] sm:$0xff] }
 0x19c   :  { %3728 = vmatpush1.bf16.msra.mxu0 %v5529_v19  ;;  %3759 = vmatprep.mubr.bf16.mxu0 %v6701_v0  ;;  %v5585_v19 = vcombine.low %v457_v8, %v461_v9  ;;  %v513_v8 = vld [vmem:[#allocation5 + $0xb90] sm:$0xff] }
 0x19d   :  { %3729 = vmatprep.subr.bf16.mxu0 %v5538_v22  ;;  %v5594_v22 = vcombine.high %v465_v16, %v469_v17  ;;  %v517_v9 = vld [vmem:[#allocation5 + $0xbb0] sm:$0xff] }
 0x19e   :  { %3558 = vmatpush1.bf16.msra.mxu1 %v5535_v30  ;;  %v5591_v30 = vcombine.low %v464_v14, %v468_v15  ;;  %v520_v14 = vld [vmem:[#allocation5 + $0xbc8] sm:$0xff] }
 0x19f   :  { %3559 = vmatprep.subr.bf16.mxu1 %v5544_v59  ;;  %v5600_v59 = vcombine.high %v472_v25, %v476_v29  ;;  %v524_v15 = vld [vmem:[#allocation5 + $0xbe8] sm:$0xff] }
 0x1a0   :  { %3730 = vmatpush1.bf16.msra.mxu0 %v5537_v31  ;;  %v5593_v31 = vcombine.low %v465_v16, %v469_v17  ;;  %v521_v16 = vld [vmem:[#allocation5 + $0xbd0] sm:$0xff] }
 0x1a1   :  { %3731 = vmatprep.subr.bf16.mxu0 %v5546_v62  ;;  %v5602_v62 = vcombine.high %v473_v53, %v477_v54  ;;  %v525_v17 = vld [vmem:[#allocation5 + $0xbf0] sm:$0xff] }
 0x1a2   :  { %3560 = vmatpush1.bf16.msra.mxu1 %v5543_v38  ;;  %v5599_v38 = vcombine.low %v472_v25, %v476_v29  ;;  %v528_v25 = vld [vmem:[#allocation5 + $0xc08] sm:$0xff] }
 0x1a3   :  { %3561 = vmatprep.subr.bf16.mxu1 %v5552_v40  ;;  %v5608_v40 = vcombine.high %v480_v34, %v484_v35  ;;  %v532_v29 = vld [vmem:[#allocation5 + $0xc28] sm:$0xff] }
 0x1a4   :  { %3732 = vmatpush1.bf16.msra.mxu0 %v5545_v39  ;;  %v5601_v39 = vcombine.low %v473_v53, %v477_v54  ;;  %v529_v53 = vld [vmem:[#allocation5 + $0xc10] sm:$0xff] }
 0x1a5   :  { %3733 = vmatprep.subr.bf16.mxu0 %v5554_v41  ;;  %v5610_v41 = vcombine.high %v481_v36, %v485_v37  ;;  %v533_v54 = vld [vmem:[#allocation5 + $0xc30] sm:$0xff] }
 0x1a6   :  { %3562 = vmatpush1.bf16.msra.mxu1 %v5551_v47  ;;  %v5607_v47 = vcombine.low %v480_v34, %v484_v35  ;;  %v536_v34 = vld [vmem:[#allocation5 + $0xc48] sm:$0xff] }
 0x1a7   :  { %3563 = vmatprep.subr.bf16.mxu1 %v5560_v50  ;;  %v5616_v50 = vcombine.high %v488_v42, %v492_v43  ;;  %v540_v35 = vld [vmem:[#allocation5 + $0xc68] sm:$0xff] }
 0x1a8   :  { %3734 = vmatpush1.bf16.msra.mxu0 %v5553_v49  ;;  %v5609_v49 = vcombine.low %v481_v36, %v485_v37  ;;  %v537_v36 = vld [vmem:[#allocation5 + $0xc50] sm:$0xff] }
 0x1a9   :  { %3735 = vmatprep.subr.bf16.mxu0 %v5562_v51  ;;  %v5618_v51 = vcombine.high %v489_v44, %v493_v45  ;;  %v541_v37 = vld [vmem:[#allocation5 + $0xc70] sm:$0xff] }
 0x1aa   :  { %3564 = vmatpush1.bf16.msra.mxu1 %v5559_v23  ;;  %v5615_v23 = vcombine.low %v488_v42, %v492_v43  ;;  %v544_v42 = vld [vmem:[#allocation5 + $0xc88] sm:$0xff] }
 0x1ab   :  { %3565 = vmatprep.subr.bf16.mxu1 %v5568_v27  ;;  %v5624_v27 = vcombine.high %v496_v52, %v500_v55  ;;  %v548_v43 = vld [vmem:[#allocation5 + $0xca8] sm:$0xff] }
 0x1ac   :  { %3736 = vmatpush1.bf16.msra.mxu0 %v5561_v24  ;;  %v5617_v24 = vcombine.low %v489_v44, %v493_v45  ;;  %v545_v44 = vld [vmem:[#allocation5 + $0xc90] sm:$0xff] }
 0x1ad   :  { %3737 = vmatprep.subr.bf16.mxu0 %v5570_v28  ;;  %v5626_v28 = vcombine.high %v497_v56, %v501_v57  ;;  %v549_v45 = vld [vmem:[#allocation5 + $0xcb0] sm:$0xff] }
 0x1ae   :  { %3566 = vmatpush1.bf16.msra.mxu1 %v5567_v2  ;;  %v5623_v2 = vcombine.low %v496_v52, %v500_v55  ;;  %v552_v52 = vld [vmem:[#allocation5 + $0xcc8] sm:$0xff] }
 0x1af   :  { %3567 = vmatprep.subr.bf16.mxu1 %v5576_v4  ;;  %v5632_v4 = vcombine.high %v504_v60, %v508_v61  ;;  %v556_v55 = vld [vmem:[#allocation5 + $0xce8] sm:$0xff] }
 0x1b0   :  { %3738 = vmatpush1.bf16.msra.mxu0 %v5569_v3  ;;  %v5625_v3 = vcombine.low %v497_v56, %v501_v57  ;;  %v553_v56 = vld [vmem:[#allocation5 + $0xcd0] sm:$0xff] }
 0x1b1   :  { %3739 = vmatprep.subr.bf16.mxu0 %v5578_v5  ;;  %v5634_v5 = vcombine.high %v505_v63, %v509_v1  ;;  %v557_v57 = vld [vmem:[#allocation5 + $0xcf0] sm:$0xff] }
 0x1b2   :  { %3568 = vmatpush1.bf16.msra.mxu1 %v5575_v10  ;;  %v5631_v10 = vcombine.low %v504_v60, %v508_v61  ;;  %v5682_v60 = vcombine.high %v553_v56, %v557_v57  ;;  %v560_v61 = vld [vmem:[#allocation5 + $0xd08] sm:$0xff] }
 0x1b3   :  { %3569 = vmatprep.subr.bf16.mxu1 %v5584_v12  ;;  %v5640_v12 = vcombine.high %v512_v6, %v516_v7 }
 0x1b4   :  { %3740 = vmatpush1.bf16.msra.mxu0 %v5577_v11  ;;  %v5633_v11 = vcombine.low %v505_v63, %v509_v1  ;;  %v564_v63 = vld [vmem:[#allocation5 + $0xd28] sm:$0xff]  ;;  %v561_v1 = vld [vmem:[#allocation5 + $0xd10] sm:$0xff] }
 0x1b5   :  { %3741 = vmatprep.subr.bf16.mxu0 %v5586_v13  ;;  %v5642_v13 = vcombine.high %v513_v8, %v517_v9 }
 0x1b6   :  { %3570 = vmatpush1.bf16.msra.mxu1 %v5583_v18  ;;  %v5639_v18 = vcombine.low %v512_v6, %v516_v7  ;;  %v5688_v6 = vcombine.high %v560_v61, %v564_v63 }
 0x1b7   :  { %3571 = vmatprep.subr.bf16.mxu1 %v5592_v20  ;;  %v5648_v20 = vcombine.high %v520_v14, %v524_v15 }
 0x1b8   :  { %3742 = vmatpush1.bf16.msra.mxu0 %v5585_v19  ;;  %v5641_v19 = vcombine.low %v513_v8, %v517_v9  ;;  %v568_v8 = vld [vmem:[#allocation5 + $0xd48] sm:$0xff] }
 0x1b9   :  { %3743 = vmatprep.subr.bf16.mxu0 %v5594_v22  ;;  %v5650_v22 = vcombine.high %v521_v16, %v525_v17  ;;  %v572_v9 = vld [vmem:[#allocation5 + $0xd68] sm:$0xff] }
 0x1ba   :  { %3572 = vmatpush1.bf16.msra.mxu1 %v5591_v30  ;;  %v5647_v30 = vcombine.low %v520_v14, %v524_v15  ;;  %v655_v14 = vld [vmem:[#allocation7] sm:$0xff] }
 0x1bb   :  { %3573 = vmatprep.subr.bf16.mxu1 %v5600_v59  ;;  %v5656_v59 = vcombine.high %v528_v25, %v532_v29 }
 0x1bc   :  { %3744 = vmatpush1.bf16.msra.mxu0 %v5593_v31  ;;  %v5649_v31 = vcombine.low %v521_v16, %v525_v17  ;;  %v5696_v17 = vcombine.high %v568_v8, %v572_v9 }
 0x1bd   :  { %3745 = vmatprep.subr.bf16.mxu0 %v5602_v62  ;;  %v5658_v62 = vcombine.high %v529_v53, %v533_v54 }
 0x1be   :  { %3574 = vmatpush1.bf16.msra.mxu1 %v5599_v38  ;;  %v5655_v38 = vcombine.low %v528_v25, %v532_v29  ;;  %v577_v25 = vld [vmem:[#allocation5 + $0xd90] sm:$0xff] }
 0x1bf   :  { %3575 = vmatprep.subr.bf16.mxu1 %v5608_v40  ;;  %v5664_v40 = vcombine.high %v536_v34, %v540_v35  ;;  %v581_v29 = vld [vmem:[#allocation5 + $0xdb0] sm:$0xff] }
 0x1c0   :  { %3746 = vmatpush1.bf16.msra.mxu0 %v5601_v39  ;;  %v5657_v39 = vcombine.low %v529_v53, %v533_v54  ;;  %v5695_v54 = vcombine.low %v568_v8, %v572_v9 }
 0x1c1   :  { %3747 = vmatprep.subr.bf16.mxu0 %v5610_v41  ;;  %v5666_v41 = vcombine.high %v537_v36, %v541_v37 }
 0x1c2   :  { %3576 = vmatpush1.bf16.msra.mxu1 %v5607_v47  ;;  %v5663_v47 = vcombine.low %v536_v34, %v540_v35  ;;  %v584_v34 = vld [vmem:[#allocation5 + $0xdc8] sm:$0xff] }
 0x1c3   :  { %3577 = vmatprep.subr.bf16.mxu1 %v5616_v50  ;;  %v5672_v50 = vcombine.high %v544_v42, %v548_v43  ;;  %v588_v35 = vld [vmem:[#allocation5 + $0xde8] sm:$0xff] }
 0x1c4   :  { %3748 = vmatpush1.bf16.msra.mxu0 %v5609_v49  ;;  %v5665_v49 = vcombine.low %v537_v36, %v541_v37 }
 0x1c5   :  { %3749 = vmatprep.subr.bf16.mxu0 %v5618_v51  ;;  %v5674_v51 = vcombine.high %v545_v44, %v549_v45 }
 0x1c6   :  { %3578 = vmatpush1.bf16.msra.mxu1 %v5615_v23  ;;  %v657_v23 = vlaneseq }
 0x1c7   :  { %3579 = vmatprep.subr.bf16.mxu1 %v5624_v27  ;;  %v5673_v27 = vcombine.low %v545_v44, %v549_v45  ;;  %v5705_v45 = vcombine.low %v577_v25, %v581_v29 }
 0x1c8   :  { %3750 = vmatpush1.bf16.msra.mxu0 %v5617_v24  ;;  %v5671_v24 = vcombine.low %v544_v42, %v548_v43 }
 0x1c9   :  { %3751 = vmatprep.subr.bf16.mxu0 %v5626_v28  ;;  %v5680_v28 = vcombine.high %v552_v52, %v556_v55 }
 0x1ca   :  { %3580 = vmatpush1.bf16.msra.mxu1 %v5623_v2  ;;  %v565_v2 = vld [vmem:[#allocation5 + $0xd30] sm:$0xff] }
 0x1cb   :  { %3581 = vmatprep.subr.bf16.mxu1 %v5632_v4  ;;  %v5679_v4 = vcombine.low %v552_v52, %v556_v55  ;;  %v5690_v7 = vcombine.high %v561_v1, %v565_v2  ;;  %v5689_v16 = vcombine.low %v561_v1, %v565_v2  ;;  %v5712_v52 = vcombine.high %v584_v34, %v588_v35 }
 0x1cc   :  { %3752 = vmatpush1.bf16.msra.mxu0 %v5625_v3  ;;  %v6756_v3 = vshrl.u32 %v657_v23, 7  ;;  %v5711_v1 = vcombine.low %v584_v34, %v588_v35  ;;  %v616_v34 = vld [vmem:[#allocation5 + $0xec8] sm:$0xff] }
 0x1cd   :  { %3753 = vmatprep.subr.bf16.mxu0 %v5634_v5  ;;  %v5681_v5 = vcombine.low %v553_v56, %v557_v57  ;;  %v620_v35 = vld [vmem:[#allocation5 + $0xee8] sm:$0xff] }
 0x1ce   :  { %3582 = vmatpush1.bf16.msra.mxu1 %v5631_v10  ;;  %v659_v10 = vsub.s32 0, %v6756_v3  ;;  %v663_v15 = vsub.s32 1, %v6756_v3 }
 0x1cf   :  { %3583 = vmatprep.subr.bf16.mxu1 %v5640_v12  ;;  %v573_v12 = vld [vmem:[#allocation5 + $0xd70] sm:$0xff] }
 0x1d0   :  { %3754 = vmatpush1.bf16.msra.mxu0 %v5633_v11  ;;  %v569_v11 = vld [vmem:[#allocation5 + $0xd50] sm:$0xff]  ;;  %v664_v53 = vrot.slane %v655_v14, %v663_v15 }
 0x1d1   :  { %3755 = vmatprep.subr.bf16.mxu0 %v5642_v13  ;;  %v5687_v13 = vcombine.low %v560_v61, %v564_v63  ;;  %v597_v61 = vld [vmem:[#allocation5 + $0xe30] sm:$0xff] }
 0x1d2   :  { %3584 = vmatpush1.bf16.msra.mxu1 %v5639_v18  ;;  %v5698_v18 = vcombine.high %v569_v11, %v573_v12 }
 0x1d3   :  { %3585 = vmatprep.subr.bf16.mxu1 %v5648_v20  ;;  %v580_v20 = vld [vmem:[#allocation5 + $0xda8] sm:$0xff] }
 0x1d4   :  { %3756 = vmatpush1.bf16.msra.mxu0 %v5641_v19  ;;  %v576_v19 = vld [vmem:[#allocation5 + $0xd88] sm:$0xff] }
 0x1d5   :  { %3757 = vmatprep.subr.bf16.mxu0 %v5650_v22  ;;  %v660_v22 = vrot.slane %v655_v14, %v659_v10  ;;  %v5703_v44 = vcombine.low %v576_v19, %v580_v20  ;;  %v601_v14 = vld [vmem:[#allocation5 + $0xe50] sm:$0xff] }
 0x1d6   :  { %3586 = vmatpush1.bf16.msra.mxu1 %v5647_v30  ;;  %v5697_v30 = vcombine.low %v569_v11, %v573_v12  ;;  %v600_v11 = vld [vmem:[#allocation5 + $0xe48] sm:$0xff] }
 0x1d7   :  { %3598 = vmatprep.subr.bf16.mxu1 %v5656_v59  ;;  %v604_v12 = vld [vmem:[#allocation5 + $0xe68] sm:$0xff] }
 0x1d8   :  { %3758 = vmatpush1.bf16.msra.mxu0 %v5649_v31  ;;  %v5704_v31 = vcombine.high %v576_v19, %v580_v20  ;;  %v5728_v20 = vcombine.high %v600_v11, %v604_v12 }
 0x1d9   :  { %3770 = vmatprep.subr.bf16.mxu0 %v5658_v62  ;;  %3588 = vmatmul.mubr.bf16.vlgmr.msra.gmra.mrb[4].mxu1 %v6714_v26  ;;  %v5706_v62 = vcombine.high %v577_v25, %v581_v29  ;;  %v608_v25 = vld [vmem:[#allocation5 + $0xe88] sm:$0xff] }
 0x1da   :  { %3599 = vmatpush1.bf16.msra.mxu1 %v5655_v38  ;;  %3630 = vmatprep.mubr.bf16.mxu1 %v6727_v33  ;;  %v612_v29 = vld [vmem:[#allocation5 + $0xea8] sm:$0xff] }
 0x1db   :  { %3760 = vmatmul.mubr.bf16.vlgmr.msra.gmra.mrb[4].mxu0 %v6714_v26  ;;  %3600 = vmatprep.subr.bf16.mxu1 %v5664_v40  ;;  %v589_v40 = vld [vmem:[#allocation5 + $0xdf0] sm:$0xff] }
 0x1dc   :  { %3771 = vmatpush1.bf16.msra.mxu0 %v5657_v39  ;;  %3802 = vmatprep.mubr.bf16.mxu0 %v6727_v33  ;;  %v585_v39 = vld [vmem:[#allocation5 + $0xdd0] sm:$0xff] }
 0x1dd   :  { %3772 = vmatprep.subr.bf16.mxu0 %v5666_v41  ;;  %v5714_v23 = vcombine.high %v585_v39, %v589_v40 }
 0x1de   :  { %3601 = vmatpush1.bf16.msra.mxu1 %v5663_v47 }
 0x1df   :  { %3602 = vmatprep.subr.bf16.mxu1 %v5672_v50 }
 0x1e0   :  { %3773 = vmatpush1.bf16.msra.mxu0 %v5665_v49 }
 0x1e1   :  { %3774 = vmatprep.subr.bf16.mxu0 %v5674_v51 }
 0x1e2   :  { %3603 = vmatpush1.bf16.msra.mxu1 %v5671_v24  ;;  %v592_v24 = vld [vmem:[#allocation5 + $0xe08] sm:$0xff] }
 0x1e3   :  { %3604 = vmatprep.subr.bf16.mxu1 %v5680_v28 }
 0x1e4   :  { %3775 = vmatpush1.bf16.msra.mxu0 %v5673_v27  ;;  %v596_v27 = vld [vmem:[#allocation5 + $0xe28] sm:$0xff] }
 0x1e5   :  { %3776 = vmatprep.subr.bf16.mxu0 %v5682_v60  ;;  %v593_v60 = vld [vmem:[#allocation5 + $0xe10] sm:$0xff] }
 0x1e6   :  { %3605 = vmatpush1.bf16.msra.mxu1 %v5679_v4  ;;  %v5722_v9 = vcombine.high %v593_v60, %v597_v61  ;;  %v5721_v19 = vcombine.low %v593_v60, %v597_v61  ;;  %v640_v60 = vld [vmem:[#allocation5 + $0xf88] sm:$0xff] }
 0x1e7   :  { %3606 = vmatprep.subr.bf16.mxu1 %v5688_v6  ;;  %v5720_v6 = vcombine.high %v592_v24, %v596_v27  ;;  %v644_v61 = vld [vmem:[#allocation5 + $0xfa8] sm:$0xff] }
 0x1e8   :  { %3777 = vmatpush1.bf16.msra.mxu0 %v5681_v5  ;;  %v5713_v5 = vcombine.low %v585_v39, %v589_v40  ;;  %v5744_v40 = vcombine.high %v616_v34, %v620_v35 }
 0x1e9   :  { %3778 = vmatprep.subr.bf16.mxu0 %v5690_v7 }
 0x1ea   :  { %3607 = vmatpush1.bf16.msra.mxu1 %v5687_v13 }
 0x1eb   :  { %3608 = vmatprep.subr.bf16.mxu1 %v5696_v17 }
 0x1ec   :  { %3779 = vmatpush1.bf16.msra.mxu0 %v5689_v16  ;;  %v3374_v59 = vpop.f32.mrb[0].mxu1  ;;  %v605_v16 = vld [vmem:[#allocation5 + $0xe70] sm:$0xff] }
 0x1ed   :  { %3780 = vmatprep.subr.bf16.mxu0 %v5698_v18  ;;  %v5980_v36 = vadd.f32 %v3374_v59, %v660_v22  ;;  %v3376_v37 = vpop.f32.mrb[1].mxu1  ;;  %v5719_v18 = vcombine.low %v592_v24, %v596_v27  ;;  %v5736_v59 = vcombine.high %v608_v25, %v612_v29 }
 0x1ee   :  { %v3460_v38 = vpop.f32.mrb[0].mxu0  ;;  %v5982_v41 = vadd.f32 %v3376_v37, %v664_v53  ;;  %v3378_v42 = vpop.f32.mrb[2].mxu1  ;;  %3609 = vmatpush1.bf16.msra.mxu1 %v5695_v54  ;;  %v613_v54 = vld [vmem:[#allocation5 + $0xeb0] sm:$0xff] }
 0x1ef   :  { %v3462_v43 = vpop.f32.mrb[1].mxu0  ;;  %v5984_v47 = vadd.f32 %v3378_v42, %v660_v22  ;;  %v5981_v49 = vadd.f32 %v5980_v36, %v3460_v38  ;;  %v3380_v50 = vpop.f32.mrb[3].mxu1  ;;  %3610 = vmatprep.subr.bf16.mxu1 %v5704_v31  ;;  %v5730_v22 = vcombine.high %v601_v14, %v605_v16  ;;  %v5729_v31 = vcombine.low %v601_v14, %v605_v16  ;;  %v617_v36 = vld [vmem:[#allocation5 + $0xed0] sm:$0xff]  ;;  %v624_v42 = vld [vmem:[#allocation5 + $0xf08] sm:$0xff] }
 0x1f0   :  { %3781 = vmatpush1.bf16.msra.mxu0 %v5697_v30  ;;  %v3464_v51 = vpop.f32.mrb[2].mxu0  ;;  %v5986_v55 = vadd.f32 %v3380_v50, %v664_v53  ;;  %v5983_v56 = vadd.f32 %v5982_v41, %v3462_v43  ;;  %v609_v53 = vld [vmem:[#allocation5 + $0xe90] sm:$0xff]  ;;  %v5727_v30 = vcombine.low %v600_v11, %v604_v12  ;;  %v5735_v38 = vcombine.low %v608_v25, %v612_v29  ;;  %v628_v43 = vld [vmem:[#allocation5 + $0xf28] sm:$0xff] }
 0x1f1   :  { %v3466_v57 = vpop.f32.mrb[3].mxu0  ;;  %3782 = vmatprep.subr.bf16.mxu0 %v5706_v62  ;;  %v5985_v28 = vadd.f32 %v5984_v47, %v3464_v51  ;;  %v3985_v2 = vmax.f32 %v5981_v49, 0.0  ;;  %v5738_v62 = vcombine.high %v609_v53, %v613_v54  ;;  %v621_v37 = vld [vmem:[#allocation5 + $0xef0] sm:$0xff]  ;;  %v5737_v39 = vcombine.low %v609_v53, %v613_v54  ;;  %v154_v54 = vld [vmem:[#allocation5 + $0x58] sm:$0xff] }
 0x1f2   :  { %v5987_v63 = vadd.f32 %v5986_v55, %v3466_v57  ;;  %3611 = vmatpush1.bf16.msra.mxu1 %v5703_v44  ;;  %v3986_v7 = vmax.f32 %v5983_v56, 0.0  ;;  %v5746_v41 = vcombine.high %v617_v36, %v621_v37  ;;  %v625_v44 = vld [vmem:[#allocation5 + $0xf10] sm:$0xff]  ;;  %v5743_v47 = vcombine.low %v616_v34, %v620_v35  ;;  %v636_v55 = vld [vmem:[#allocation5 + $0xf68] sm:$0xff]  ;;  %v6082_v34 = vld [vmem:[#allocation8 + $0x14] ss:$8 sps:$4 sm:$0xff]  }
 0x1f3   :  { %v3993_v4 = vmax.f32 %v5985_v28, 0.0  ;;  %3612 = vmatprep.subr.bf16.mxu1 %v5712_v52  ;;  %v5745_v49 = vcombine.low %v617_v36, %v621_v37  ;;  %v5752_v50 = vcombine.high %v624_v42, %v628_v43  ;;  %v632_v52 = vld [vmem:[#allocation5 + $0xf48] sm:$0xff]  ;;  %v633_v56 = vld [vmem:[#allocation5 + $0xf50] sm:$0xff]  ;;  %v5767_v12 = vcombine.low %v640_v60, %v644_v61  ;;  %v162_v35 = vld [vmem:[#allocation5 + $0x98] sm:$0xff] }
 0x1f4   :  { %3783 = vmatpush1.bf16.msra.mxu0 %v5705_v45  ;;  %v3994_v8 = vmax.f32 %v5987_v63, 0.0  ;;  %v629_v45 = vld [vmem:[#allocation5 + $0xf30] sm:$0xff]  ;;  %v5760_v27 = vcombine.high %v632_v52, %v636_v55  ;;  %v166_v36 = vld [vmem:[#allocation5 + $0xb8] sm:$0xff] }
 0x1f5   :  { %3784 = vmatprep.subr.bf16.mxu0 %v5714_v23  ;;  %v6764_v13 = vpack.c.bf16 %v3993_v4, %v3985_v2  ;;  %v5754_v51 = vcombine.high %v625_v44, %v629_v45  ;;  %v637_v57 = vld [vmem:[#allocation5 + $0xf70] sm:$0xff]  ;;  %v5751_v23 = vcombine.low %v624_v42, %v628_v43  ;;  %v5753_v24 = vcombine.low %v625_v44, %v629_v45  ;;  %v174_v42 = vld [vmem:[#allocation5 + $0xf8] sm:$0xff] }
 0x1f6   :  { %v6766_v17 = vpack.c.bf16 %v3994_v8, %v3986_v7  ;;  %3613 = vmatpush1.bf16.msra.mxu1 %v5711_v1  ;;  %v5762_v28 = vcombine.high %v633_v56, %v637_v57  ;;  %v641_v63 = vld [vmem:[#allocation5 + $0xf90] sm:$0xff]  ;;  %v5759_v2 = vcombine.low %v632_v52, %v636_v55  ;;  %v5761_v4 = vcombine.low %v633_v56, %v637_v57  ;;  %v648_v7 = vld [vmem:[#allocation5 + $0xfc8] sm:$0xff]  ;;  %v186_v56 = vld [vmem:[#allocation5 + $0x158] sm:$0xff] }
 0x1f7   :  { %3614 = vmatprep.subr.bf16.mxu1 %v5720_v6  ;;  %v645_v1 = vld [vmem:[#allocation5 + $0xfb0] sm:$0xff]  ;;  %v652_v8 = vld [vmem:[#allocation5 + $0xfe8] sm:$0xff]  ;;  %v5291_v43 = vcombine.low %v162_v35, %v166_v36 }
 0x1f8   :  { %3785 = vmatpush1.bf16.msra.mxu0 %v5713_v5  ;;  %v5768_v5 = vcombine.high %v640_v60, %v644_v61  ;;  %v5770_v6 = vcombine.high %v641_v63, %v645_v1  ;;  %v653_v11 = vld [vmem:[#allocation5 + $0xff0] sm:$0xff]  ;;  %v5769_v14 = vcombine.low %v641_v63, %v645_v1  ;;  %v5776_v16 = vcombine.high %v648_v7, %v652_v8  ;;  %v198_v60 = vld [vmem:[#allocation5 + $0x1b8] sm:$0xff] }
 0x1f9   :  { %3786 = vmatprep.subr.bf16.mxu0 %v5722_v9  ;;  %v649_v9 = vld [vmem:[#allocation5 + $0xfd0] sm:$0xff]  ;;  %v6092_v63 = vld [vmem:[#allocation8 + $0x50] ss:$8 sps:$4 sm:$0xff]  }
 0x1fa   :  { %3615 = vmatpush1.bf16.msra.mxu1 %v5719_v18  ;;  %v5778_v18 = vcombine.high %v649_v9, %v653_v11  ;;  %v5777_v25 = vcombine.low %v649_v9, %v653_v11  ;;  %v6079_v53 = vld [vmem:[#allocation8 + $0x4] ss:$8 sps:$4 sm:$0xff]   ;;  %v6083_v44 = vld [vmem:[#allocation8 + $0x20] ss:$8 sps:$4 sm:$0xff]   ;;  %v6100_v9 = vld [vmem:[#allocation8 + $0x74] ss:$8 sps:$4 sm:$0xff]  }
 0x1fb   :  { %3616 = vmatprep.subr.bf16.mxu1 %v5728_v20  ;;  %v150_v20 = vld [vmem:[#allocation5 + $0x38] sm:$0xff]  ;;  %v6091_v55 = vld [vmem:[#allocation8 + $0x44] ss:$8 sps:$4 sm:$0xff]  }
 0x1fc   :  { %3787 = vmatpush1.bf16.msra.mxu0 %v5721_v19  ;;  %v146_v19 = vld [vmem:[#allocation5 + $0x18] sm:$0xff] }
 0x1fd   :  { %3788 = vmatprep.subr.bf16.mxu0 %v5730_v22  ;;  %v5775_v22 = vcombine.low %v648_v7, %v652_v8  ;;  %v5276_v29 = vcombine.high %v146_v19, %v150_v20  ;;  %v6095_v7 = vld [vmem:[#allocation8 + $0x60] ss:$8 sps:$4 sm:$0xff]   ;;  %v210_v11 = vld [vmem:[#allocation5 + $0x218] sm:$0xff] }
 0x1fe   :  { %3617 = vmatpush1.bf16.msra.mxu1 %v5727_v30  ;;  %v158_v30 = vld [vmem:[#allocation5 + $0x78] sm:$0xff] }
 0x1ff   :  { %3618 = vmatprep.subr.bf16.mxu1 %v5736_v59  ;;  %v6077_v59 = vld [vmem:[#allocation8] ss:$8 sps:$4 sm:$0xff]   ;;  %v5283_v37 = vcombine.low %v154_v54, %v158_v30 }
 0x200   :  { %3789 = vmatpush1.bf16.msra.mxu0 %v5729_v31  ;;  %v5275_v31 = vcombine.low %v146_v19, %v150_v20  ;;  %v6103_v19 = vld [vmem:[#allocation8 + $0x84] ss:$8 sps:$4 sm:$0xff]   ;;  %v218_v20 = vld [vmem:[#allocation5 + $0x258] sm:$0xff] }
 0x201   :  { %3790 = vmatprep.subr.bf16.mxu0 %v5738_v62  ;;  %v5284_v62 = vcombine.high %v154_v54, %v158_v30  ;;  %v6106_v54 = vld [vmem:[#allocation8 + $0x94] ss:$8 sps:$4 sm:$0xff]  }
 0x202   :  { %3619 = vmatpush1.bf16.msra.mxu1 %v5735_v38  ;;  %v6080_v38 = vld [vmem:[#allocation8 + $0x10] ss:$8 sps:$4 sm:$0xff]  }
 0x203   :  { %3620 = vmatprep.subr.bf16.mxu1 %v5744_v40  ;;  %v6085_v40 = vld [vmem:[#allocation8 + $0x24] ss:$8 sps:$4 sm:$0xff]   ;;  %v226_v30 = vld [vmem:[#allocation5 + $0x298] sm:$0xff] }
 0x204   :  { %3791 = vmatpush1.bf16.msra.mxu0 %v5737_v39  ;;  %v5292_v39 = vcombine.high %v162_v35, %v166_v36  ;;  %v6109_v35 = vld [vmem:[#allocation8 + $0xa4] ss:$8 sps:$4 sm:$0xff]   ;;  %v234_v36 = vld [vmem:[#allocation5 + $0x2d8] sm:$0xff] }
 0x205   :  { %3792 = vmatprep.subr.bf16.mxu0 %v5746_v41  ;;  %v170_v41 = vld [vmem:[#allocation5 + $0xd8] sm:$0xff] }
 0x206   :  { %3621 = vmatpush1.bf16.msra.mxu1 %v5743_v47  ;;  %v5300_v45 = vcombine.high %v170_v41, %v174_v42  ;;  %v6088_v47 = vld [vmem:[#allocation8 + $0x34] ss:$8 sps:$4 sm:$0xff]  }
 0x207   :  { %3622 = vmatprep.subr.bf16.mxu1 %v5752_v50  ;;  %v182_v50 = vld [vmem:[#allocation5 + $0x138] sm:$0xff] }
 0x208   :  { %3793 = vmatpush1.bf16.msra.mxu0 %v5745_v49  ;;  %v178_v49 = vld [vmem:[#allocation5 + $0x118] sm:$0xff] }
 0x209   :  { %3794 = vmatprep.subr.bf16.mxu0 %v5754_v51  ;;  %v6086_v51 = vld [vmem:[#allocation8 + $0x30] ss:$8 sps:$4 sm:$0xff]   ;;  %v5308_v52 = vcombine.high %v178_v49, %v182_v50  ;;  %v5307_v57 = vcombine.low %v178_v49, %v182_v50  ;;  %v6115_v49 = vld [vmem:[#allocation8 + $0xc4] ss:$8 sps:$4 sm:$0xff]  }
 0x20a   :  { %3623 = vmatpush1.bf16.msra.mxu1 %v5751_v23  ;;  %v6089_v23 = vld [vmem:[#allocation8 + $0x40] ss:$8 sps:$4 sm:$0xff]   ;;  %v250_v50 = vld [vmem:[#allocation5 + $0x358] sm:$0xff] }
 0x20b   :  { %3624 = vmatprep.subr.bf16.mxu1 %v5760_v27  ;;  %v6094_v27 = vld [vmem:[#allocation8 + $0x54] ss:$8 sps:$4 sm:$0xff]  }
 0x20c   :  { %3795 = vmatpush1.bf16.msra.mxu0 %v5753_v24 }
 0x20d   :  { %3796 = vmatprep.subr.bf16.mxu0 %v5762_v28  ;;  %v194_v28 = vld [vmem:[#allocation5 + $0x198] sm:$0xff] }
 0x20e   :  { %3625 = vmatpush1.bf16.msra.mxu1 %v5759_v2  ;;  %v5324_v1 = vcombine.high %v194_v28, %v198_v60  ;;  %v6097_v2 = vld [vmem:[#allocation8 + $0x64] ss:$8 sps:$4 sm:$0xff]  }
 0x20f   :  { %3626 = vmatprep.subr.bf16.mxu1 %v5768_v5  ;;  %v206_v5 = vld [vmem:[#allocation5 + $0x1f8] sm:$0xff] }
 0x210   :  { %3797 = vmatpush1.bf16.msra.mxu0 %v5761_v4  ;;  %v202_v4 = vld [vmem:[#allocation5 + $0x1d8] sm:$0xff] }
 0x211   :  { %3798 = vmatprep.subr.bf16.mxu0 %v5770_v6  ;;  %v5323_v6 = vcombine.low %v194_v28, %v198_v60  ;;  %v5332_v8 = vcombine.high %v202_v4, %v206_v5  ;;  %v6121_v28 = vld [vmem:[#allocation8 + $0xe4] ss:$8 sps:$4 sm:$0xff]   ;;  %v266_v60 = vld [vmem:[#allocation5 + $0x3d8] sm:$0xff] }
 0x212   :  { %3627 = vmatpush1.bf16.msra.mxu1 %v5767_v12  ;;  %v214_v12 = vld [vmem:[#allocation5 + $0x238] sm:$0xff] }
 0x213   :  { %3628 = vmatprep.subr.bf16.mxu1 %v5776_v16  ;;  %v6098_v16 = vld [vmem:[#allocation8 + $0x70] ss:$8 sps:$4 sm:$0xff]  }
 0x214   :  { %3799 = vmatpush1.bf16.msra.mxu0 %v5769_v14  ;;  %v5331_v14 = vcombine.low %v202_v4, %v206_v5  ;;  %v6124_v4 = vld [vmem:[#allocation8 + $0xf4] ss:$8 sps:$4 sm:$0xff]  }
 0x215   :  { %3800 = vmatprep.subr.bf16.mxu0 %v5778_v18  ;;  %v5340_v18 = vcombine.high %v210_v11, %v214_v12  ;;  %v274_v5 = vld [vmem:[#allocation5 + $0x418] sm:$0xff] }
 0x216   :  { %3629 = vmatpush1.bf16.msra.mxu1 %v5775_v22  ;;  %v222_v22 = vld [vmem:[#allocation5 + $0x278] sm:$0xff] }
 0x217   :  { %3813 = vmatprep.subr.bf16.mxu1 %v5276_v29  ;;  %v6101_v29 = vld [vmem:[#allocation8 + $0x80] ss:$8 sps:$4 sm:$0xff]  }
 0x218   :  { %3801 = vmatpush1.bf16.msra.mxu0 %v5777_v25  ;;  %v5339_v25 = vcombine.low %v210_v11, %v214_v12  ;;  %v282_v11 = vld [vmem:[#allocation5 + $0x458] sm:$0xff] }
 0x219   :  { %4789 = vmatprep.subr.bf16.mxu0 %v6079_v53  ;;  %3631 = vmatmul.mubr.bf16.vlgmr.msra.gmra.mrb[4].mxu1 %v6738_v48  ;;  %v5348_v53 = vcombine.high %v218_v20, %v222_v22  ;;  %v286_v12 = vld [vmem:[#allocation5 + $0x478] sm:$0xff] }
 0x21a   :  { %3814 = vmatpush1.bf16.msra.mxu1 %v5275_v31  ;;  %3845 = vmatprep.mubr.bf16.mxu1 %v6692_v58  ;;  %v190_v58 = vld [vmem:[#allocation5 + $0x178] sm:$0xff] }
 0x21b   :  { %3803 = vmatmul.mubr.bf16.vlgmr.msra.gmra.mrb[4].mxu0 %v6738_v48  ;;  %3815 = vmatprep.subr.bf16.mxu1 %v5284_v62  ;;  %v5316_v24 = vcombine.high %v186_v56, %v190_v58  ;;  %v5315_v61 = vcombine.low %v186_v56, %v190_v58  ;;  %v230_v31 = vld [vmem:[#allocation5 + $0x2b8] sm:$0xff] }
 0x21c   :  { %4790 = vmatpush1.bf16.msra.mxu0 %v6077_v59  ;;  %4821 = vmatprep.mubr.bf16.mxu0 %v6766_v17  ;;  %v5299_v17 = vcombine.low %v170_v41, %v174_v42  ;;  %v5347_v59 = vcombine.low %v218_v20, %v222_v22  ;;  %v6104_v62 = vld [vmem:[#allocation8 + $0x90] ss:$8 sps:$4 sm:$0xff]   ;;  %v6112_v41 = vld [vmem:[#allocation8 + $0xb4] ss:$8 sps:$4 sm:$0xff]   ;;  %v6125_v22 = vld [vmem:[#allocation8 + $0x100] ss:$8 sps:$4 sm:$0xff]  }
 0x21d   :  { %4791 = vmatprep.subr.bf16.mxu0 %v6082_v34  ;;  %v5356_v34 = vcombine.high %v226_v30, %v230_v31  ;;  %v242_v42 = vld [vmem:[#allocation5 + $0x318] sm:$0xff] }
 0x21e   :  { %3816 = vmatpush1.bf16.msra.mxu1 %v5283_v37  ;;  %v238_v37 = vld [vmem:[#allocation5 + $0x2f8] sm:$0xff] }
 0x21f   :  { %3817 = vmatprep.subr.bf16.mxu1 %v5292_v39  ;;  %v6107_v39 = vld [vmem:[#allocation8 + $0xa0] ss:$8 sps:$4 sm:$0xff]   ;;  %v6118_v56 = vld [vmem:[#allocation8 + $0xd4] ss:$8 sps:$4 sm:$0xff]  }
 0x220   :  { %4792 = vmatpush1.bf16.msra.mxu0 %v6080_v38  ;;  %v5355_v38 = vcombine.low %v226_v30, %v230_v31  ;;  %v258_v58 = vld [vmem:[#allocation5 + $0x398] sm:$0xff] }
 0x221   :  { %4793 = vmatprep.subr.bf16.mxu0 %v6085_v40  ;;  %v5364_v40 = vcombine.high %v234_v36, %v238_v37  ;;  %v294_v20 = vld [vmem:[#allocation5 + $0x4b8] sm:$0xff] }
 0x222   :  { %3818 = vmatpush1.bf16.msra.mxu1 %v5291_v43  ;;  %v246_v43 = vld [vmem:[#allocation5 + $0x338] sm:$0xff] }
 0x223   :  { %3819 = vmatprep.subr.bf16.mxu1 %v5300_v45  ;;  %v6110_v45 = vld [vmem:[#allocation8 + $0xb0] ss:$8 sps:$4 sm:$0xff]  }
 0x224   :  { %4794 = vmatpush1.bf16.msra.mxu0 %v6083_v44  ;;  %v5363_v44 = vcombine.low %v234_v36, %v238_v37  ;;  %v302_v30 = vld [vmem:[#allocation5 + $0x4f8] sm:$0xff] }
 0x225   :  { %4795 = vmatprep.subr.bf16.mxu0 %v6088_v47  ;;  %v5372_v47 = vcombine.high %v242_v42, %v246_v43  ;;  %v6128_v31 = vld [vmem:[#allocation8 + $0x110] ss:$8 sps:$4 sm:$0xff]   ;;  %v6136_v36 = vld [vmem:[#allocation8 + $0x134] ss:$8 sps:$4 sm:$0xff]  }
 0x226   :  { %3820 = vmatpush1.bf16.msra.mxu1 %v5299_v17  ;;  %v254_v17 = vld [vmem:[#allocation5 + $0x378] sm:$0xff] }
 0x227   :  { %3821 = vmatprep.subr.bf16.mxu1 %v5308_v52  ;;  %v6113_v52 = vld [vmem:[#allocation8 + $0xc0] ss:$8 sps:$4 sm:$0xff]  }
 0x228   :  { %4796 = vmatpush1.bf16.msra.mxu0 %v6086_v51  ;;  %v5371_v51 = vcombine.low %v242_v42, %v246_v43 }
 0x229   :  { %4797 = vmatprep.subr.bf16.mxu0 %v6091_v55  ;;  %v5380_v55 = vcombine.high %v250_v50, %v254_v17 }
 0x22a   :  { %3822 = vmatpush1.bf16.msra.mxu1 %v5307_v57  ;;  %v262_v57 = vld [vmem:[#allocation5 + $0x3b8] sm:$0xff] }
 0x22b   :  { %3823 = vmatprep.subr.bf16.mxu1 %v5316_v24  ;;  %v6116_v24 = vld [vmem:[#allocation8 + $0xd0] ss:$8 sps:$4 sm:$0xff]  }
 0x22c   :  { %4798 = vmatpush1.bf16.msra.mxu0 %v6089_v23  ;;  %v5379_v23 = vcombine.low %v250_v50, %v254_v17 }
 0x22d   :  { %4799 = vmatprep.subr.bf16.mxu0 %v6094_v27  ;;  %v5388_v27 = vcombine.high %v258_v58, %v262_v57 }
 0x22e   :  { %3824 = vmatpush1.bf16.msra.mxu1 %v5315_v61  ;;  %v270_v61 = vld [vmem:[#allocation5 + $0x3f8] sm:$0xff] }
 0x22f   :  { %3825 = vmatprep.subr.bf16.mxu1 %v5324_v1  ;;  %v6119_v1 = vld [vmem:[#allocation8 + $0xe0] ss:$8 sps:$4 sm:$0xff]  }
 0x230   :  { %4800 = vmatpush1.bf16.msra.mxu0 %v6092_v63  ;;  %v5387_v63 = vcombine.low %v258_v58, %v262_v57 }
 0x231   :  { %4801 = vmatprep.subr.bf16.mxu0 %v6097_v2  ;;  %v5396_v2 = vcombine.high %v266_v60, %v270_v61 }
 0x232   :  { %3826 = vmatpush1.bf16.msra.mxu1 %v5323_v6  ;;  %v278_v6 = vld [vmem:[#allocation5 + $0x438] sm:$0xff] }
 0x233   :  { %3827 = vmatprep.subr.bf16.mxu1 %v5332_v8  ;;  %v6122_v8 = vld [vmem:[#allocation8 + $0xf0] ss:$8 sps:$4 sm:$0xff]  }
 0x234   :  { %4802 = vmatpush1.bf16.msra.mxu0 %v6095_v7  ;;  %v5395_v7 = vcombine.low %v266_v60, %v270_v61 }
 0x235   :  { %4803 = vmatprep.subr.bf16.mxu0 %v6100_v9  ;;  %v5404_v9 = vcombine.high %v274_v5, %v278_v6 }
 0x236   :  { %3828 = vmatpush1.bf16.msra.mxu1 %v5331_v14  ;;  %v6127_v14 = vld [vmem:[#allocation8 + $0x104] ss:$8 sps:$4 sm:$0xff]  }
 0x237   :  { %3829 = vmatprep.subr.bf16.mxu1 %v5340_v18  ;;  %v5412_v18 = vcombine.high %v282_v11, %v286_v12 }
 0x238   :  { %4804 = vmatpush1.bf16.msra.mxu0 %v6098_v16  ;;  %v5403_v16 = vcombine.low %v274_v5, %v278_v6 }
 0x239   :  { %4805 = vmatprep.subr.bf16.mxu0 %v6103_v19  ;;  %v290_v19 = vld [vmem:[#allocation5 + $0x498] sm:$0xff] }
 0x23a   :  { %3830 = vmatpush1.bf16.msra.mxu1 %v5339_v25  ;;  %v6130_v25 = vld [vmem:[#allocation8 + $0x114] ss:$8 sps:$4 sm:$0xff]  }
 0x23b   :  { %3831 = vmatprep.subr.bf16.mxu1 %v5348_v53  ;;  %v5420_v53 = vcombine.high %v290_v19, %v294_v20 }
 0x23c   :  { %4806 = vmatpush1.bf16.msra.mxu0 %v6101_v29  ;;  %v5411_v29 = vcombine.low %v282_v11, %v286_v12  ;;  %v6154_v11 = vld [vmem:[#allocation8 + $0x194] ss:$8 sps:$4 sm:$0xff]  }
 0x23d   :  { %4807 = vmatprep.subr.bf16.mxu0 %v6106_v54  ;;  %v298_v54 = vld [vmem:[#allocation5 + $0x4d8] sm:$0xff] }
 0x23e   :  { %3832 = vmatpush1.bf16.msra.mxu1 %v5347_v59  ;;  %v6133_v59 = vld [vmem:[#allocation8 + $0x124] ss:$8 sps:$4 sm:$0xff]   ;;  %v5427_v37 = vcombine.low %v298_v54, %v302_v30 }
 0x23f   :  { %3833 = vmatprep.subr.bf16.mxu1 %v5356_v34  ;;  %v5428_v34 = vcombine.high %v298_v54, %v302_v30  ;;  %v6155_v54 = vld [vmem:[#allocation8 + $0x1a0] ss:$8 sps:$4 sm:$0xff]   ;;  %v6160_v30 = vld [vmem:[#allocation8 + $0x1b4] ss:$8 sps:$4 sm:$0xff]  }
 0x240   :  { %4808 = vmatpush1.bf16.msra.mxu0 %v6104_v62  ;;  %v5419_v62 = vcombine.low %v290_v19, %v294_v20  ;;  %v6152_v19 = vld [vmem:[#allocation8 + $0x190] ss:$8 sps:$4 sm:$0xff]   ;;  %v6157_v20 = vld [vmem:[#allocation8 + $0x1a4] ss:$8 sps:$4 sm:$0xff]  }
 0x241   :  { %4809 = vmatprep.subr.bf16.mxu0 %v6109_v35  ;;  %v310_v35 = vld [vmem:[#allocation5 + $0x538] sm:$0xff] }
 0x242   :  { %3834 = vmatpush1.bf16.msra.mxu1 %v5355_v38  ;;  %v314_v38 = vld [vmem:[#allocation5 + $0x558] sm:$0xff] }
 0x243   :  { %3835 = vmatprep.subr.bf16.mxu1 %v5364_v40  ;;  %v6134_v40 = vld [vmem:[#allocation8 + $0x130] ss:$8 sps:$4 sm:$0xff]  }
 0x244   :  { %4810 = vmatpush1.bf16.msra.mxu0 %v6107_v39  ;;  %v318_v39 = vld [vmem:[#allocation5 + $0x578] sm:$0xff] }
 0x245   :  { %4811 = vmatprep.subr.bf16.mxu0 %v6112_v41  ;;  %v6139_v41 = vld [vmem:[#allocation8 + $0x144] ss:$8 sps:$4 sm:$0xff]   ;;  %v5444_v43 = vcombine.high %v314_v38, %v318_v39  ;;  %v5443_v50 = vcombine.low %v314_v38, %v318_v39  ;;  %v6161_v38 = vld [vmem:[#allocation8 + $0x1c0] ss:$8 sps:$4 sm:$0xff]   ;;  %v6166_v39 = vld [vmem:[#allocation8 + $0x1d4] ss:$8 sps:$4 sm:$0xff]  }
 0x246   :  { %3836 = vmatpush1.bf16.msra.mxu1 %v5363_v44  ;;  %v322_v44 = vld [vmem:[#allocation5 + $0x598] sm:$0xff] }
 0x247   :  { %3837 = vmatprep.subr.bf16.mxu1 %v5372_v47  ;;  %v6137_v47 = vld [vmem:[#allocation8 + $0x140] ss:$8 sps:$4 sm:$0xff]  }
 0x248   :  { %4812 = vmatpush1.bf16.msra.mxu0 %v6110_v45  ;;  %v326_v45 = vld [vmem:[#allocation5 + $0x5b8] sm:$0xff] }
 0x249   :  { %4813 = vmatprep.subr.bf16.mxu0 %v6115_v49  ;;  %v6142_v49 = vld [vmem:[#allocation8 + $0x154] ss:$8 sps:$4 sm:$0xff]   ;;  %v5452_v17 = vcombine.high %v322_v44, %v326_v45  ;;  %v5451_v58 = vcombine.low %v322_v44, %v326_v45  ;;  %v6164_v44 = vld [vmem:[#allocation8 + $0x1d0] ss:$8 sps:$4 sm:$0xff]   ;;  %v6169_v45 = vld [vmem:[#allocation8 + $0x1e4] ss:$8 sps:$4 sm:$0xff]  }
 0x24a   :  { %3838 = vmatpush1.bf16.msra.mxu1 %v5371_v51  ;;  %v330_v51 = vld [vmem:[#allocation5 + $0x5d8] sm:$0xff] }
 0x24b   :  { %3839 = vmatprep.subr.bf16.mxu1 %v5380_v55  ;;  %v6140_v55 = vld [vmem:[#allocation8 + $0x150] ss:$8 sps:$4 sm:$0xff]  }
 0x24c   :  { %4814 = vmatpush1.bf16.msra.mxu0 %v6113_v52  ;;  %v334_v52 = vld [vmem:[#allocation5 + $0x5f8] sm:$0xff] }
 0x24d   :  { %4815 = vmatprep.subr.bf16.mxu0 %v6118_v56  ;;  %v6145_v56 = vld [vmem:[#allocation8 + $0x164] ss:$8 sps:$4 sm:$0xff]   ;;  %v5460_v57 = vcombine.high %v330_v51, %v334_v52  ;;  %v5459_v60 = vcombine.low %v330_v51, %v334_v52  ;;  %v6167_v51 = vld [vmem:[#allocation8 + $0x1e0] ss:$8 sps:$4 sm:$0xff]   ;;  %v6172_v52 = vld [vmem:[#allocation8 + $0x1f4] ss:$8 sps:$4 sm:$0xff]  }
 0x24e   :  { %3840 = vmatpush1.bf16.msra.mxu1 %v5379_v23  ;;  %v338_v23 = vld [vmem:[#allocation5 + $0x618] sm:$0xff] }
 0x24f   :  { %3841 = vmatprep.subr.bf16.mxu1 %v5388_v27  ;;  %v6143_v27 = vld [vmem:[#allocation8 + $0x160] ss:$8 sps:$4 sm:$0xff]  }
 0x250   :  { %4816 = vmatpush1.bf16.msra.mxu0 %v6116_v24  ;;  %v342_v24 = vld [vmem:[#allocation5 + $0x638] sm:$0xff] }
 0x251   :  { %4817 = vmatprep.subr.bf16.mxu0 %v6121_v28  ;;  %v6148_v28 = vld [vmem:[#allocation8 + $0x174] ss:$8 sps:$4 sm:$0xff]   ;;  %v5468_v61 = vcombine.high %v338_v23, %v342_v24  ;;  %v5467_v5 = vcombine.low %v338_v23, %v342_v24  ;;  %v6170_v23 = vld [vmem:[#allocation8 + $0x1f0] ss:$8 sps:$4 sm:$0xff]   ;;  %v6175_v24 = vld [vmem:[#allocation8 + $0x204] ss:$8 sps:$4 sm:$0xff]  }
 0x252   :  { %3842 = vmatpush1.bf16.msra.mxu1 %v5387_v63  ;;  %v346_v63 = vld [vmem:[#allocation5 + $0x658] sm:$0xff] }
 0x253   :  { %3843 = vmatprep.subr.bf16.mxu1 %v5396_v2  ;;  %v6146_v2 = vld [vmem:[#allocation8 + $0x170] ss:$8 sps:$4 sm:$0xff]  }
 0x254   :  { %4818 = vmatpush1.bf16.msra.mxu0 %v6119_v1  ;;  %v350_v1 = vld [vmem:[#allocation5 + $0x678] sm:$0xff] }
 0x255   :  { %4819 = vmatprep.subr.bf16.mxu0 %v6124_v4  ;;  %v6151_v4 = vld [vmem:[#allocation8 + $0x184] ss:$8 sps:$4 sm:$0xff]   ;;  %v5476_v6 = vcombine.high %v346_v63, %v350_v1  ;;  %v5475_v12 = vcombine.low %v346_v63, %v350_v1 }
 0x256   :  { %3844 = vmatpush1.bf16.msra.mxu1 %v5395_v7  ;;  %v354_v7 = vld [vmem:[#allocation5 + $0x698] sm:$0xff] }
 0x257   :  { %3856 = vmatprep.subr.bf16.mxu1 %v5404_v9  ;;  %v6149_v9 = vld [vmem:[#allocation8 + $0x180] ss:$8 sps:$4 sm:$0xff]  }
 0x258   :  { %4820 = vmatpush1.bf16.msra.mxu0 %v6122_v8  ;;  %v358_v8 = vld [vmem:[#allocation5 + $0x6b8] sm:$0xff] }
 0x259   :  { %4832 = vmatprep.subr.bf16.mxu0 %v6127_v14  ;;  %3846 = vmatmul.mubr.bf16.vlgmr.msra.gmra.mrb[8].mxu1 %v6706_v21  ;;  %v306_v21 = vld [vmem:[#allocation5 + $0x518] sm:$0xff]  ;;  %v5484_v14 = vcombine.high %v354_v7, %v358_v8 }
 0x25a   :  { %3857 = vmatpush1.bf16.msra.mxu1 %v5403_v16  ;;  %3888 = vmatprep.mubr.bf16.mxu1 %v6722_v32  ;;  %v5436_v32 = vcombine.high %v306_v21, %v310_v35  ;;  %v5435_v42 = vcombine.low %v306_v21, %v310_v35  ;;  %v362_v16 = vld [vmem:[#allocation5 + $0x6d8] sm:$0xff]  ;;  %v6163_v35 = vld [vmem:[#allocation8 + $0x1c4] ss:$8 sps:$4 sm:$0xff]  }
 0x25b   :  { %4822 = vmatmul.mubr.bf16.vlgmr.msra.gmra.mrb[8].mxu0 %v6764_v13  ;;  %3858 = vmatprep.subr.bf16.mxu1 %v5412_v18  ;;  %v6131_v13 = vld [vmem:[#allocation8 + $0x120] ss:$8 sps:$4 sm:$0xff]   ;;  %v366_v18 = vld [vmem:[#allocation5 + $0x6f8] sm:$0xff] }
 0x25c   :  { %4833 = vmatpush1.bf16.msra.mxu0 %v6125_v22  ;;  %v5483_v22 = vcombine.low %v354_v7, %v358_v8  ;;  %v6158_v21 = vld [vmem:[#allocation8 + $0x1b0] ss:$8 sps:$4 sm:$0xff]  }
 0x25d   :  { %4834 = vmatprep.subr.bf16.mxu0 %v6130_v25  ;;  %v5492_v25 = vcombine.high %v362_v16, %v366_v18  ;;  %v434_v7 = vld [vmem:[#allocation5 + $0x918] sm:$0xff] }
 0x25e   :  { %3859 = vmatpush1.bf16.msra.mxu1 %v5411_v29  ;;  %v370_v29 = vld [vmem:[#allocation5 + $0x718] sm:$0xff] }
 0x25f   :  { %3860 = vmatprep.subr.bf16.mxu1 %v5420_v53  ;;  %v374_v53 = vld [vmem:[#allocation5 + $0x738] sm:$0xff] }
 0x260   :  { %4835 = vmatpush1.bf16.msra.mxu0 %v6128_v31  ;;  %v5491_v31 = vcombine.low %v362_v16, %v366_v18  ;;  %v438_v8 = vld [vmem:[#allocation5 + $0x938] sm:$0xff] }
 0x261   :  { %4836 = vmatprep.subr.bf16.mxu0 %v6133_v59  ;;  %v5500_v59 = vcombine.high %v370_v29, %v374_v53  ;;  %v450_v16 = vld [vmem:[#allocation5 + $0x998] sm:$0xff] }
 0x262   :  { %3861 = vmatpush1.bf16.msra.mxu1 %v5419_v62  ;;  %v378_v62 = vld [vmem:[#allocation5 + $0x758] sm:$0xff] }
 0x263   :  { %3862 = vmatprep.subr.bf16.mxu1 %v5428_v34  ;;  %v382_v34 = vld [vmem:[#allocation5 + $0x778] sm:$0xff] }
 0x264   :  { %4837 = vmatpush1.bf16.msra.mxu0 %v6131_v13  ;;  %v5499_v13 = vcombine.low %v370_v29, %v374_v53  ;;  %v454_v18 = vld [vmem:[#allocation5 + $0x9b8] sm:$0xff] }
 0x265   :  { %4838 = vmatprep.subr.bf16.mxu0 %v6136_v36  ;;  %v5508_v36 = vcombine.high %v378_v62, %v382_v34  ;;  %v5579_v29 = vcombine.low %v450_v16, %v454_v18 }
 0x266   :  { %3863 = vmatpush1.bf16.msra.mxu1 %v5427_v37  ;;  %v386_v37 = vld [vmem:[#allocation5 + $0x798] sm:$0xff] }
 0x267   :  { %3864 = vmatprep.subr.bf16.mxu1 %v5436_v32  ;;  %v390_v32 = vld [vmem:[#allocation5 + $0x7b8] sm:$0xff] }
 0x268   :  { %4839 = vmatpush1.bf16.msra.mxu0 %v6134_v40  ;;  %v5507_v40 = vcombine.low %v378_v62, %v382_v34  ;;  %v474_v62 = vld [vmem:[#allocation5 + $0xa58] sm:$0xff] }
 0x269   :  { %4840 = vmatprep.subr.bf16.mxu0 %v6139_v41  ;;  %v5516_v41 = vcombine.high %v386_v37, %v390_v32  ;;  %v478_v34 = vld [vmem:[#allocation5 + $0xa78] sm:$0xff] }
 0x26a   :  { %3865 = vmatpush1.bf16.msra.mxu1 %v5435_v42  ;;  %v394_v42 = vld [vmem:[#allocation5 + $0x7d8] sm:$0xff] }
 0x26b   :  { %3866 = vmatprep.subr.bf16.mxu1 %v5444_v43  ;;  %v398_v43 = vld [vmem:[#allocation5 + $0x7f8] sm:$0xff] }
 0x26c   :  { %4841 = vmatpush1.bf16.msra.mxu0 %v6137_v47  ;;  %v5515_v47 = vcombine.low %v386_v37, %v390_v32  ;;  %v5603_v37 = vcombine.low %v474_v62, %v478_v34 }
 0x26d   :  { %4842 = vmatprep.subr.bf16.mxu0 %v6142_v49  ;;  %v5524_v49 = vcombine.high %v394_v42, %v398_v43 }
 0x26e   :  { %3867 = vmatpush1.bf16.msra.mxu1 %v5443_v50  ;;  %v402_v50 = vld [vmem:[#allocation5 + $0x818] sm:$0xff] }
 0x26f   :  { %3868 = vmatprep.subr.bf16.mxu1 %v5452_v17  ;;  %v406_v17 = vld [vmem:[#allocation5 + $0x838] sm:$0xff] }
 0x270   :  { %4843 = vmatpush1.bf16.msra.mxu0 %v6140_v55  ;;  %v5523_v55 = vcombine.low %v394_v42, %v398_v43  ;;  %v498_v42 = vld [vmem:[#allocation5 + $0xb18] sm:$0xff] }
 0x271   :  { %4844 = vmatprep.subr.bf16.mxu0 %v6145_v56  ;;  %v5532_v56 = vcombine.high %v402_v50, %v406_v17  ;;  %v502_v43 = vld [vmem:[#allocation5 + $0xb38] sm:$0xff] }
 0x272   :  { %3869 = vmatpush1.bf16.msra.mxu1 %v5451_v58  ;;  %v410_v58 = vld [vmem:[#allocation5 + $0x858] sm:$0xff] }
 0x273   :  { %3870 = vmatprep.subr.bf16.mxu1 %v5460_v57  ;;  %v414_v57 = vld [vmem:[#allocation5 + $0x878] sm:$0xff] }
 0x274   :  { %4845 = vmatpush1.bf16.msra.mxu0 %v6143_v27  ;;  %v5531_v27 = vcombine.low %v402_v50, %v406_v17  ;;  %v5539_v63 = vcombine.low %v410_v58, %v414_v57  ;;  %v5627_v50 = vcombine.low %v498_v42, %v502_v43 }
 0x275   :  { %4846 = vmatprep.subr.bf16.mxu0 %v6148_v28  ;;  %v5540_v28 = vcombine.high %v410_v58, %v414_v57  ;;  %v522_v58 = vld [vmem:[#allocation5 + $0xbd8] sm:$0xff] }
 0x276   :  { %3871 = vmatpush1.bf16.msra.mxu1 %v5459_v60  ;;  %v418_v60 = vld [vmem:[#allocation5 + $0x898] sm:$0xff] }
 0x277   :  { %3872 = vmatprep.subr.bf16.mxu1 %v5468_v61  ;;  %v422_v61 = vld [vmem:[#allocation5 + $0x8b8] sm:$0xff] }
 0x278   :  { %4847 = vmatpush1.bf16.msra.mxu0 %v6146_v2  ;;  %v5548_v1 = vcombine.high %v418_v60, %v422_v61  ;;  %v426_v2 = vld [vmem:[#allocation5 + $0x8d8] sm:$0xff] }
 0x279   :  { %4848 = vmatprep.subr.bf16.mxu0 %v6151_v4  ;;  %v430_v4 = vld [vmem:[#allocation5 + $0x8f8] sm:$0xff] }
 0x27a   :  { %3873 = vmatpush1.bf16.msra.mxu1 %v5467_v5  ;;  %v5547_v5 = vcombine.low %v418_v60, %v422_v61  ;;  %v526_v57 = vld [vmem:[#allocation5 + $0xbf8] sm:$0xff] }
 0x27b   :  { %3874 = vmatprep.subr.bf16.mxu1 %v5476_v6  ;;  %v5556_v6 = vcombine.high %v426_v2, %v430_v4  ;;  %v5651_v60 = vcombine.low %v522_v58, %v526_v57 }
 0x27c   :  { %4849 = vmatpush1.bf16.msra.mxu0 %v6149_v9  ;;  %v5555_v9 = vcombine.low %v426_v2, %v430_v4 }
 0x27d   :  { %4850 = vmatprep.subr.bf16.mxu0 %v6154_v11  ;;  %v5564_v11 = vcombine.high %v434_v7, %v438_v8 }
 0x27e   :  { %3875 = vmatpush1.bf16.msra.mxu1 %v5475_v12  ;;  %v446_v12 = vld [vmem:[#allocation5 + $0x978] sm:$0xff] }
 0x27f   :  { %3876 = vmatprep.subr.bf16.mxu1 %v5484_v14  ;;  %v5563_v14 = vcombine.low %v434_v7, %v438_v8 }
 0x280   :  { %4851 = vmatpush1.bf16.msra.mxu0 %v6152_v19 }
 0x281   :  { %4852 = vmatprep.subr.bf16.mxu0 %v6157_v20  ;;  %v5580_v20 = vcombine.high %v450_v16, %v454_v18 }
 0x282   :  { %3877 = vmatpush1.bf16.msra.mxu1 %v5483_v22  ;;  %v458_v22 = vld [vmem:[#allocation5 + $0x9d8] sm:$0xff] }
 0x283   :  { %3878 = vmatprep.subr.bf16.mxu1 %v5492_v25  ;;  %v462_v25 = vld [vmem:[#allocation5 + $0x9f8] sm:$0xff] }
 0x284   :  { %4853 = vmatpush1.bf16.msra.mxu0 %v6155_v54  ;;  %v5588_v53 = vcombine.high %v458_v22, %v462_v25  ;;  %v466_v54 = vld [vmem:[#allocation5 + $0xa18] sm:$0xff] }
 0x285   :  { %4854 = vmatprep.subr.bf16.mxu0 %v6160_v30  ;;  %v470_v30 = vld [vmem:[#allocation5 + $0xa38] sm:$0xff] }
 0x286   :  { %3879 = vmatpush1.bf16.msra.mxu1 %v5491_v31  ;;  %v5587_v31 = vcombine.low %v458_v22, %v462_v25  ;;  %v675_v22 = vsub.s32 4, %v6756_v3  ;;  %v671_v25 = vsub.s32 3, %v6756_v3 }
 0x287   :  { %3880 = vmatprep.subr.bf16.mxu1 %v5500_v59  ;;  %v5596_v59 = vcombine.high %v466_v54, %v470_v30 }
 0x288   :  { %4855 = vmatpush1.bf16.msra.mxu0 %v6158_v21  ;;  %v5595_v21 = vcombine.low %v466_v54, %v470_v30  ;;  %v578_v54 = vld [vmem:[#allocation5 + $0xd98] sm:$0xff] }
 0x289   :  { %4856 = vmatprep.subr.bf16.mxu0 %v6163_v35  ;;  %v5604_v35 = vcombine.high %v474_v62, %v478_v34  ;;  %v582_v30 = vld [vmem:[#allocation5 + $0xdb8] sm:$0xff] }
 0x28a   :  { %3881 = vmatpush1.bf16.msra.mxu1 %v5499_v13  ;;  %v482_v13 = vld [vmem:[#allocation5 + $0xa98] sm:$0xff] }
 0x28b   :  { %3882 = vmatprep.subr.bf16.mxu1 %v5508_v36  ;;  %v486_v36 = vld [vmem:[#allocation5 + $0xab8] sm:$0xff] }
 0x28c   :  { %4857 = vmatpush1.bf16.msra.mxu0 %v6161_v38  ;;  %v5612_v32 = vcombine.high %v482_v13, %v486_v36  ;;  %v490_v38 = vld [vmem:[#allocation5 + $0xad8] sm:$0xff] }
 0x28d   :  { %4858 = vmatprep.subr.bf16.mxu0 %v6166_v39  ;;  %v494_v39 = vld [vmem:[#allocation5 + $0xaf8] sm:$0xff] }
 0x28e   :  { %3883 = vmatpush1.bf16.msra.mxu1 %v5507_v40  ;;  %v5611_v40 = vcombine.low %v482_v13, %v486_v36  ;;  %v5708_v13 = vcombine.high %v578_v54, %v582_v30 }
 0x28f   :  { %3884 = vmatprep.subr.bf16.mxu1 %v5516_v41  ;;  %v5620_v41 = vcombine.high %v490_v38, %v494_v39 }
 0x290   :  { %4859 = vmatpush1.bf16.msra.mxu0 %v6164_v44  ;;  %v5619_v44 = vcombine.low %v490_v38, %v494_v39 }
 0x291   :  { %4860 = vmatprep.subr.bf16.mxu0 %v6169_v45  ;;  %v5628_v45 = vcombine.high %v498_v42, %v502_v43 }
 0x292   :  { %3885 = vmatpush1.bf16.msra.mxu1 %v5515_v47  ;;  %v506_v47 = vld [vmem:[#allocation5 + $0xb58] sm:$0xff] }
 0x293   :  { %3886 = vmatprep.subr.bf16.mxu1 %v5524_v49  ;;  %v510_v49 = vld [vmem:[#allocation5 + $0xb78] sm:$0xff] }
 0x294   :  { %4861 = vmatpush1.bf16.msra.mxu0 %v6167_v51  ;;  %v5636_v17 = vcombine.high %v506_v47, %v510_v49  ;;  %v514_v51 = vld [vmem:[#allocation5 + $0xb98] sm:$0xff] }
 0x295   :  { %4862 = vmatprep.subr.bf16.mxu0 %v6172_v52  ;;  %v518_v52 = vld [vmem:[#allocation5 + $0xbb8] sm:$0xff] }
 0x296   :  { %3887 = vmatpush1.bf16.msra.mxu1 %v5523_v55  ;;  %v5635_v55 = vcombine.low %v506_v47, %v510_v49 }
 0x297   :  { %3899 = vmatprep.subr.bf16.mxu1 %v5532_v56  ;;  %v5644_v56 = vcombine.high %v514_v51, %v518_v52 }
 0x298   :  { %4863 = vmatpush1.bf16.msra.mxu0 %v6170_v23  ;;  %v5643_v23 = vcombine.low %v514_v51, %v518_v52 }
 0x299   :  { %3889 = vmatmul.mubr.bf16.vlgmr.msra.gmra.mrb[8].mxu1 %v6734_v46  ;;  %4875 = vmatprep.subr.bf16.mxu0 %v6175_v24  ;;  %v442_v46 = vld [vmem:[#allocation5 + $0x958] sm:$0xff]  ;;  %v5652_v24 = vcombine.high %v522_v58, %v526_v57 }
 0x29a   :  { %3900 = vmatpush1.bf16.msra.mxu1 %v5531_v27  ;;  %3931 = vmatprep.mubr.bf16.mxu1 %v6701_v0  ;;  %v5572_v0 = vcombine.high %v442_v46, %v446_v12  ;;  %v5571_v19 = vcombine.low %v442_v46, %v446_v12  ;;  %v530_v27 = vld [vmem:[#allocation5 + $0xc18] sm:$0xff] }
 0x29b   :  { %3901 = vmatprep.subr.bf16.mxu1 %v5540_v28  ;;  %v534_v28 = vld [vmem:[#allocation5 + $0xc38] sm:$0xff] }
 0x29c   :  { %v5660_v61 = vcombine.high %v530_v27, %v534_v28  ;;  %v5659_v2 = vcombine.low %v530_v27, %v534_v28  ;;  %v594_v57 = vld [vmem:[#allocation5 + $0xe18] sm:$0xff] }
 0x29e   :  { %3902 = vmatpush1.bf16.msra.mxu1 %v5539_v63  ;;  %v538_v63 = vld [vmem:[#allocation5 + $0xc58] sm:$0xff] }
 0x29f   :  { %3903 = vmatprep.subr.bf16.mxu1 %v5548_v1  ;;  %v542_v1 = vld [vmem:[#allocation5 + $0xc78] sm:$0xff] }
 0x2a0   :  { %v5668_v4 = vcombine.high %v538_v63, %v542_v1  ;;  %v5667_v7 = vcombine.low %v538_v63, %v542_v1 }
 0x2a2   :  { %3904 = vmatpush1.bf16.msra.mxu1 %v5547_v5  ;;  %v546_v5 = vld [vmem:[#allocation5 + $0xc98] sm:$0xff] }
 0x2a3   :  { %3905 = vmatprep.subr.bf16.mxu1 %v5556_v6  ;;  %v550_v6 = vld [vmem:[#allocation5 + $0xcb8] sm:$0xff] }
 0x2a4   :  { %v5676_v8 = vcombine.high %v546_v5, %v550_v6  ;;  %v5675_v46 = vcombine.low %v546_v5, %v550_v6 }
 0x2a6   :  { %3906 = vmatpush1.bf16.msra.mxu1 %v5555_v9  ;;  %v554_v9 = vld [vmem:[#allocation5 + $0xcd8] sm:$0xff] }
 0x2a7   :  { %3907 = vmatprep.subr.bf16.mxu1 %v5564_v11  ;;  %v558_v11 = vld [vmem:[#allocation5 + $0xcf8] sm:$0xff] }
 0x2a8   :  { %v5684_v12 = vcombine.high %v554_v9, %v558_v11  ;;  %v5683_v16 = vcombine.low %v554_v9, %v558_v11  ;;  %v6173_v9 = vld [vmem:[#allocation8 + $0x200] ss:$8 sps:$4 sm:$0xff]   ;;  %v602_v11 = vld [vmem:[#allocation5 + $0xe58] sm:$0xff] }
 0x2aa   :  { %3908 = vmatpush1.bf16.msra.mxu1 %v5563_v14  ;;  %v562_v14 = vld [vmem:[#allocation5 + $0xd18] sm:$0xff] }
 0x2ab   :  { %3909 = vmatprep.subr.bf16.mxu1 %v5572_v0  ;;  %v566_v0 = vld [vmem:[#allocation5 + $0xd38] sm:$0xff] }
 0x2ac   :  { %v5692_v18 = vcombine.high %v562_v14, %v566_v0 }
 0x2ae   :  { %3910 = vmatpush1.bf16.msra.mxu1 %v5571_v19  ;;  %v570_v19 = vld [vmem:[#allocation5 + $0xd58] sm:$0xff] }
 0x2af   :  { %3911 = vmatprep.subr.bf16.mxu1 %v5580_v20  ;;  %v667_v20 = vsub.s32 2, %v6756_v3 }
 0x2b2   :  { %3912 = vmatpush1.bf16.msra.mxu1 %v5579_v29  ;;  %v679_v29 = vsub.s32 5, %v6756_v3 }
 0x2b3   :  { %3913 = vmatprep.subr.bf16.mxu1 %v5588_v53 }
 0x2b6   :  { %3914 = vmatpush1.bf16.msra.mxu1 %v5587_v31  ;;  %v6783_v31 = vld [vmem:[#allocation7] sm:$0xff] }
 0x2b7   :  { %3915 = vmatprep.subr.bf16.mxu1 %v5596_v59  ;;  %v668_v59 = vrot.slane %v6783_v31, %v667_v20  ;;  %v676_v62 = vrot.slane %v6783_v31, %v675_v22  ;;  %v672_v34 = vrot.slane %v6783_v31, %v671_v25  ;;  %v6181_v20 = vld [vmem:[#allocation8 + $0x224] ss:$8 sps:$4 sm:$0xff]   ;;  %v6179_v25 = vld [vmem:[#allocation8 + $0x220] ss:$8 sps:$4 sm:$0xff]  }
 0x2ba   :  { %3916 = vmatpush1.bf16.msra.mxu1 %v5595_v21 }
 0x2bb   :  { %3917 = vmatprep.subr.bf16.mxu1 %v5604_v35  ;;  %v680_v35 = vrot.slane %v6783_v31, %v679_v29  ;;  %v618_v29 = vld [vmem:[#allocation5 + $0xed8] sm:$0xff] }
 0x2be   :  { %3918 = vmatpush1.bf16.msra.mxu1 %v5603_v37  ;;  %v586_v37 = vld [vmem:[#allocation5 + $0xdd8] sm:$0xff] }
 0x2bf   :  { %3919 = vmatprep.subr.bf16.mxu1 %v5612_v32  ;;  %v590_v32 = vld [vmem:[#allocation5 + $0xdf8] sm:$0xff] }
 0x2c0   :  { %v5716_v51 = vcombine.high %v586_v37, %v590_v32 }
 0x2c2   :  { %3920 = vmatpush1.bf16.msra.mxu1 %v5611_v40 }
 0x2c3   :  { %3921 = vmatprep.subr.bf16.mxu1 %v5620_v41 }
 0x2c6   :  { %3922 = vmatpush1.bf16.msra.mxu1 %v5619_v44 }
 0x2c7   :  { %3923 = vmatprep.subr.bf16.mxu1 %v5628_v45  ;;  %v5707_v45 = vcombine.low %v578_v54, %v582_v30  ;;  %v6184_v54 = vld [vmem:[#allocation8 + $0x234] ss:$8 sps:$4 sm:$0xff]  }
 0x2ca   :  { %3924 = vmatpush1.bf16.msra.mxu1 %v5627_v50 }
 0x2cb   :  { %3925 = vmatprep.subr.bf16.mxu1 %v5636_v17 }
 0x2ce   :  { %3926 = vmatpush1.bf16.msra.mxu1 %v5635_v55 }
 0x2cf   :  { %3927 = vmatprep.subr.bf16.mxu1 %v5644_v56 }
 0x2d2   :  { %3928 = vmatpush1.bf16.msra.mxu1 %v5643_v23  ;;  %v598_v23 = vld [vmem:[#allocation5 + $0xe38] sm:$0xff] }
 0x2d3   :  { %3929 = vmatprep.subr.bf16.mxu1 %v5652_v24  ;;  %v5724_v6 = vcombine.high %v594_v57, %v598_v23 }
 0x2d6   :  { %3930 = vmatpush1.bf16.msra.mxu1 %v5651_v60 }
 0x2d7   :  { %3942 = vmatprep.subr.bf16.mxu1 %v5660_v61 }
 0x2d9   :  { %3932 = vmatmul.mubr.bf16.vlgmr.msra.gmra.mrb[8].mxu1 %v6714_v26  ;;  %v574_v26 = vld [vmem:[#allocation5 + $0xd78] sm:$0xff] }
 0x2da   :  { %3943 = vmatpush1.bf16.msra.mxu1 %v5659_v2  ;;  %3974 = vmatprep.mubr.bf16.mxu1 %v6727_v33  ;;  %v5691_v33 = vcombine.low %v562_v14, %v566_v0  ;;  %v5700_v53 = vcombine.high %v570_v19, %v574_v26  ;;  %v5699_v21 = vcombine.low %v570_v19, %v574_v26  ;;  %v6178_v14 = vld [vmem:[#allocation8 + $0x214] ss:$8 sps:$4 sm:$0xff]  }
 0x2db   :  { %3944 = vmatprep.subr.bf16.mxu1 %v5668_v4  ;;  %v5715_v2 = vcombine.low %v586_v37, %v590_v32  ;;  %v5723_v0 = vcombine.low %v594_v57, %v598_v23  ;;  %v610_v19 = vld [vmem:[#allocation5 + $0xe98] sm:$0xff]  ;;  %v6185_v37 = vld [vmem:[#allocation8 + $0x240] ss:$8 sps:$4 sm:$0xff]   ;;  %v6199_v57 = vld [vmem:[#allocation8 + $0x284] ss:$8 sps:$4 sm:$0xff]  }
 0x2dc   :  { %v614_v26 = vld [vmem:[#allocation5 + $0xeb8] sm:$0xff] }
 0x2dd   :  { %v5740_v22 = vcombine.high %v610_v19, %v614_v26  ;;  %v5739_v30 = vcombine.low %v610_v19, %v614_v26  ;;  %v634_v32 = vld [vmem:[#allocation5 + $0xf58] sm:$0xff] }
 0x2de   :  { %3945 = vmatpush1.bf16.msra.mxu1 %v5667_v7  ;;  %v6232_v19 = vld [vmem:[#allocation8 + $0x334] ss:$8 sps:$4 sm:$0xff]   ;;  %v6230_v26 = vld [vmem:[#allocation8 + $0x330] ss:$8 sps:$4 sm:$0xff]  }
 0x2df   :  { %3946 = vmatprep.subr.bf16.mxu1 %v5676_v8 }
 0x2e2   :  { %3947 = vmatpush1.bf16.msra.mxu1 %v5675_v46  ;;  %v606_v46 = vld [vmem:[#allocation5 + $0xe78] sm:$0xff] }
 0x2e3   :  { %3948 = vmatprep.subr.bf16.mxu1 %v5684_v12 }
 0x2e6   :  { %3949 = vmatpush1.bf16.msra.mxu1 %v5683_v16  ;;  %v5732_v16 = vcombine.high %v602_v11, %v606_v46 }
 0x2e7   :  { %3950 = vmatprep.subr.bf16.mxu1 %v5692_v18  ;;  %v6176_v18 = vld [vmem:[#allocation8 + $0x210] ss:$8 sps:$4 sm:$0xff]  }
 0x2ea   :  { %3951 = vmatpush1.bf16.msra.mxu1 %v5691_v33  ;;  %v5731_v33 = vcombine.low %v602_v11, %v606_v46  ;;  %v6218_v11 = vld [vmem:[#allocation8 + $0x2f0] ss:$8 sps:$4 sm:$0xff]   ;;  %v6223_v46 = vld [vmem:[#allocation8 + $0x304] ss:$8 sps:$4 sm:$0xff]  }
 0x2eb   :  { %3952 = vmatprep.subr.bf16.mxu1 %v5700_v53  ;;  %v622_v53 = vld [vmem:[#allocation5 + $0xef8] sm:$0xff] }
 0x2ec   :  { %v3632_v36 = vpop.f32.mrb[4].mxu1 }
 0x2ed   :  { %v5988_v38 = vadd.f32 %v3632_v36, %v668_v59  ;;  %v3634_v40 = vpop.f32.mrb[5].mxu1 }
 0x2ee   :  { %v3804_v39 = vpop.f32.mrb[4].mxu0  ;;  %v5989_v42 = vadd.f32 %v3634_v40, %v672_v34  ;;  %v3636_v44 = vpop.f32.mrb[6].mxu1  ;;  %3953 = vmatpush1.bf16.msra.mxu1 %v5699_v21  ;;  %v630_v21 = vld [vmem:[#allocation5 + $0xf38] sm:$0xff] }
 0x2ef   :  { %v5992_v41 = vadd.f32 %v3804_v39, %v676_v62  ;;  %v3806_v43 = vpop.f32.mrb[5].mxu0  ;;  %v5990_v49 = vadd.f32 %v3636_v44, %v668_v59  ;;  %v3638_v17 = vpop.f32.mrb[7].mxu1  ;;  %3954 = vmatprep.subr.bf16.mxu1 %v5708_v13  ;;  %v3987_v24 = vmax.f32 %v5988_v38, 0.0  ;;  %v5748_v59 = vcombine.high %v618_v29, %v622_v53  ;;  %v638_v38 = vld [vmem:[#allocation5 + $0xf78] sm:$0xff] }
 0x2f0   :  { %v5993_v47 = vadd.f32 %v3806_v43, %v680_v35  ;;  %v3808_v50 = vpop.f32.mrb[6].mxu0  ;;  %v5991_v56 = vadd.f32 %v3638_v17, %v672_v34  ;;  %v3988_v61 = vmax.f32 %v5989_v42, 0.0  ;;  %v626_v34 = vld [vmem:[#allocation5 + $0xf18] sm:$0xff]  ;;  %v5747_v13 = vcombine.low %v618_v29, %v622_v53  ;;  %v6239_v29 = vld [vmem:[#allocation8 + $0x360] ss:$8 sps:$4 sm:$0xff]  }
 0x2f1   :  { %v3989_v52 = vmax.f32 %v5992_v41, 0.0  ;;  %v5994_v55 = vadd.f32 %v3808_v50, %v676_v62  ;;  %v3810_v58 = vpop.f32.mrb[7].mxu0  ;;  %v3995_v28 = vmax.f32 %v5990_v49, 0.0  ;;  %v6182_v62 = vld [vmem:[#allocation8 + $0x230] ss:$8 sps:$4 sm:$0xff]   ;;  %v5756_v36 = vcombine.high %v626_v34, %v630_v21 }
 0x2f2   :  { %v3990_v27 = vmax.f32 %v5993_v47, 0.0  ;;  %v5995_v60 = vadd.f32 %v3810_v58, %v680_v35  ;;  %v3996_v1 = vmax.f32 %v5991_v56, 0.0  ;;  %3955 = vmatpush1.bf16.msra.mxu1 %v5707_v45  ;;  %v6187_v35 = vld [vmem:[#allocation8 + $0x244] ss:$8 sps:$4 sm:$0xff]   ;;  %v6190_v39 = vld [vmem:[#allocation8 + $0x254] ss:$8 sps:$4 sm:$0xff]   ;;  %v5755_v40 = vcombine.low %v626_v34, %v630_v21 }
 0x2f3   :  { %v3997_v63 = vmax.f32 %v5994_v55, 0.0  ;;  %v4003_v4 = vpack.c.bf16 %v3995_v28, %v3987_v24  ;;  %3956 = vmatprep.subr.bf16.mxu1 %v5716_v51  ;;  %v5764_v41 = vcombine.high %v634_v32, %v638_v38  ;;  %v6188_v42 = vld [vmem:[#allocation8 + $0x250] ss:$8 sps:$4 sm:$0xff]   ;;  %v6193_v45 = vld [vmem:[#allocation8 + $0x264] ss:$8 sps:$4 sm:$0xff]   ;;  %v5763_v47 = vcombine.low %v634_v32, %v638_v38 }
 0x2f4   :  { %v3998_v5 = vmax.f32 %v5995_v60, 0.0  ;;  %v4004_v8 = vpack.c.bf16 %v3996_v1, %v3988_v61  ;;  %v642_v43 = vld [vmem:[#allocation5 + $0xf98] sm:$0xff]  ;;  %v6191_v50 = vld [vmem:[#allocation8 + $0x260] ss:$8 sps:$4 sm:$0xff]   ;;  %v6205_v60 = vld [vmem:[#allocation8 + $0x2a4] ss:$8 sps:$4 sm:$0xff]  }
 0x2f5   :  { %v6789_v7 = vpack.c.bf16 %v3997_v63, %v3989_v52  ;;  %v646_v44 = vld [vmem:[#allocation5 + $0xfb8] sm:$0xff]  ;;  %v6197_v24 = vld [vmem:[#allocation8 + $0x280] ss:$8 sps:$4 sm:$0xff]   ;;  %v6253_v21 = vld [vmem:[#allocation8 + $0x3a4] ss:$8 sps:$4 sm:$0xff]  }
 0x2f6   :  { %v4006_v12 = vpack.c.bf16 %v3998_v5, %v3990_v27  ;;  %3957 = vmatpush1.bf16.msra.mxu1 %v5715_v2  ;;  %4864 = vmatprep.mubr.bf16.mxu0 %v4004_v8  ;;  %v5772_v49 = vcombine.high %v642_v43, %v646_v44  ;;  %v650_v17 = vld [vmem:[#allocation5 + $0xfd8] sm:$0xff]  ;;  %v5771_v55 = vcombine.low %v642_v43, %v646_v44  ;;  %v6203_v61 = vld [vmem:[#allocation8 + $0x2a0] ss:$8 sps:$4 sm:$0xff]   ;;  %v6211_v2 = vld [vmem:[#allocation8 + $0x2c4] ss:$8 sps:$4 sm:$0xff]  }
 0x2f7   :  { %4865 = vmatmul.mubr.bf16.vlgmr.msra.gmra.mrb[8].mxu0 %v4003_v4  ;;  %3958 = vmatprep.subr.bf16.mxu1 %v5724_v6  ;;  %v654_v51 = vld [vmem:[#allocation5 + $0xff8] sm:$0xff]  ;;  %v6209_v4 = vld [vmem:[#allocation8 + $0x2c0] ss:$8 sps:$4 sm:$0xff]   ;;  %v6217_v8 = vld [vmem:[#allocation8 + $0x2e4] ss:$8 sps:$4 sm:$0xff]  }
 0x2f8   :  { %4876 = vmatpush1.bf16.msra.mxu0 %v6173_v9  ;;  %4907 = vmatprep.mubr.bf16.mxu0 %v4006_v12  ;;  %v6196_v52 = vld [vmem:[#allocation8 + $0x274] ss:$8 sps:$4 sm:$0xff]   ;;  %v5780_v56 = vcombine.high %v650_v17, %v654_v51  ;;  %v6194_v58 = vld [vmem:[#allocation8 + $0x270] ss:$8 sps:$4 sm:$0xff]   ;;  %v5779_v23 = vcombine.low %v650_v17, %v654_v51  ;;  %v6221_v12 = vld [vmem:[#allocation8 + $0x300] ss:$8 sps:$4 sm:$0xff]  }
 0x2f9   :  { %4877 = vmatprep.subr.bf16.mxu0 %v6178_v14  ;;  %v6202_v27 = vld [vmem:[#allocation8 + $0x294] ss:$8 sps:$4 sm:$0xff]   ;;  %v6200_v28 = vld [vmem:[#allocation8 + $0x290] ss:$8 sps:$4 sm:$0xff]   ;;  %v6257_v32 = vld [vmem:[#allocation8 + $0x3c0] ss:$8 sps:$4 sm:$0xff]  }
 0x2fa   :  { %3959 = vmatpush1.bf16.msra.mxu1 %v5723_v0  ;;  %v6208_v63 = vld [vmem:[#allocation8 + $0x2b4] ss:$8 sps:$4 sm:$0xff]   ;;  %v6206_v1 = vld [vmem:[#allocation8 + $0x2b0] ss:$8 sps:$4 sm:$0xff]  }
 0x2fb   :  { %3960 = vmatprep.subr.bf16.mxu1 %v5732_v16  ;;  %v6214_v5 = vld [vmem:[#allocation8 + $0x2d4] ss:$8 sps:$4 sm:$0xff]   ;;  %v6212_v6 = vld [vmem:[#allocation8 + $0x2d0] ss:$8 sps:$4 sm:$0xff]   ;;  %v6229_v16 = vld [vmem:[#allocation8 + $0x324] ss:$8 sps:$4 sm:$0xff]  }
 0x2fc   :  { %4878 = vmatpush1.bf16.msra.mxu0 %v6176_v18  ;;  %v6220_v9 = vld [vmem:[#allocation8 + $0x2f4] ss:$8 sps:$4 sm:$0xff]   ;;  %v6224_v0 = vld [vmem:[#allocation8 + $0x310] ss:$8 sps:$4 sm:$0xff]   ;;  %v6227_v18 = vld [vmem:[#allocation8 + $0x320] ss:$8 sps:$4 sm:$0xff]  }
 0x2fd   :  { %4879 = vmatprep.subr.bf16.mxu0 %v6181_v20  ;;  %v6226_v14 = vld [vmem:[#allocation8 + $0x314] ss:$8 sps:$4 sm:$0xff]   ;;  %v6235_v20 = vld [vmem:[#allocation8 + $0x344] ss:$8 sps:$4 sm:$0xff]   ;;  %v6248_v34 = vld [vmem:[#allocation8 + $0x390] ss:$8 sps:$4 sm:$0xff]  }
 0x2fe   :  { %3961 = vmatpush1.bf16.msra.mxu1 %v5731_v33  ;;  %v6233_v33 = vld [vmem:[#allocation8 + $0x340] ss:$8 sps:$4 sm:$0xff]   ;;  %v6244_v53 = vld [vmem:[#allocation8 + $0x374] ss:$8 sps:$4 sm:$0xff]   ;;  %v6266_v43 = vld [vmem:[#allocation8 + $0x3f0] ss:$8 sps:$4 sm:$0xff]  }
 0x2ff   :  { %3962 = vmatprep.subr.bf16.mxu1 %v5740_v22  ;;  %v6238_v22 = vld [vmem:[#allocation8 + $0x354] ss:$8 sps:$4 sm:$0xff]  }
 0x300   :  { %4880 = vmatpush1.bf16.msra.mxu0 %v6179_v25  ;;  %v6236_v25 = vld [vmem:[#allocation8 + $0x350] ss:$8 sps:$4 sm:$0xff]   ;;  %v6262_v38 = vld [vmem:[#allocation8 + $0x3d4] ss:$8 sps:$4 sm:$0xff]  }
 0x301   :  { %4881 = vmatprep.subr.bf16.mxu0 %v6184_v54  ;;  %v6242_v54 = vld [vmem:[#allocation8 + $0x370] ss:$8 sps:$4 sm:$0xff]  }
 0x302   :  { %3963 = vmatpush1.bf16.msra.mxu1 %v5739_v30  ;;  %v6247_v30 = vld [vmem:[#allocation8 + $0x384] ss:$8 sps:$4 sm:$0xff]   ;;  %v6269_v44 = vld [vmem:[%s6869_s5 + $0x40] sm:$0xff]  }
 0x303   :  { %3964 = vmatprep.subr.bf16.mxu1 %v5748_v59  ;;  %v6245_v59 = vld [vmem:[#allocation8 + $0x380] ss:$8 sps:$4 sm:$0xff]  }
 0x304   :  { %4882 = vmatpush1.bf16.msra.mxu0 %v6182_v62  ;;  %v6250_v62 = vld [vmem:[#allocation8 + $0x394] ss:$8 sps:$4 sm:$0xff]  }
 0x305   :  { %4883 = vmatprep.subr.bf16.mxu0 %v6187_v35  ;;  %v6251_v35 = vld [vmem:[#allocation8 + $0x3a0] ss:$8 sps:$4 sm:$0xff]  }
 0x306   :  { %3965 = vmatpush1.bf16.msra.mxu1 %v5747_v13  ;;  %v6256_v13 = vld [vmem:[#allocation8 + $0x3b4] ss:$8 sps:$4 sm:$0xff]  }
 0x307   :  { %3966 = vmatprep.subr.bf16.mxu1 %v5756_v36  ;;  %v6254_v36 = vld [vmem:[#allocation8 + $0x3b0] ss:$8 sps:$4 sm:$0xff]  }
 0x308   :  { %4884 = vmatpush1.bf16.msra.mxu0 %v6185_v37  ;;  %v6259_v37 = vld [vmem:[#allocation8 + $0x3c4] ss:$8 sps:$4 sm:$0xff]  }
 0x309   :  { %4885 = vmatprep.subr.bf16.mxu0 %v6190_v39  ;;  %v6260_v39 = vld [vmem:[#allocation8 + $0x3d0] ss:$8 sps:$4 sm:$0xff]  }
 0x30a   :  { %3967 = vmatpush1.bf16.msra.mxu1 %v5755_v40  ;;  %v6265_v40 = vld [vmem:[#allocation8 + $0x3e4] ss:$8 sps:$4 sm:$0xff]  }
 0x30b   :  { %3968 = vmatprep.subr.bf16.mxu1 %v5764_v41  ;;  %v6263_v41 = vld [vmem:[#allocation8 + $0x3e0] ss:$8 sps:$4 sm:$0xff]  }
 0x30c   :  { %4886 = vmatpush1.bf16.msra.mxu0 %v6188_v42  ;;  %v6268_v42 = vld [vmem:[#allocation8 + $0x3f4] ss:$8 sps:$4 sm:$0xff]  }
 0x30d   :  { %4887 = vmatprep.subr.bf16.mxu0 %v6193_v45  ;;  %v683_v45 = vsub.s32 6, %v6756_v3 }
 0x30e   :  { %3969 = vmatpush1.bf16.msra.mxu1 %v5763_v47  ;;  %v687_v47 = vsub.s32 7, %v6756_v3  ;;  %v6287_v3 = vld [vmem:[#allocation13 + $0x10] sm:$0xff]  }
 0x30f   :  { %3970 = vmatprep.subr.bf16.mxu1 %v5772_v49  ;;  %v684_v49 = vrot.slane %v6783_v31, %v683_v45 }
 0x310   :  { %4888 = vmatpush1.bf16.msra.mxu0 %v6191_v50  ;;  %v688_v50 = vrot.slane %v6783_v31, %v687_v47  ;;  %v6271_v31 = vld [vmem:[%s6869_s5 + $0x48] sm:$0xff]  }
 0x311   :  { %4889 = vmatprep.subr.bf16.mxu0 %v6196_v52 }
 0x312   :  { %3971 = vmatpush1.bf16.msra.mxu1 %v5771_v55 }
 0x313   :  { %3972 = vmatprep.subr.bf16.mxu1 %v5780_v56 }
 0x314   :  { %4890 = vmatpush1.bf16.msra.mxu0 %v6194_v58 }
 0x315   :  { %4891 = vmatprep.subr.bf16.mxu0 %v6199_v57 }
 0x316   :  { %3973 = vmatpush1.bf16.msra.mxu1 %v5779_v23 }
 0x318   :  { %4892 = vmatpush1.bf16.msra.mxu0 %v6197_v24 }
 0x319   :  { %3975 = vmatmul.mubr.bf16.vlgmr.msra.gmra.mrb[8].mxu1 %v6738_v48  ;;  %4893 = vmatprep.subr.bf16.mxu0 %v6202_v27  ;;  %v6215_v48 = vld [vmem:[#allocation8 + $0x2e0] ss:$8 sps:$4 sm:$0xff]  }
 0x31c   :  { %4894 = vmatpush1.bf16.msra.mxu0 %v6200_v28 }
 0x31d   :  { %4895 = vmatprep.subr.bf16.mxu0 %v6205_v60 }
 0x320   :  { %4896 = vmatpush1.bf16.msra.mxu0 %v6203_v61 }
 0x321   :  { %4897 = vmatprep.subr.bf16.mxu0 %v6208_v63 }
 0x324   :  { %4898 = vmatpush1.bf16.msra.mxu0 %v6206_v1  ;;  %v6270_v1 = vld [vmem:[%s6869_s5] sm:$0xff]  }
 0x325   :  { %4899 = vmatprep.subr.bf16.mxu0 %v6211_v2  ;;  %v6272_v2 = vld [vmem:[%s6869_s5 + $0x8] sm:$0xff]  }
 0x328   :  { %4900 = vmatpush1.bf16.msra.mxu0 %v6209_v4  ;;  %v6273_v4 = vld [vmem:[%s6869_s5 + $0x50] sm:$0xff]  }
 0x329   :  { %4901 = vmatprep.subr.bf16.mxu0 %v6214_v5  ;;  %v6274_v5 = vld [vmem:[%s6869_s5 + $0x10] sm:$0xff]  }
 0x32c   :  { %4902 = vmatpush1.bf16.msra.mxu0 %v6212_v6  ;;  %v6275_v6 = vld [vmem:[%s6869_s5 + $0x58] sm:$0xff]  }
 0x32d   :  { %4903 = vmatprep.subr.bf16.mxu0 %v6217_v8  ;;  %v6276_v8 = vld [vmem:[%s6869_s5 + $0x18] sm:$0xff]  }
 0x330   :  { %4904 = vmatpush1.bf16.msra.mxu0 %v6215_v48  ;;  %v6277_v48 = vld [vmem:[%s6869_s5 + $0x60] sm:$0xff]  }
 0x331   :  { %4905 = vmatprep.subr.bf16.mxu0 %v6220_v9  ;;  %v6278_v9 = vld [vmem:[%s6869_s5 + $0x20] sm:$0xff]  }
 0x334   :  { %4906 = vmatpush1.bf16.msra.mxu0 %v6218_v11  ;;  %v6279_v11 = vld [vmem:[%s6869_s5 + $0x68] sm:$0xff]  }
 0x335   :  { %4918 = vmatprep.subr.bf16.mxu0 %v6223_v46  ;;  %v6280_v46 = vld [vmem:[%s6869_s5 + $0x28] sm:$0xff]  }
 0x337   :  { %4908 = vmatmul.mubr.bf16.vlgmr.msra.gmra.mrb[8].mxu0 %v6789_v7  ;;  %v6241_v7 = vld [vmem:[#allocation8 + $0x364] ss:$8 sps:$4 sm:$0xff]  }
 0x338   :  { %4919 = vmatpush1.bf16.msra.mxu0 %v6221_v12  ;;  %v6281_v12 = vld [vmem:[%s6869_s5 + $0x70] sm:$0xff]  }
 0x339   :  { %4920 = vmatprep.subr.bf16.mxu0 %v6226_v14  ;;  %v6282_v14 = vld [vmem:[%s6869_s5 + $0x30] sm:$0xff]  }
 0x33c   :  { %4921 = vmatpush1.bf16.msra.mxu0 %v6224_v0  ;;  %v6283_v0 = vld [vmem:[%s6869_s5 + $0x78] sm:$0xff]  }
 0x33d   :  { %4922 = vmatprep.subr.bf16.mxu0 %v6229_v16  ;;  %v6284_v16 = vld [vmem:[%s6869_s5 + $0x38] sm:$0xff]   ;;  %s6516_s5 = smov [#allocation16]  }
 0x33e   :  { %s5245_s23 = sshll.u32 %s6516_s5, 4  ;;  %s5246_s23 = int_to_ptr.vmem [resolvable:$true] %s5245_s23 }
 0x33f   :  { %s6466_s24 = scalar_lea.vmem %s5246_s23, 128  ;;  %p6471_p9 = scmp.lt.s32.totalorder %s5246_s23, %s5246_s23 }
 0x340   :  { %4923 = vmatpush1.bf16.msra.mxu0 %v6227_v18  ;;  %v6285_v18 = vld [vmem:[#allocation13] sm:$0xff]   ;;  %p6467_p8 = scmp.ne.s32.totalorder %s5246_s23, %s6466_s24  ;;  %p6472_p10 = scmp.lt.s32.totalorder %s6466_s24, %s6466_s24 }
 0x341   :  { %4924 = vmatprep.subr.bf16.mxu0 %v6232_v19  ;;  %v6514_v19 = vmov 0.0  }
 0x342   :  { %5968 = vmatprep.subr.bf16.mxu1 %v6514_v19  ;;  %5976 = vmatprep.mubr.msk.bf16.mxu1 %vm6515_vm0, %v6514_v19  ;;  %p6473_p11 = por %p6472_p10, %p6471_p9 }
 0x343   :  { %5969 = vmatpush3.bf16.msra.mxu1 %v6285_v18 }
 0x344   :  { %4925 = vmatpush1.bf16.msra.mxu0 %v6230_v26  ;;  %5970 = vmatprep.subr.bf16.mxu1 %v6514_v19  ;;  %v4137_v26 = vld [vmem:[#allocation10] sm:$0x3]  ;;  %p6474_p12 = pnand %p6473_p11, %p6467_p8 }
 0x345   :  { %4926 = vmatprep.subr.bf16.mxu0 %v6235_v20  ;;  %v4142_v20 = vrot.slane %v4137_v26, %v659_v10  ;;  %v6286_v10 = vld [vmem:[#allocation13 + $0x8] sm:$0xff]  }
 0x347   :  { %5971 = vmatpush3.bf16.msra.mxu1 %v6286_v10 }
 0x348   :  { %4927 = vmatpush1.bf16.msra.mxu0 %v6233_v33  ;;  %v4146_v33 = vrot.slane %v4137_v26, %v663_v15  ;;  %5972 = vmatprep.subr.bf16.mxu1 %v6514_v19  ;;  %v6288_v15 = vld [vmem:[#allocation13 + $0x18] sm:$0xff]  }
 0x349   :  { %4928 = vmatprep.subr.bf16.mxu0 %v6238_v22 }
 0x34b   :  { %5973 = vmatpush3.bf16.msra.mxu1 %v6287_v3 }
 0x34c   :  { %4929 = vmatpush1.bf16.msra.mxu0 %v6236_v25  ;;  %5974 = vmatprep.subr.bf16.mxu1 %v6514_v19 }
 0x34d   :  { %4930 = vmatprep.subr.bf16.mxu0 %v6241_v7 }
 0x34f   :  { %5975 = vmatpush3.bf16.msra.mxu1 %v6288_v15 }
 0x350   :  { %4931 = vmatpush1.bf16.msra.mxu0 %v6239_v29 }
 0x351   :  { %4932 = vmatprep.subr.bf16.mxu0 %v6244_v53 }
 0x354   :  { %4933 = vmatpush1.bf16.msra.mxu0 %v6242_v54 }
 0x355   :  { %4934 = vmatprep.subr.bf16.mxu0 %v6247_v30 }
 0x358   :  { %4935 = vmatpush1.bf16.msra.mxu0 %v6245_v59 }
 0x359   :  { %4936 = vmatprep.subr.bf16.mxu0 %v6250_v62 }
 0x35c   :  { %4937 = vmatpush1.bf16.msra.mxu0 %v6248_v34 }
 0x35d   :  { %4938 = vmatprep.subr.bf16.mxu0 %v6253_v21 }
 0x360   :  { %4939 = vmatpush1.bf16.msra.mxu0 %v6251_v35 }
 0x361   :  { %4940 = vmatprep.subr.bf16.mxu0 %v6256_v13 }
 0x364   :  { %4941 = vmatpush1.bf16.msra.mxu0 %v6254_v36 }
 0x365   :  { %4942 = vmatprep.subr.bf16.mxu0 %v6259_v37 }
 0x368   :  { %4943 = vmatpush1.bf16.msra.mxu0 %v6257_v32  ;;  %v5909_v32 = vld [vmem:[#allocation11] ss:$0 sm:$0xff] }
 0x369   :  { %4944 = vmatprep.subr.bf16.mxu0 %v6262_v38 }
 0x36c   :  { %4945 = vmatpush1.bf16.msra.mxu0 %v6260_v39 }
 0x36d   :  { %4946 = vmatprep.subr.bf16.mxu0 %v6265_v40 }
 0x370   :  { %4947 = vmatpush1.bf16.msra.mxu0 %v6263_v41 }
 0x371   :  { %4948 = vmatprep.subr.bf16.mxu0 %v6268_v42 }
 0x374   :  { %4949 = vmatpush1.bf16.msra.mxu0 %v6266_v43 }
 0x375   :  { %5941 = vmatprep.subr.bf16.mxu0 %v6269_v44 }
 0x3ec   :  { %v3976_v17 = vpop.f32.mrb[8].mxu1 }
 0x3ed   :  { %v5996_v51 = vadd.f32 %v3976_v17, %v684_v49  ;;  %v3978_v52 = vpop.f32.mrb[9].mxu1 }
 0x3ee   :  { %v5997_v55 = vadd.f32 %v3978_v52, %v688_v50  ;;  %v3980_v56 = vpop.f32.mrb[10].mxu1 }
 0x3ef   :  { %v5998_v58 = vadd.f32 %v3980_v56, %v684_v49  ;;  %v3982_v57 = vpop.f32.mrb[11].mxu1  ;;  %v3991_v24 = vmax.f32 %v5996_v51, 0.0 }
 0x3f0   :  { %v5999_v23 = vadd.f32 %v3982_v57, %v688_v50  ;;  %v3992_v28 = vmax.f32 %v5997_v55, 0.0  ;;  %v5926_v50 = vld [vmem:[#allocation14] ss:$0 sm:$0xff] }
 0x3f1   :  { %v3999_v27 = vmax.f32 %v5998_v58, 0.0 }
 0x3f2   :  { %v4000_v60 = vmax.f32 %v5999_v23, 0.0 }
 0x3f3   :  { %v4007_v61 = vpack.c.bf16 %v3999_v27, %v3991_v24 }
 0x3f4   :  { %v4008_v63 = vpack.c.bf16 %v4000_v60, %v3992_v28 }
 0x3f6   :  { %4950 = vmatprep.mubr.bf16.mxu0 %v4008_v63 }
 0x3f7   :  { %4951 = vmatmul.mubr.bf16.vlgmr.msra.gmra.mrb[8].mxu0 %v4007_v61 }
 0x3f8   :  { %5942 = vmatpush3.bf16.msra.mxu0 %v6270_v1 }
 0x3f9   :  { %5943 = vmatprep.subr.bf16.mxu0 %v6271_v31 }
 0x3fc   :  { %5944 = vmatpush3.bf16.msra.mxu0 %v6272_v2 }
 0x3fd   :  { %5945 = vmatprep.subr.bf16.mxu0 %v6273_v4 }
 0x400   :  { %5946 = vmatpush3.bf16.msra.mxu0 %v6274_v5 }
 0x401   :  { %5947 = vmatprep.subr.bf16.mxu0 %v6275_v6 }
 0x404   :  { %5948 = vmatpush3.bf16.msra.mxu0 %v6276_v8 }
 0x405   :  { %5949 = vmatprep.subr.bf16.mxu0 %v6277_v48 }
 0x408   :  { %5950 = vmatpush3.bf16.msra.mxu0 %v6278_v9 }
 0x409   :  { %5951 = vmatprep.subr.bf16.mxu0 %v6279_v11 }
 0x40c   :  { %5952 = vmatpush3.bf16.msra.mxu0 %v6280_v46 }
 0x40d   :  { %5953 = vmatprep.subr.bf16.mxu0 %v6281_v12 }
 0x410   :  { %5954 = vmatpush3.bf16.msra.mxu0 %v6282_v14 }
 0x411   :  { %5955 = vmatprep.subr.bf16.mxu0 %v6283_v0 }
 0x414   :  { %5956 = vmatpush3.bf16.msra.mxu0 %v6284_v16 }
 0x4ca   :  { %v4952_v22 = vpop.f32.mrb[8].mxu0 }
 0x4cb   :  { %v6000_v25 = vadd.f32 %v4952_v22, %v4142_v20  ;;  %v4954_v7 = vpop.f32.mrb[9].mxu0 }
 0x4cc   :  { %v6001_v29 = vadd.f32 %v4954_v7, %v4146_v33  ;;  %v4956_v53 = vpop.f32.mrb[10].mxu0 }
 0x4cd   :  { %v6002_v54 = vadd.f32 %v4956_v53, %v4142_v20  ;;  %v4958_v30 = vpop.f32.mrb[11].mxu0  ;;  %v4961_v62 = vmax.f32 %v6000_v25, 0.0 }
 0x4ce   :  { %v6003_v59 = vadd.f32 %v4958_v30, %v4146_v33  ;;  %v4962_v21 = vmax.f32 %v6001_v29, 0.0 }
 0x4cf   :  { %v4963_v34 = vmax.f32 %v6002_v54, 0.0 }
 0x4d0   :  { %v4964_v35 = vmax.f32 %v6003_v59, 0.0 }
 0x4d1   :  { %v4965_v13 = vpack.c.bf16 %v4963_v34, %v4961_v62 }
 0x4d2   :  { %v4966_v36 = vpack.c.bf16 %v4964_v35, %v4962_v21 }
 0x4d4   :  { %5134 = vmatprep.mubr.bf16.mxu0 %v4966_v36 }
 0x4d5   :  { %5135 = vmatmul.mubr.bf16.vlgmr.msra.gmra.mrb[12].mxu0 %v4965_v13 }
 0x5a8   :  { %v5957_v37 = vpop.f32.mrb[12].mxu0 }
 0x5a9   :  { %v5958_v38 = vpop.f32.mrb[13].mxu0 }
 0x5aa   :  { %v5959_v39 = vadd.f32 %v5958_v38, %v5957_v37  ;;  %v5960_v40 = vpop.f32.mrb[14].mxu0 }
 0x5ab   :  { %v5961_v41 = vpop.f32.mrb[15].mxu0 }
 0x5ac   :  { %v5137_v42 = vadd.f32 %v5959_v39, %v5909_v32  ;;  %v5962_v43 = vadd.f32 %v5961_v41, %v5960_v40 }
 0x5ae   :  { %v5140_v44 = vadd.f32 %v5962_v43, %v5909_v32  ;;  %v5143_v45 = vmax.f32 %v5137_v42, 0.0 }
 0x5b0   :  { %v5144_v47 = vmax.f32 %v5140_v44, 0.0 }
 0x5b2   :  { %v5145_v49 = vpack.c.bf16 %v5144_v47, %v5143_v45 }
 0x5b4   :  { %5977 = vmatmul.mubr.msk.bf16.vlgmr.msra.gmra.mrb[12].mxu1 %vm5185_vm1, %v5145_v49 }
 0x687   :  { %v5223_v17 = vpop.f32.mrb[12].mxu1 }
 0x688   :  { %v5978_v51 = vpop.f32.mrb[13].mxu1  ;;  %v5224_v55 = vadd.f32 %v5926_v50, %v5223_v17 }
 0x689   :  { %v5226_v52 = vpop.f32.mrb[14].mxu1 }
 0x68a   :  { %v5227_v56 = vadd.f32 %v5926_v50, %v5226_v52  ;;  %v5979_v58 = vpop.f32.mrb[15].mxu1 }
 0x68c   :  { %v5939_v57 = vpack.c.bf16 %v5227_v56, %v5224_v55 }
 0x68e   :  { %5940 = vst [vmem:[#allocation16] sm:$0xff] %v5939_v57  }
 0x68f   :  { %6477 = shalt.err (!%p6474_p12)
}
 0x690   :  { %s6478_s28 = scalar_lea.hbm %s6873_s9, 128 }
 0x691   :  { %p6479_p13 = scmp.ne.s32.totalorder %s6873_s9, %s6478_s28  ;;  %p6482_p0 = scmp.lt.u32.totalorder %s6478_s28, %s6873_s9 }
 0x693   :  { %p6484_p1 = pnand %p6482_p0, %p6479_p13 }
 0x695   :  { %6487 = shalt.err (!%p6484_p1)
}
 0x696   :  { %5251 = dma.vmem_to_hbm [thread:$0]  %s5246_s23, 128, %s6873_s9, [#allocation4], %s6511_s4, %s6511_s4, %s6512_s25  }
 0x697   :  { %6498 = dma.done.wait [#allocation4], 128  }
 0x698   :  { %6499 = vsyncadd [#allocation4], 4294967168 }
 0x699   :  { %5255 = vsyncpa [#allocation3], 1 }
 0x69a   :  { %5256 = vsyncpa [#allocation6], 1 }
 0x69b   :  { %5257 = vsyncpa [#allocation9], 1 }
 0x69c   :  { %5258 = vsyncpa [#allocation12], 1 }
 0x69d   :  { %5259 = vsyncpa [#allocation15], 1 }
 0x69e   :  { %5260 = vsyncpa [#allocation4], 1 }

</bundles_post_ra>
